<compile_context>
chip_gen: v7x
topology: tpu7x:2x2x1
jax: 0.10.0
libtpu: 0.0.40
codegen_flags: <defaults>
</compile_context>

<pallas_src>
import functools

import jax
import jax.numpy as jnp
from jax import lax
from jax.experimental import pallas as pl
from jax.experimental.pallas import tpu as pltpu


# ----------------------------------------------------------------------------
# Pallas kernel: both directions of one LSTM layer, gates pre-projected (bf16).
# ----------------------------------------------------------------------------
def _bilstm_scan_kernel(gf_ref, gb_ref, whh_f_ref, whh_b_ref, lens_ref,
                        yf_ref, yb_ref, hf_out_ref, hb_out_ref,
                        hf_sc, cf_sc, hb_sc, cb_sc, *, hidden_dim, chunk):
    """grid=(T/chunk,). gf/gb hold x@W_ih + b (bf16) for `chunk` timesteps each:
    gf for the forward time block g, gb for the backward time block n-1-g."""
    H = hidden_dim
    g_idx = pl.program_id(0)
    n_chunks = pl.num_programs(0)

    @pl.when(g_idx == 0)
    def _():
        hf_sc[...] = jnp.zeros_like(hf_sc)
        cf_sc[...] = jnp.zeros_like(cf_sc)
        hb_sc[...] = jnp.zeros_like(hb_sc)
        cb_sc[...] = jnp.zeros_like(cb_sc)

    # Global time base of the block each direction covers this grid step
    # (mirrors the BlockSpec index_maps).
    t_base_f = g_idx * chunk
    t_base_b = (n_chunks - 1 - g_idx) * chunk

    lens = lens_ref[...]            # (B, 1) int32 — sequence lengths
    whh_f = whh_f_ref[...]          # (H, 4H) bf16 — recurrent weights only
    whh_b = whh_b_ref[...]

    def cell(gates_ref, y_ref, whh, local, t, h, c):
        # Recurrent matmul only; the input projection was hoisted out of the loop.
        gates = gates_ref[local].astype(jnp.float32) + jnp.dot(
            h.astype(whh.dtype), whh, preferred_element_type=jnp.float32)  # (B,4H) f32
        # Gate order [i, f, o, g]: one contiguous sigmoid slab + one tanh slab.
        sig = jax.nn.sigmoid(gates[:, :3 * H])
        i_g = sig[:, 0:H]
        f_g = sig[:, H:2 * H]
        o_g = sig[:, 2 * H:3 * H]
        g_g = jnp.tanh(gates[:, 3 * H:])
        c_new = f_g * c + i_g * g_g
        h_new = o_g * jnp.tanh(c_new)
        valid = t < lens                         # (B, 1) mask from lengths
        h_n = jnp.where(valid, h_new, h)         # freeze state on padded steps
        c_n = jnp.where(valid, c_new, c)
        y_ref[local] = h_n.astype(y_ref.dtype)   # bf16 store
        return h_n, c_n

    def step(j, carry):
        h_f, c_f, h_b, c_b = carry
        # Two data-independent recurrences per step: the scheduler overlaps one
        # direction's MXU push with the other direction's EUP/VPU gate math.
        h_f, c_f = cell(gf_ref, yf_ref, whh_f, j, t_base_f + j, h_f, c_f)
        lb = chunk - 1 - j                       # backward runs the chunk in reverse
        h_b, c_b = cell(gb_ref, yb_ref, whh_b, lb, t_base_b + lb, h_b, c_b)
        return h_f, c_f, h_b, c_b

    h_f, c_f, h_b, c_b = lax.fori_loop(
        0, chunk, step, (hf_sc[...], cf_sc[...], hb_sc[...], cb_sc[...]),
        unroll=True)
    hf_sc[...] = h_f
    cf_sc[...] = c_f
    hb_sc[...] = h_b
    cb_sc[...] = c_b

    @pl.when(g_idx == n_chunks - 1)
    def _():
        hf_out_ref[...] = h_f
        hb_out_ref[...] = h_b


# ----------------------------------------------------------------------------
# Wrapper: one bidirectional layer scan.
# ----------------------------------------------------------------------------
def bilstm_scan(gates_f, gates_b, w_hh_f, w_hh_b, lens_col, hidden_dim, *,
                chunk, vmem_limit_bytes=48 * 1024 * 1024):
    """gates_f/gates_b: (T, B, 4H) bf16 (= x@W_ih + b), w_hh_*: (H, 4H) bf16,
    lens_col: (B, 1) i32. Returns (y_fwd, y_bwd) bf16 (T,B,H) in original time
    order and (h_fwd, h_bwd) f32 (B,H) final hidden states."""
    T, B, G = gates_f.shape
    assert T % chunk == 0 and G == 4 * hidden_dim
    n = T // chunk

    fwd_block = lambda g: (g, 0, 0)
    bwd_block = lambda g: (n - 1 - g, 0, 0)   # backward direction reads/writes reversed chunks
    const2 = lambda g: (0, 0)

    kernel = functools.partial(_bilstm_scan_kernel, hidden_dim=hidden_dim,
                               chunk=chunk)
    y_f, y_b, h_f, h_b = pl.pallas_call(
        kernel,
        out_shape=(
            jax.ShapeDtypeStruct((T, B, hidden_dim), jnp.bfloat16),
            jax.ShapeDtypeStruct((T, B, hidden_dim), jnp.bfloat16),
            jax.ShapeDtypeStruct((B, hidden_dim), jnp.float32),
            jax.ShapeDtypeStruct((B, hidden_dim), jnp.float32),
        ),
        grid_spec=pltpu.PrefetchScalarGridSpec(
            num_scalar_prefetch=0,
            grid=(n,),
            in_specs=[
                pl.BlockSpec((chunk, B, G), fwd_block),
                pl.BlockSpec((chunk, B, G), bwd_block),
                # Constant-index weights / lengths: single-buffer them, don't burn
                # VMEM on a second buffer for a block whose index never changes.
                pl.BlockSpec((hidden_dim, G), const2, pipeline_mode=pl.Buffered(1)),
                pl.BlockSpec((hidden_dim, G), const2, pipeline_mode=pl.Buffered(1)),
                pl.BlockSpec((B, 1), const2, pipeline_mode=pl.Buffered(1)),
            ],
            out_specs=[
                pl.BlockSpec((chunk, B, hidden_dim), fwd_block),
                pl.BlockSpec((chunk, B, hidden_dim), bwd_block),
                pl.BlockSpec((B, hidden_dim), const2),
                pl.BlockSpec((B, hidden_dim), const2),
            ],
            scratch_shapes=[pltpu.VMEM((B, hidden_dim), jnp.float32)] * 4,
        ),
        compiler_params=pltpu.CompilerParams(
            # Time axis carries the recurrence.
            # TODO(synk): on v7x add a leading size-2 "parallel" direction axis to
            # shard fwd/bwd across the two TensorCores.
            dimension_semantics=("arbitrary",),
            vmem_limit_bytes=vmem_limit_bytes),
    )(gates_f, gates_b, w_hh_f, w_hh_b, lens_col)
    return y_f, y_b, h_f, h_b


def lstm_classifier_forward(params, text, text_lengths, *, chunk=16):
    """text: (B, T) int32 token ids; text_lengths: (B,) int32."""
    H = params["hidden_dim"]
    emb = jnp.take(params["embedding"], text, axis=0)          # (B, T, E)
    x = jnp.transpose(emb, (1, 0, 2))                          # (T, B, E) time-major
    T, B, _ = x.shape

    # Pad batch to a multiple of 16 (bf16 sublane packing) and time to a chunk
    # multiple. Padded batch rows get length 0 (always masked); padded timesteps
    # are always masked (state frozen).
    Bp = pl.cdiv(B, 16) * 16
    Tp = pl.cdiv(T, chunk) * chunk
    x = jnp.pad(x, ((0, Tp - T), (0, Bp - B), (0, 0))).astype(jnp.bfloat16)
    lens_col = jnp.pad(text_lengths.astype(jnp.int32), (0, Bp - B)).reshape(Bp, 1)

    y_f = y_b = h_f = h_b = None
    for l, layer in enumerate(params["layers"]):
        wih_f, whh_f, b_f = layer["fwd"]
        wih_b, whh_b, b_b = layer["bwd"]
        # Hoisted input projection: one big time-major matmul per layer/direction,
        # accumulated in f32 and streamed to the kernel as bf16.
        if l == 0:
            pre_f = jnp.einsum("tbe,eg->tbg", x, wih_f,
                               preferred_element_type=jnp.float32) + b_f
            pre_b = jnp.einsum("tbe,eg->tbg", x, wih_b,
                               preferred_element_type=jnp.float32) + b_b
        else:
            # Consume the two (bf16) direction outputs directly: no (T,B,2H) concat in HBM.
            pre_f = (jnp.einsum("tbh,hg->tbg", y_f, wih_f[:H],
                                preferred_element_type=jnp.float32)
                     + jnp.einsum("tbh,hg->tbg", y_b, wih_f[H:],
                                  preferred_element_type=jnp.float32) + b_f)
            pre_b = (jnp.einsum("tbh,hg->tbg", y_f, wih_b[:H],
                                preferred_element_type=jnp.float32)
                     + jnp.einsum("tbh,hg->tbg", y_b, wih_b[H:],
                                  preferred_element_type=jnp.float32) + b_b)
        pre_f = pre_f.astype(jnp.bfloat16)
        pre_b = pre_b.astype(jnp.bfloat16)
        y_f, y_b, h_f, h_b = bilstm_scan(pre_f, pre_b, whh_f, whh_b, lens_col, H,
                                         chunk=chunk)
        # TODO(synk): nn.LSTM inter-layer dropout skipped (eval-mode semantics).
        # TODO(synk): y at padded timesteps carries the frozen state (not zeros as
        # in pad_packed_sequence); masked downstream so final h / output match.

    # hidden[-2] = top-layer forward final state, hidden[-1] = top-layer backward final.
    hidden = jnp.concatenate([h_f, h_b], axis=-1)[:B]          # (B, 2H), un-pad batch
    # Final Linear + Sigmoid in plain XLA: the (B,2H)@(2H,O) matmul is too small to
    # be worth a separate pallas_call.
    return jax.nn.sigmoid(hidden @ params["fc_w"] + params["fc_b"])


# ----------------------------------------------------------------------------
# Deterministic parameter init (synthetic; shapes follow nn.LSTM / nn.Linear)
# ----------------------------------------------------------------------------
def init_params(key, vocab_size, embedding_dim, hidden_dim, output_dim, n_layers):
    n_keys = 1 + n_layers * 2 * 3 + 2
    keys = iter(jax.random.split(key, n_keys))
    s = 0.1
    params = {
        "hidden_dim": hidden_dim,
        "n_layers": n_layers,
        "embedding": s * jax.random.normal(next(keys), (vocab_size, embedding_dim), jnp.float32),
        "layers": [],
    }
    for l in range(n_layers):
        in_dim = embedding_dim if l == 0 else 2 * hidden_dim
        layer = {}
        for d in ("fwd", "bwd"):
            # NOTE: gate column order here is [i, f, o, g]; PyTorch nn.LSTM uses
            # [i, f, g, o] -> permute the last two H-column blocks when importing weights.
            w_ih = (s * jax.random.normal(next(keys), (in_dim, 4 * hidden_dim),
                                          jnp.float32)).astype(jnp.bfloat16)
            w_hh = (s * jax.random.normal(next(keys), (hidden_dim, 4 * hidden_dim),
                                          jnp.float32)).astype(jnp.bfloat16)
            # combined bias (b_ih + b_hh in PyTorch), kept f32
            b = s * jax.random.normal(next(keys), (1, 4 * hidden_dim), jnp.float32)
            layer[d] = (w_ih, w_hh, b)
        params["layers"].append(layer)
    params["fc_w"] = s * jax.random.normal(next(keys), (2 * hidden_dim, output_dim), jnp.float32)
    params["fc_b"] = s * jax.random.normal(next(keys), (1, output_dim), jnp.float32)
    return params


if __name__ == "__main__":
    # H = 128 keeps the gate slabs and the y stores lane-aligned (production
    # requires H % 128 == 0); everything else stays toy-sized.
    VOCAB, EMB, HID, OUT, NLAYERS = 50, 16, 128, 1, 2
    B, T = 4, 20

    key = jax.random.PRNGKey(0)
    pkey, tkey = jax.random.split(key)
    params = init_params(pkey, VOCAB, EMB, HID, OUT, NLAYERS)

    text = jax.random.randint(tkey, (B, T), 0, VOCAB, dtype=jnp.int32)
    # pack_padded_sequence default requires lengths sorted descending
    text_lengths = jnp.array([20, 17, 12, 5], dtype=jnp.int32)

    # chunk=8 for the short demo sequence (exercises multi-chunk carry + reversal);
    # production default is chunk=16-32 with a raised vmem_limit_bytes.
    out = lstm_classifier_forward(params, text, text_lengths, chunk=8)
    out = jax.block_until_ready(out)
    assert out.shape == (B, OUT)
    assert bool(jnp.all(jnp.isfinite(out)))
    assert bool(jnp.all((out >= 0.0) & (out <= 1.0)))
    print("KERNEL_OK")
</pallas_src>

<mosaic_0001>
module attributes {stable_mosaic.version = 11 : i64} {
  func.func @_bilstm_scan_kernel(%arg0: i32, %arg1: memref<8x16x512xbf16, #tpu.memory_space<vmem>>, %arg2: memref<8x16x512xbf16, #tpu.memory_space<vmem>>, %arg3: memref<128x512xbf16, #tpu.memory_space<vmem>>, %arg4: memref<128x512xbf16, #tpu.memory_space<vmem>>, %arg5: memref<16x1xi32, #tpu.memory_space<vmem>>, %arg6: memref<8x16x128xbf16, #tpu.memory_space<vmem>>, %arg7: memref<8x16x128xbf16, #tpu.memory_space<vmem>>, %arg8: memref<16x128xf32, #tpu.memory_space<vmem>>, %arg9: memref<16x128xf32, #tpu.memory_space<vmem>>, %arg10: memref<16x128xf32, #tpu.memory_space<vmem>>, %arg11: memref<16x128xf32, #tpu.memory_space<vmem>>, %arg12: memref<16x128xf32, #tpu.memory_space<vmem>>, %arg13: memref<16x128xf32, #tpu.memory_space<vmem>>) attributes {dimension_semantics = [#tpu.dimension_semantics<arbitrary>], iteration_bounds = array<i64: 3>, scalar_prefetch = 0 : i64, scratch_operands = 4 : i64, tpu.core_type = #tpu.core_type<tc>, window_params = [{transform_indices = @transform_0, window_bounds = array<i64: 8, 16, 512>}, {transform_indices = @transform_1, window_bounds = array<i64: 8, 16, 512>}, {pipeline_mode = #tpu.pipeline_mode<synchronous>, transform_indices = @transform_2, window_bounds = array<i64: 128, 512>}, {pipeline_mode = #tpu.pipeline_mode<synchronous>, transform_indices = @transform_3, window_bounds = array<i64: 128, 512>}, {pipeline_mode = #tpu.pipeline_mode<synchronous>, transform_indices = @transform_4, window_bounds = array<i64: 16, 1>}, {transform_indices = @transform_5, window_bounds = array<i64: 8, 16, 128>}, {transform_indices = @transform_6, window_bounds = array<i64: 8, 16, 128>}, {pipeline_mode = #tpu.pipeline_mode<synchronous>, transform_indices = @transform_7, window_bounds = array<i64: 16, 128>}, {pipeline_mode = #tpu.pipeline_mode<synchronous>, transform_indices = @transform_8, window_bounds = array<i64: 16, 128>}]} {
    %c0_i32 = arith.constant 0 : i32
    %0 = arith.cmpi eq, %arg0, %c0_i32 : i32
    %1 = arith.extui %0 : i1 to i32
    %c0_i32_0 = arith.constant 0 : i32
    %2 = arith.cmpi ne, %1, %c0_i32_0 : i32
    scf.if %2 {
      %cst_131 = arith.constant 0.000000e+00 : f32
      %620 = vector.broadcast %cst_131 : f32 to vector<16x128xf32>
      %c0_132 = arith.constant 0 : index
      %c0_133 = arith.constant 0 : index
      %621 = vector.load %arg10[%c0_132, %c0_133] : memref<16x128xf32, #tpu.memory_space<vmem>>, vector<16x128xf32>
      tpu.vector_store %arg10[%c0_132, %c0_133], %620 {strides = array<i32>} : memref<16x128xf32, #tpu.memory_space<vmem>>, vector<16x128xf32>,
      %cst_134 = arith.constant 0.000000e+00 : f32
      %622 = vector.broadcast %cst_134 : f32 to vector<16x128xf32>
      %c0_135 = arith.constant 0 : index
      %c0_136 = arith.constant 0 : index
      %623 = vector.load %arg11[%c0_135, %c0_136] : memref<16x128xf32, #tpu.memory_space<vmem>>, vector<16x128xf32>
      tpu.vector_store %arg11[%c0_135, %c0_136], %622 {strides = array<i32>} : memref<16x128xf32, #tpu.memory_space<vmem>>, vector<16x128xf32>,
      %cst_137 = arith.constant 0.000000e+00 : f32
      %624 = vector.broadcast %cst_137 : f32 to vector<16x128xf32>
      %c0_138 = arith.constant 0 : index
      %c0_139 = arith.constant 0 : index
      %625 = vector.load %arg12[%c0_138, %c0_139] : memref<16x128xf32, #tpu.memory_space<vmem>>, vector<16x128xf32>
      tpu.vector_store %arg12[%c0_138, %c0_139], %624 {strides = array<i32>} : memref<16x128xf32, #tpu.memory_space<vmem>>, vector<16x128xf32>,
      %cst_140 = arith.constant 0.000000e+00 : f32
      %626 = vector.broadcast %cst_140 : f32 to vector<16x128xf32>
      %c0_141 = arith.constant 0 : index
      %c0_142 = arith.constant 0 : index
      %627 = vector.load %arg13[%c0_141, %c0_142] : memref<16x128xf32, #tpu.memory_space<vmem>>, vector<16x128xf32>
      tpu.vector_store %arg13[%c0_141, %c0_142], %626 {strides = array<i32>} : memref<16x128xf32, #tpu.memory_space<vmem>>, vector<16x128xf32>,
    } else {
    }
    %c8_i32 = arith.constant 8 : i32
    %3 = arith.muli %arg0, %c8_i32 : i32
    %c2_i32 = arith.constant 2 : i32
    %4 = arith.subi %c2_i32, %arg0 : i32
    %c8_i32_1 = arith.constant 8 : i32
    %5 = arith.muli %4, %c8_i32_1 : i32
    %c0 = arith.constant 0 : index
    %c0_2 = arith.constant 0 : index
    %6 = vector.load %arg5[%c0, %c0_2] : memref<16x1xi32, #tpu.memory_space<vmem>>, vector<16x1xi32>
    %c0_3 = arith.constant 0 : index
    %c0_4 = arith.constant 0 : index
    %7 = vector.load %arg3[%c0_3, %c0_4] : memref<128x512xbf16, #tpu.memory_space<vmem>>, vector<128x512xbf16>
    %c0_5 = arith.constant 0 : index
    %c0_6 = arith.constant 0 : index
    %8 = vector.load %arg4[%c0_5, %c0_6] : memref<128x512xbf16, #tpu.memory_space<vmem>>, vector<128x512xbf16>
    %c0_7 = arith.constant 0 : index
    %c0_8 = arith.constant 0 : index
    %9 = vector.load %arg10[%c0_7, %c0_8] : memref<16x128xf32, #tpu.memory_space<vmem>>, vector<16x128xf32>
    %c0_9 = arith.constant 0 : index
    %c0_10 = arith.constant 0 : index
    %10 = vector.load %arg11[%c0_9, %c0_10] : memref<16x128xf32, #tpu.memory_space<vmem>>, vector<16x128xf32>
    %c0_11 = arith.constant 0 : index
    %c0_12 = arith.constant 0 : index
    %11 = vector.load %arg12[%c0_11, %c0_12] : memref<16x128xf32, #tpu.memory_space<vmem>>, vector<16x128xf32>
    %c0_13 = arith.constant 0 : index
    %c0_14 = arith.constant 0 : index
    %12 = vector.load %arg13[%c0_13, %c0_14] : memref<16x128xf32, #tpu.memory_space<vmem>>, vector<16x128xf32>
    %c0_i32_15 = arith.constant 0 : i32
    %13 = arith.addi %3, %c0_i32_15 : i32
    %14 = arith.index_cast %c0_i32_15 : i32 to index
    %c0_16 = arith.constant 0 : index
    %c0_17 = arith.constant 0 : index
    %15 = vector.load %arg1[%14, %c0_16, %c0_17] : memref<8x16x512xbf16, #tpu.memory_space<vmem>>, vector<1x16x512xbf16>
    %16 = vector.shape_cast %15 : vector<1x16x512xbf16> to vector<16x512xbf16>
    %17 = arith.extf %16 : vector<16x512xbf16> to vector<16x512xf32>
    %18 = arith.truncf %9 : vector<16x128xf32> to vector<16x128xbf16>
    %cst = arith.constant dense<0.000000e+00> : vector<16x512xf32>
    %19 = tpu.matmul %18, %7, %cst {dimension_numbers = #tpu.dot_dimension_numbers<[1], [0], [0], [1], [0, 0, 1, 1], [], []>} : vector<16x128xbf16>, vector<128x512xbf16>, vector<16x512xf32> -> vector<16x512xf32>
    %20 = arith.addf %17, %19 : vector<16x512xf32>
    %21 = vector.extract_strided_slice %20 {offsets = [0, 0], sizes = [16, 384], strides = [1, 1]} : vector<16x512xf32> to vector<16x384xf32>
    %22 = arith.negf %21 : vector<16x384xf32>
    %23 = math.exp %22 : vector<16x384xf32>
    %cst_18 = arith.constant 1.000000e+00 : f32
    %24 = vector.broadcast %cst_18 : f32 to vector<16x384xf32>
    %25 = arith.addf %24, %23 : vector<16x384xf32>
    %26 = arith.divf %24, %25 : vector<16x384xf32>
    %27 = vector.extract_strided_slice %26 {offsets = [0, 0], sizes = [16, 128], strides = [1, 1]} : vector<16x384xf32> to vector<16x128xf32>
    %28 = vector.extract_strided_slice %26 {offsets = [0, 128], sizes = [16, 128], strides = [1, 1]} : vector<16x384xf32> to vector<16x128xf32>
    %29 = vector.extract_strided_slice %26 {offsets = [0, 256], sizes = [16, 128], strides = [1, 1]} : vector<16x384xf32> to vector<16x128xf32>
    %30 = vector.extract_strided_slice %20 {offsets = [0, 384], sizes = [16, 128], strides = [1, 1]} : vector<16x512xf32> to vector<16x128xf32>
    %31 = math.tanh %30 : vector<16x128xf32>
    %32 = arith.mulf %28, %10 : vector<16x128xf32>
    %33 = arith.mulf %27, %31 : vector<16x128xf32>
    %34 = arith.addf %32, %33 : vector<16x128xf32>
    %35 = math.tanh %34 : vector<16x128xf32>
    %36 = arith.mulf %29, %35 : vector<16x128xf32>
    %37 = vector.broadcast %13 : i32 to vector<16x1xi32>
    %38 = arith.cmpi slt, %37, %6 : vector<16x1xi32>
    %39 = vector.shape_cast %38 : vector<16x1xi1> to vector<16x1xi1>
    %40 = vector.broadcast %39 : vector<16x1xi1> to vector<16x128xi1>
    %41 = arith.select %40, %36, %9 : vector<16x128xi1>, vector<16x128xf32>
    %42 = vector.shape_cast %38 : vector<16x1xi1> to vector<16x1xi1>
    %43 = vector.broadcast %42 : vector<16x1xi1> to vector<16x128xi1>
    %44 = arith.select %43, %34, %10 : vector<16x128xi1>, vector<16x128xf32>
    %45 = arith.truncf %41 : vector<16x128xf32> to vector<16x128xbf16>
    %46 = arith.index_cast %c0_i32_15 : i32 to index
    %c0_19 = arith.constant 0 : index
    %c0_20 = arith.constant 0 : index
    %47 = vector.load %arg6[%46, %c0_19, %c0_20] : memref<8x16x128xbf16, #tpu.memory_space<vmem>>, vector<1x16x128xbf16>
    %48 = vector.shape_cast %47 : vector<1x16x128xbf16> to vector<16x128xbf16>
    %49 = vector.shape_cast %45 : vector<16x128xbf16> to vector<1x16x128xbf16>
    tpu.vector_store %arg6[%46, %c0_19, %c0_20], %49 {strides = array<i32>} : memref<8x16x128xbf16, #tpu.memory_space<vmem>>, vector<1x16x128xbf16>,
    %c7_i32 = arith.constant 7 : i32
    %50 = arith.subi %c7_i32, %c0_i32_15 : i32
    %51 = arith.addi %5, %50 : i32
    %52 = arith.index_cast %50 : i32 to index
    %c0_21 = arith.constant 0 : index
    %c0_22 = arith.constant 0 : index
    %53 = vector.load %arg2[%52, %c0_21, %c0_22] : memref<8x16x512xbf16, #tpu.memory_space<vmem>>, vector<1x16x512xbf16>
    %54 = vector.shape_cast %53 : vector<1x16x512xbf16> to vector<16x512xbf16>
    %55 = arith.extf %54 : vector<16x512xbf16> to vector<16x512xf32>
    %56 = arith.truncf %11 : vector<16x128xf32> to vector<16x128xbf16>
    %cst_23 = arith.constant dense<0.000000e+00> : vector<16x512xf32>
    %57 = tpu.matmul %56, %8, %cst_23 {dimension_numbers = #tpu.dot_dimension_numbers<[1], [0], [0], [1], [0, 0, 1, 1], [], []>} : vector<16x128xbf16>, vector<128x512xbf16>, vector<16x512xf32> -> vector<16x512xf32>
    %58 = arith.addf %55, %57 : vector<16x512xf32>
    %59 = vector.extract_strided_slice %58 {offsets = [0, 0], sizes = [16, 384], strides = [1, 1]} : vector<16x512xf32> to vector<16x384xf32>
    %60 = arith.negf %59 : vector<16x384xf32>
    %61 = math.exp %60 : vector<16x384xf32>
    %cst_24 = arith.constant 1.000000e+00 : f32
    %62 = vector.broadcast %cst_24 : f32 to vector<16x384xf32>
    %63 = arith.addf %62, %61 : vector<16x384xf32>
    %64 = arith.divf %62, %63 : vector<16x384xf32>
    %65 = vector.extract_strided_slice %64 {offsets = [0, 0], sizes = [16, 128], strides = [1, 1]} : vector<16x384xf32> to vector<16x128xf32>
    %66 = vector.extract_strided_slice %64 {offsets = [0, 128], sizes = [16, 128], strides = [1, 1]} : vector<16x384xf32> to vector<16x128xf32>
    %67 = vector.extract_strided_slice %64 {offsets = [0, 256], sizes = [16, 128], strides = [1, 1]} : vector<16x384xf32> to vector<16x128xf32>
    %68 = vector.extract_strided_slice %58 {offsets = [0, 384], sizes = [16, 128], strides = [1, 1]} : vector<16x512xf32> to vector<16x128xf32>
    %69 = math.tanh %68 : vector<16x128xf32>
    %70 = arith.mulf %66, %12 : vector<16x128xf32>
    %71 = arith.mulf %65, %69 : vector<16x128xf32>
    %72 = arith.addf %70, %71 : vector<16x128xf32>
    %73 = math.tanh %72 : vector<16x128xf32>
    %74 = arith.mulf %67, %73 : vector<16x128xf32>
    %75 = vector.broadcast %51 : i32 to vector<16x1xi32>
    %76 = arith.cmpi slt, %75, %6 : vector<16x1xi32>
    %77 = vector.shape_cast %76 : vector<16x1xi1> to vector<16x1xi1>
    %78 = vector.broadcast %77 : vector<16x1xi1> to vector<16x128xi1>
    %79 = arith.select %78, %74, %11 : vector<16x128xi1>, vector<16x128xf32>
    %80 = vector.shape_cast %76 : vector<16x1xi1> to vector<16x1xi1>
    %81 = vector.broadcast %80 : vector<16x1xi1> to vector<16x128xi1>
    %82 = arith.select %81, %72, %12 : vector<16x128xi1>, vector<16x128xf32>
    %83 = arith.truncf %79 : vector<16x128xf32> to vector<16x128xbf16>
    %84 = arith.index_cast %50 : i32 to index
    %c0_25 = arith.constant 0 : index
    %c0_26 = arith.constant 0 : index
    %85 = vector.load %arg7[%84, %c0_25, %c0_26] : memref<8x16x128xbf16, #tpu.memory_space<vmem>>, vector<1x16x128xbf16>
    %86 = vector.shape_cast %85 : vector<1x16x128xbf16> to vector<16x128xbf16>
    %87 = vector.shape_cast %83 : vector<16x128xbf16> to vector<1x16x128xbf16>
    tpu.vector_store %arg7[%84, %c0_25, %c0_26], %87 {strides = array<i32>} : memref<8x16x128xbf16, #tpu.memory_space<vmem>>, vector<1x16x128xbf16>,
    %c1_i32 = arith.constant 1 : i32
    %88 = arith.addi %3, %c1_i32 : i32
    %89 = arith.index_cast %c1_i32 : i32 to index
    %c0_27 = arith.constant 0 : index
    %c0_28 = arith.constant 0 : index
    %90 = vector.load %arg1[%89, %c0_27, %c0_28] : memref<8x16x512xbf16, #tpu.memory_space<vmem>>, vector<1x16x512xbf16>
    %91 = vector.shape_cast %90 : vector<1x16x512xbf16> to vector<16x512xbf16>
    %92 = arith.extf %91 : vector<16x512xbf16> to vector<16x512xf32>
    %93 = arith.truncf %41 : vector<16x128xf32> to vector<16x128xbf16>
    %cst_29 = arith.constant dense<0.000000e+00> : vector<16x512xf32>
    %94 = tpu.matmul %93, %7, %cst_29 {dimension_numbers = #tpu.dot_dimension_numbers<[1], [0], [0], [1], [0, 0, 1, 1], [], []>} : vector<16x128xbf16>, vector<128x512xbf16>, vector<16x512xf32> -> vector<16x512xf32>
    %95 = arith.addf %92, %94 : vector<16x512xf32>
    %96 = vector.extract_strided_slice %95 {offsets = [0, 0], sizes = [16, 384], strides = [1, 1]} : vector<16x512xf32> to vector<16x384xf32>
    %97 = arith.negf %96 : vector<16x384xf32>
    %98 = math.exp %97 : vector<16x384xf32>
    %cst_30 = arith.constant 1.000000e+00 : f32
    %99 = vector.broadcast %cst_30 : f32 to vector<16x384xf32>
    %100 = arith.addf %99, %98 : vector<16x384xf32>
    %101 = arith.divf %99, %100 : vector<16x384xf32>
    %102 = vector.extract_strided_slice %101 {offsets = [0, 0], sizes = [16, 128], strides = [1, 1]} : vector<16x384xf32> to vector<16x128xf32>
    %103 = vector.extract_strided_slice %101 {offsets = [0, 128], sizes = [16, 128], strides = [1, 1]} : vector<16x384xf32> to vector<16x128xf32>
    %104 = vector.extract_strided_slice %101 {offsets = [0, 256], sizes = [16, 128], strides = [1, 1]} : vector<16x384xf32> to vector<16x128xf32>
    %105 = vector.extract_strided_slice %95 {offsets = [0, 384], sizes = [16, 128], strides = [1, 1]} : vector<16x512xf32> to vector<16x128xf32>
    %106 = math.tanh %105 : vector<16x128xf32>
    %107 = arith.mulf %103, %44 : vector<16x128xf32>
    %108 = arith.mulf %102, %106 : vector<16x128xf32>
    %109 = arith.addf %107, %108 : vector<16x128xf32>
    %110 = math.tanh %109 : vector<16x128xf32>
    %111 = arith.mulf %104, %110 : vector<16x128xf32>
    %112 = vector.broadcast %88 : i32 to vector<16x1xi32>
    %113 = arith.cmpi slt, %112, %6 : vector<16x1xi32>
    %114 = vector.shape_cast %113 : vector<16x1xi1> to vector<16x1xi1>
    %115 = vector.broadcast %114 : vector<16x1xi1> to vector<16x128xi1>
    %116 = arith.select %115, %111, %41 : vector<16x128xi1>, vector<16x128xf32>
    %117 = vector.shape_cast %113 : vector<16x1xi1> to vector<16x1xi1>
    %118 = vector.broadcast %117 : vector<16x1xi1> to vector<16x128xi1>
    %119 = arith.select %118, %109, %44 : vector<16x128xi1>, vector<16x128xf32>
    %120 = arith.truncf %116 : vector<16x128xf32> to vector<16x128xbf16>
    %121 = arith.index_cast %c1_i32 : i32 to index
    %c0_31 = arith.constant 0 : index
    %c0_32 = arith.constant 0 : index
    %122 = vector.load %arg6[%121, %c0_31, %c0_32] : memref<8x16x128xbf16, #tpu.memory_space<vmem>>, vector<1x16x128xbf16>
    %123 = vector.shape_cast %122 : vector<1x16x128xbf16> to vector<16x128xbf16>
    %124 = vector.shape_cast %120 : vector<16x128xbf16> to vector<1x16x128xbf16>
    tpu.vector_store %arg6[%121, %c0_31, %c0_32], %124 {strides = array<i32>} : memref<8x16x128xbf16, #tpu.memory_space<vmem>>, vector<1x16x128xbf16>,
    %c7_i32_33 = arith.constant 7 : i32
    %125 = arith.subi %c7_i32_33, %c1_i32 : i32
    %126 = arith.addi %5, %125 : i32
    %127 = arith.index_cast %125 : i32 to index
    %c0_34 = arith.constant 0 : index
    %c0_35 = arith.constant 0 : index
    %128 = vector.load %arg2[%127, %c0_34, %c0_35] : memref<8x16x512xbf16, #tpu.memory_space<vmem>>, vector<1x16x512xbf16>
    %129 = vector.shape_cast %128 : vector<1x16x512xbf16> to vector<16x512xbf16>
    %130 = arith.extf %129 : vector<16x512xbf16> to vector<16x512xf32>
    %131 = arith.truncf %79 : vector<16x128xf32> to vector<16x128xbf16>
    %cst_36 = arith.constant dense<0.000000e+00> : vector<16x512xf32>
    %132 = tpu.matmul %131, %8, %cst_36 {dimension_numbers = #tpu.dot_dimension_numbers<[1], [0], [0], [1], [0, 0, 1, 1], [], []>} : vector<16x128xbf16>, vector<128x512xbf16>, vector<16x512xf32> -> vector<16x512xf32>
    %133 = arith.addf %130, %132 : vector<16x512xf32>
    %134 = vector.extract_strided_slice %133 {offsets = [0, 0], sizes = [16, 384], strides = [1, 1]} : vector<16x512xf32> to vector<16x384xf32>
    %135 = arith.negf %134 : vector<16x384xf32>
    %136 = math.exp %135 : vector<16x384xf32>
    %cst_37 = arith.constant 1.000000e+00 : f32
    %137 = vector.broadcast %cst_37 : f32 to vector<16x384xf32>
    %138 = arith.addf %137, %136 : vector<16x384xf32>
    %139 = arith.divf %137, %138 : vector<16x384xf32>
    %140 = vector.extract_strided_slice %139 {offsets = [0, 0], sizes = [16, 128], strides = [1, 1]} : vector<16x384xf32> to vector<16x128xf32>
    %141 = vector.extract_strided_slice %139 {offsets = [0, 128], sizes = [16, 128], strides = [1, 1]} : vector<16x384xf32> to vector<16x128xf32>
    %142 = vector.extract_strided_slice %139 {offsets = [0, 256], sizes = [16, 128], strides = [1, 1]} : vector<16x384xf32> to vector<16x128xf32>
    %143 = vector.extract_strided_slice %133 {offsets = [0, 384], sizes = [16, 128], strides = [1, 1]} : vector<16x512xf32> to vector<16x128xf32>
    %144 = math.tanh %143 : vector<16x128xf32>
    %145 = arith.mulf %141, %82 : vector<16x128xf32>
    %146 = arith.mulf %140, %144 : vector<16x128xf32>
    %147 = arith.addf %145, %146 : vector<16x128xf32>
    %148 = math.tanh %147 : vector<16x128xf32>
    %149 = arith.mulf %142, %148 : vector<16x128xf32>
    %150 = vector.broadcast %126 : i32 to vector<16x1xi32>
    %151 = arith.cmpi slt, %150, %6 : vector<16x1xi32>
    %152 = vector.shape_cast %151 : vector<16x1xi1> to vector<16x1xi1>
    %153 = vector.broadcast %152 : vector<16x1xi1> to vector<16x128xi1>
    %154 = arith.select %153, %149, %79 : vector<16x128xi1>, vector<16x128xf32>
    %155 = vector.shape_cast %151 : vector<16x1xi1> to vector<16x1xi1>
    %156 = vector.broadcast %155 : vector<16x1xi1> to vector<16x128xi1>
    %157 = arith.select %156, %147, %82 : vector<16x128xi1>, vector<16x128xf32>
    %158 = arith.truncf %154 : vector<16x128xf32> to vector<16x128xbf16>
    %159 = arith.index_cast %125 : i32 to index
    %c0_38 = arith.constant 0 : index
    %c0_39 = arith.constant 0 : index
    %160 = vector.load %arg7[%159, %c0_38, %c0_39] : memref<8x16x128xbf16, #tpu.memory_space<vmem>>, vector<1x16x128xbf16>
    %161 = vector.shape_cast %160 : vector<1x16x128xbf16> to vector<16x128xbf16>
    %162 = vector.shape_cast %158 : vector<16x128xbf16> to vector<1x16x128xbf16>
    tpu.vector_store %arg7[%159, %c0_38, %c0_39], %162 {strides = array<i32>} : memref<8x16x128xbf16, #tpu.memory_space<vmem>>, vector<1x16x128xbf16>,
    %c2_i32_40 = arith.constant 2 : i32
    %163 = arith.addi %3, %c2_i32_40 : i32
    %164 = arith.index_cast %c2_i32_40 : i32 to index
    %c0_41 = arith.constant 0 : index
    %c0_42 = arith.constant 0 : index
    %165 = vector.load %arg1[%164, %c0_41, %c0_42] : memref<8x16x512xbf16, #tpu.memory_space<vmem>>, vector<1x16x512xbf16>
    %166 = vector.shape_cast %165 : vector<1x16x512xbf16> to vector<16x512xbf16>
    %167 = arith.extf %166 : vector<16x512xbf16> to vector<16x512xf32>
    %168 = arith.truncf %116 : vector<16x128xf32> to vector<16x128xbf16>
    %cst_43 = arith.constant dense<0.000000e+00> : vector<16x512xf32>
    %169 = tpu.matmul %168, %7, %cst_43 {dimension_numbers = #tpu.dot_dimension_numbers<[1], [0], [0], [1], [0, 0, 1, 1], [], []>} : vector<16x128xbf16>, vector<128x512xbf16>, vector<16x512xf32> -> vector<16x512xf32>
    %170 = arith.addf %167, %169 : vector<16x512xf32>
    %171 = vector.extract_strided_slice %170 {offsets = [0, 0], sizes = [16, 384], strides = [1, 1]} : vector<16x512xf32> to vector<16x384xf32>
    %172 = arith.negf %171 : vector<16x384xf32>
    %173 = math.exp %172 : vector<16x384xf32>
    %cst_44 = arith.constant 1.000000e+00 : f32
    %174 = vector.broadcast %cst_44 : f32 to vector<16x384xf32>
    %175 = arith.addf %174, %173 : vector<16x384xf32>
    %176 = arith.divf %174, %175 : vector<16x384xf32>
    %177 = vector.extract_strided_slice %176 {offsets = [0, 0], sizes = [16, 128], strides = [1, 1]} : vector<16x384xf32> to vector<16x128xf32>
    %178 = vector.extract_strided_slice %176 {offsets = [0, 128], sizes = [16, 128], strides = [1, 1]} : vector<16x384xf32> to vector<16x128xf32>
    %179 = vector.extract_strided_slice %176 {offsets = [0, 256], sizes = [16, 128], strides = [1, 1]} : vector<16x384xf32> to vector<16x128xf32>
    %180 = vector.extract_strided_slice %170 {offsets = [0, 384], sizes = [16, 128], strides = [1, 1]} : vector<16x512xf32> to vector<16x128xf32>
    %181 = math.tanh %180 : vector<16x128xf32>
    %182 = arith.mulf %178, %119 : vector<16x128xf32>
    %183 = arith.mulf %177, %181 : vector<16x128xf32>
    %184 = arith.addf %182, %183 : vector<16x128xf32>
    %185 = math.tanh %184 : vector<16x128xf32>
    %186 = arith.mulf %179, %185 : vector<16x128xf32>
    %187 = vector.broadcast %163 : i32 to vector<16x1xi32>
    %188 = arith.cmpi slt, %187, %6 : vector<16x1xi32>
    %189 = vector.shape_cast %188 : vector<16x1xi1> to vector<16x1xi1>
    %190 = vector.broadcast %189 : vector<16x1xi1> to vector<16x128xi1>
    %191 = arith.select %190, %186, %116 : vector<16x128xi1>, vector<16x128xf32>
    %192 = vector.shape_cast %188 : vector<16x1xi1> to vector<16x1xi1>
    %193 = vector.broadcast %192 : vector<16x1xi1> to vector<16x128xi1>
    %194 = arith.select %193, %184, %119 : vector<16x128xi1>, vector<16x128xf32>
    %195 = arith.truncf %191 : vector<16x128xf32> to vector<16x128xbf16>
    %196 = arith.index_cast %c2_i32_40 : i32 to index
    %c0_45 = arith.constant 0 : index
    %c0_46 = arith.constant 0 : index
    %197 = vector.load %arg6[%196, %c0_45, %c0_46] : memref<8x16x128xbf16, #tpu.memory_space<vmem>>, vector<1x16x128xbf16>
    %198 = vector.shape_cast %197 : vector<1x16x128xbf16> to vector<16x128xbf16>
    %199 = vector.shape_cast %195 : vector<16x128xbf16> to vector<1x16x128xbf16>
    tpu.vector_store %arg6[%196, %c0_45, %c0_46], %199 {strides = array<i32>} : memref<8x16x128xbf16, #tpu.memory_space<vmem>>, vector<1x16x128xbf16>,
    %c7_i32_47 = arith.constant 7 : i32
    %200 = arith.subi %c7_i32_47, %c2_i32_40 : i32
    %201 = arith.addi %5, %200 : i32
    %202 = arith.index_cast %200 : i32 to index
    %c0_48 = arith.constant 0 : index
    %c0_49 = arith.constant 0 : index
    %203 = vector.load %arg2[%202, %c0_48, %c0_49] : memref<8x16x512xbf16, #tpu.memory_space<vmem>>, vector<1x16x512xbf16>
    %204 = vector.shape_cast %203 : vector<1x16x512xbf16> to vector<16x512xbf16>
    %205 = arith.extf %204 : vector<16x512xbf16> to vector<16x512xf32>
    %206 = arith.truncf %154 : vector<16x128xf32> to vector<16x128xbf16>
    %cst_50 = arith.constant dense<0.000000e+00> : vector<16x512xf32>
    %207 = tpu.matmul %206, %8, %cst_50 {dimension_numbers = #tpu.dot_dimension_numbers<[1], [0], [0], [1], [0, 0, 1, 1], [], []>} : vector<16x128xbf16>, vector<128x512xbf16>, vector<16x512xf32> -> vector<16x512xf32>
    %208 = arith.addf %205, %207 : vector<16x512xf32>
    %209 = vector.extract_strided_slice %208 {offsets = [0, 0], sizes = [16, 384], strides = [1, 1]} : vector<16x512xf32> to vector<16x384xf32>
    %210 = arith.negf %209 : vector<16x384xf32>
    %211 = math.exp %210 : vector<16x384xf32>
    %cst_51 = arith.constant 1.000000e+00 : f32
    %212 = vector.broadcast %cst_51 : f32 to vector<16x384xf32>
    %213 = arith.addf %212, %211 : vector<16x384xf32>
    %214 = arith.divf %212, %213 : vector<16x384xf32>
    %215 = vector.extract_strided_slice %214 {offsets = [0, 0], sizes = [16, 128], strides = [1, 1]} : vector<16x384xf32> to vector<16x128xf32>
    %216 = vector.extract_strided_slice %214 {offsets = [0, 128], sizes = [16, 128], strides = [1, 1]} : vector<16x384xf32> to vector<16x128xf32>
    %217 = vector.extract_strided_slice %214 {offsets = [0, 256], sizes = [16, 128], strides = [1, 1]} : vector<16x384xf32> to vector<16x128xf32>
    %218 = vector.extract_strided_slice %208 {offsets = [0, 384], sizes = [16, 128], strides = [1, 1]} : vector<16x512xf32> to vector<16x128xf32>
    %219 = math.tanh %218 : vector<16x128xf32>
    %220 = arith.mulf %216, %157 : vector<16x128xf32>
    %221 = arith.mulf %215, %219 : vector<16x128xf32>
    %222 = arith.addf %220, %221 : vector<16x128xf32>
    %223 = math.tanh %222 : vector<16x128xf32>
    %224 = arith.mulf %217, %223 : vector<16x128xf32>
    %225 = vector.broadcast %201 : i32 to vector<16x1xi32>
    %226 = arith.cmpi slt, %225, %6 : vector<16x1xi32>
    %227 = vector.shape_cast %226 : vector<16x1xi1> to vector<16x1xi1>
    %228 = vector.broadcast %227 : vector<16x1xi1> to vector<16x128xi1>
    %229 = arith.select %228, %224, %154 : vector<16x128xi1>, vector<16x128xf32>
    %230 = vector.shape_cast %226 : vector<16x1xi1> to vector<16x1xi1>
    %231 = vector.broadcast %230 : vector<16x1xi1> to vector<16x128xi1>
    %232 = arith.select %231, %222, %157 : vector<16x128xi1>, vector<16x128xf32>
    %233 = arith.truncf %229 : vector<16x128xf32> to vector<16x128xbf16>
    %234 = arith.index_cast %200 : i32 to index
    %c0_52 = arith.constant 0 : index
    %c0_53 = arith.constant 0 : index
    %235 = vector.load %arg7[%234, %c0_52, %c0_53] : memref<8x16x128xbf16, #tpu.memory_space<vmem>>, vector<1x16x128xbf16>
    %236 = vector.shape_cast %235 : vector<1x16x128xbf16> to vector<16x128xbf16>
    %237 = vector.shape_cast %233 : vector<16x128xbf16> to vector<1x16x128xbf16>
    tpu.vector_store %arg7[%234, %c0_52, %c0_53], %237 {strides = array<i32>} : memref<8x16x128xbf16, #tpu.memory_space<vmem>>, vector<1x16x128xbf16>,
    %c3_i32 = arith.constant 3 : i32
    %238 = arith.addi %3, %c3_i32 : i32
    %239 = arith.index_cast %c3_i32 : i32 to index
    %c0_54 = arith.constant 0 : index
    %c0_55 = arith.constant 0 : index
    %240 = vector.load %arg1[%239, %c0_54, %c0_55] : memref<8x16x512xbf16, #tpu.memory_space<vmem>>, vector<1x16x512xbf16>
    %241 = vector.shape_cast %240 : vector<1x16x512xbf16> to vector<16x512xbf16>
    %242 = arith.extf %241 : vector<16x512xbf16> to vector<16x512xf32>
    %243 = arith.truncf %191 : vector<16x128xf32> to vector<16x128xbf16>
    %cst_56 = arith.constant dense<0.000000e+00> : vector<16x512xf32>
    %244 = tpu.matmul %243, %7, %cst_56 {dimension_numbers = #tpu.dot_dimension_numbers<[1], [0], [0], [1], [0, 0, 1, 1], [], []>} : vector<16x128xbf16>, vector<128x512xbf16>, vector<16x512xf32> -> vector<16x512xf32>
    %245 = arith.addf %242, %244 : vector<16x512xf32>
    %246 = vector.extract_strided_slice %245 {offsets = [0, 0], sizes = [16, 384], strides = [1, 1]} : vector<16x512xf32> to vector<16x384xf32>
    %247 = arith.negf %246 : vector<16x384xf32>
    %248 = math.exp %247 : vector<16x384xf32>
    %cst_57 = arith.constant 1.000000e+00 : f32
    %249 = vector.broadcast %cst_57 : f32 to vector<16x384xf32>
    %250 = arith.addf %249, %248 : vector<16x384xf32>
    %251 = arith.divf %249, %250 : vector<16x384xf32>
    %252 = vector.extract_strided_slice %251 {offsets = [0, 0], sizes = [16, 128], strides = [1, 1]} : vector<16x384xf32> to vector<16x128xf32>
    %253 = vector.extract_strided_slice %251 {offsets = [0, 128], sizes = [16, 128], strides = [1, 1]} : vector<16x384xf32> to vector<16x128xf32>
    %254 = vector.extract_strided_slice %251 {offsets = [0, 256], sizes = [16, 128], strides = [1, 1]} : vector<16x384xf32> to vector<16x128xf32>
    %255 = vector.extract_strided_slice %245 {offsets = [0, 384], sizes = [16, 128], strides = [1, 1]} : vector<16x512xf32> to vector<16x128xf32>
    %256 = math.tanh %255 : vector<16x128xf32>
    %257 = arith.mulf %253, %194 : vector<16x128xf32>
    %258 = arith.mulf %252, %256 : vector<16x128xf32>
    %259 = arith.addf %257, %258 : vector<16x128xf32>
    %260 = math.tanh %259 : vector<16x128xf32>
    %261 = arith.mulf %254, %260 : vector<16x128xf32>
    %262 = vector.broadcast %238 : i32 to vector<16x1xi32>
    %263 = arith.cmpi slt, %262, %6 : vector<16x1xi32>
    %264 = vector.shape_cast %263 : vector<16x1xi1> to vector<16x1xi1>
    %265 = vector.broadcast %264 : vector<16x1xi1> to vector<16x128xi1>
    %266 = arith.select %265, %261, %191 : vector<16x128xi1>, vector<16x128xf32>
    %267 = vector.shape_cast %263 : vector<16x1xi1> to vector<16x1xi1>
    %268 = vector.broadcast %267 : vector<16x1xi1> to vector<16x128xi1>
    %269 = arith.select %268, %259, %194 : vector<16x128xi1>, vector<16x128xf32>
    %270 = arith.truncf %266 : vector<16x128xf32> to vector<16x128xbf16>
    %271 = arith.index_cast %c3_i32 : i32 to index
    %c0_58 = arith.constant 0 : index
    %c0_59 = arith.constant 0 : index
    %272 = vector.load %arg6[%271, %c0_58, %c0_59] : memref<8x16x128xbf16, #tpu.memory_space<vmem>>, vector<1x16x128xbf16>
    %273 = vector.shape_cast %272 : vector<1x16x128xbf16> to vector<16x128xbf16>
    %274 = vector.shape_cast %270 : vector<16x128xbf16> to vector<1x16x128xbf16>
    tpu.vector_store %arg6[%271, %c0_58, %c0_59], %274 {strides = array<i32>} : memref<8x16x128xbf16, #tpu.memory_space<vmem>>, vector<1x16x128xbf16>,
    %c7_i32_60 = arith.constant 7 : i32
    %275 = arith.subi %c7_i32_60, %c3_i32 : i32
    %276 = arith.addi %5, %275 : i32
    %277 = arith.index_cast %275 : i32 to index
    %c0_61 = arith.constant 0 : index
    %c0_62 = arith.constant 0 : index
    %278 = vector.load %arg2[%277, %c0_61, %c0_62] : memref<8x16x512xbf16, #tpu.memory_space<vmem>>, vector<1x16x512xbf16>
    %279 = vector.shape_cast %278 : vector<1x16x512xbf16> to vector<16x512xbf16>
    %280 = arith.extf %279 : vector<16x512xbf16> to vector<16x512xf32>
    %281 = arith.truncf %229 : vector<16x128xf32> to vector<16x128xbf16>
    %cst_63 = arith.constant dense<0.000000e+00> : vector<16x512xf32>
    %282 = tpu.matmul %281, %8, %cst_63 {dimension_numbers = #tpu.dot_dimension_numbers<[1], [0], [0], [1], [0, 0, 1, 1], [], []>} : vector<16x128xbf16>, vector<128x512xbf16>, vector<16x512xf32> -> vector<16x512xf32>
    %283 = arith.addf %280, %282 : vector<16x512xf32>
    %284 = vector.extract_strided_slice %283 {offsets = [0, 0], sizes = [16, 384], strides = [1, 1]} : vector<16x512xf32> to vector<16x384xf32>
    %285 = arith.negf %284 : vector<16x384xf32>
    %286 = math.exp %285 : vector<16x384xf32>
    %cst_64 = arith.constant 1.000000e+00 : f32
    %287 = vector.broadcast %cst_64 : f32 to vector<16x384xf32>
    %288 = arith.addf %287, %286 : vector<16x384xf32>
    %289 = arith.divf %287, %288 : vector<16x384xf32>
    %290 = vector.extract_strided_slice %289 {offsets = [0, 0], sizes = [16, 128], strides = [1, 1]} : vector<16x384xf32> to vector<16x128xf32>
    %291 = vector.extract_strided_slice %289 {offsets = [0, 128], sizes = [16, 128], strides = [1, 1]} : vector<16x384xf32> to vector<16x128xf32>
    %292 = vector.extract_strided_slice %289 {offsets = [0, 256], sizes = [16, 128], strides = [1, 1]} : vector<16x384xf32> to vector<16x128xf32>
    %293 = vector.extract_strided_slice %283 {offsets = [0, 384], sizes = [16, 128], strides = [1, 1]} : vector<16x512xf32> to vector<16x128xf32>
    %294 = math.tanh %293 : vector<16x128xf32>
    %295 = arith.mulf %291, %232 : vector<16x128xf32>
    %296 = arith.mulf %290, %294 : vector<16x128xf32>
    %297 = arith.addf %295, %296 : vector<16x128xf32>
    %298 = math.tanh %297 : vector<16x128xf32>
    %299 = arith.mulf %292, %298 : vector<16x128xf32>
    %300 = vector.broadcast %276 : i32 to vector<16x1xi32>
    %301 = arith.cmpi slt, %300, %6 : vector<16x1xi32>
    %302 = vector.shape_cast %301 : vector<16x1xi1> to vector<16x1xi1>
    %303 = vector.broadcast %302 : vector<16x1xi1> to vector<16x128xi1>
    %304 = arith.select %303, %299, %229 : vector<16x128xi1>, vector<16x128xf32>
    %305 = vector.shape_cast %301 : vector<16x1xi1> to vector<16x1xi1>
    %306 = vector.broadcast %305 : vector<16x1xi1> to vector<16x128xi1>
    %307 = arith.select %306, %297, %232 : vector<16x128xi1>, vector<16x128xf32>
    %308 = arith.truncf %304 : vector<16x128xf32> to vector<16x128xbf16>
    %309 = arith.index_cast %275 : i32 to index
    %c0_65 = arith.constant 0 : index
    %c0_66 = arith.constant 0 : index
    %310 = vector.load %arg7[%309, %c0_65, %c0_66] : memref<8x16x128xbf16, #tpu.memory_space<vmem>>, vector<1x16x128xbf16>
    %311 = vector.shape_cast %310 : vector<1x16x128xbf16> to vector<16x128xbf16>
    %312 = vector.shape_cast %308 : vector<16x128xbf16> to vector<1x16x128xbf16>
    tpu.vector_store %arg7[%309, %c0_65, %c0_66], %312 {strides = array<i32>} : memref<8x16x128xbf16, #tpu.memory_space<vmem>>, vector<1x16x128xbf16>,
    %c4_i32 = arith.constant 4 : i32
    %313 = arith.addi %3, %c4_i32 : i32
    %314 = arith.index_cast %c4_i32 : i32 to index
    %c0_67 = arith.constant 0 : index
    %c0_68 = arith.constant 0 : index
    %315 = vector.load %arg1[%314, %c0_67, %c0_68] : memref<8x16x512xbf16, #tpu.memory_space<vmem>>, vector<1x16x512xbf16>
    %316 = vector.shape_cast %315 : vector<1x16x512xbf16> to vector<16x512xbf16>
    %317 = arith.extf %316 : vector<16x512xbf16> to vector<16x512xf32>
    %318 = arith.truncf %266 : vector<16x128xf32> to vector<16x128xbf16>
    %cst_69 = arith.constant dense<0.000000e+00> : vector<16x512xf32>
    %319 = tpu.matmul %318, %7, %cst_69 {dimension_numbers = #tpu.dot_dimension_numbers<[1], [0], [0], [1], [0, 0, 1, 1], [], []>} : vector<16x128xbf16>, vector<128x512xbf16>, vector<16x512xf32> -> vector<16x512xf32>
    %320 = arith.addf %317, %319 : vector<16x512xf32>
    %321 = vector.extract_strided_slice %320 {offsets = [0, 0], sizes = [16, 384], strides = [1, 1]} : vector<16x512xf32> to vector<16x384xf32>
    %322 = arith.negf %321 : vector<16x384xf32>
    %323 = math.exp %322 : vector<16x384xf32>
    %cst_70 = arith.constant 1.000000e+00 : f32
    %324 = vector.broadcast %cst_70 : f32 to vector<16x384xf32>
    %325 = arith.addf %324, %323 : vector<16x384xf32>
    %326 = arith.divf %324, %325 : vector<16x384xf32>
    %327 = vector.extract_strided_slice %326 {offsets = [0, 0], sizes = [16, 128], strides = [1, 1]} : vector<16x384xf32> to vector<16x128xf32>
    %328 = vector.extract_strided_slice %326 {offsets = [0, 128], sizes = [16, 128], strides = [1, 1]} : vector<16x384xf32> to vector<16x128xf32>
    %329 = vector.extract_strided_slice %326 {offsets = [0, 256], sizes = [16, 128], strides = [1, 1]} : vector<16x384xf32> to vector<16x128xf32>
    %330 = vector.extract_strided_slice %320 {offsets = [0, 384], sizes = [16, 128], strides = [1, 1]} : vector<16x512xf32> to vector<16x128xf32>
    %331 = math.tanh %330 : vector<16x128xf32>
    %332 = arith.mulf %328, %269 : vector<16x128xf32>
    %333 = arith.mulf %327, %331 : vector<16x128xf32>
    %334 = arith.addf %332, %333 : vector<16x128xf32>
    %335 = math.tanh %334 : vector<16x128xf32>
    %336 = arith.mulf %329, %335 : vector<16x128xf32>
    %337 = vector.broadcast %313 : i32 to vector<16x1xi32>
    %338 = arith.cmpi slt, %337, %6 : vector<16x1xi32>
    %339 = vector.shape_cast %338 : vector<16x1xi1> to vector<16x1xi1>
    %340 = vector.broadcast %339 : vector<16x1xi1> to vector<16x128xi1>
    %341 = arith.select %340, %336, %266 : vector<16x128xi1>, vector<16x128xf32>
    %342 = vector.shape_cast %338 : vector<16x1xi1> to vector<16x1xi1>
    %343 = vector.broadcast %342 : vector<16x1xi1> to vector<16x128xi1>
    %344 = arith.select %343, %334, %269 : vector<16x128xi1>, vector<16x128xf32>
    %345 = arith.truncf %341 : vector<16x128xf32> to vector<16x128xbf16>
    %346 = arith.index_cast %c4_i32 : i32 to index
    %c0_71 = arith.constant 0 : index
    %c0_72 = arith.constant 0 : index
    %347 = vector.load %arg6[%346, %c0_71, %c0_72] : memref<8x16x128xbf16, #tpu.memory_space<vmem>>, vector<1x16x128xbf16>
    %348 = vector.shape_cast %347 : vector<1x16x128xbf16> to vector<16x128xbf16>
    %349 = vector.shape_cast %345 : vector<16x128xbf16> to vector<1x16x128xbf16>
    tpu.vector_store %arg6[%346, %c0_71, %c0_72], %349 {strides = array<i32>} : memref<8x16x128xbf16, #tpu.memory_space<vmem>>, vector<1x16x128xbf16>,
    %c7_i32_73 = arith.constant 7 : i32
    %350 = arith.subi %c7_i32_73, %c4_i32 : i32
    %351 = arith.addi %5, %350 : i32
    %352 = arith.index_cast %350 : i32 to index
    %c0_74 = arith.constant 0 : index
    %c0_75 = arith.constant 0 : index
    %353 = vector.load %arg2[%352, %c0_74, %c0_75] : memref<8x16x512xbf16, #tpu.memory_space<vmem>>, vector<1x16x512xbf16>
    %354 = vector.shape_cast %353 : vector<1x16x512xbf16> to vector<16x512xbf16>
    %355 = arith.extf %354 : vector<16x512xbf16> to vector<16x512xf32>
    %356 = arith.truncf %304 : vector<16x128xf32> to vector<16x128xbf16>
    %cst_76 = arith.constant dense<0.000000e+00> : vector<16x512xf32>
    %357 = tpu.matmul %356, %8, %cst_76 {dimension_numbers = #tpu.dot_dimension_numbers<[1], [0], [0], [1], [0, 0, 1, 1], [], []>} : vector<16x128xbf16>, vector<128x512xbf16>, vector<16x512xf32> -> vector<16x512xf32>
    %358 = arith.addf %355, %357 : vector<16x512xf32>
    %359 = vector.extract_strided_slice %358 {offsets = [0, 0], sizes = [16, 384], strides = [1, 1]} : vector<16x512xf32> to vector<16x384xf32>
    %360 = arith.negf %359 : vector<16x384xf32>
    %361 = math.exp %360 : vector<16x384xf32>
    %cst_77 = arith.constant 1.000000e+00 : f32
    %362 = vector.broadcast %cst_77 : f32 to vector<16x384xf32>
    %363 = arith.addf %362, %361 : vector<16x384xf32>
    %364 = arith.divf %362, %363 : vector<16x384xf32>
    %365 = vector.extract_strided_slice %364 {offsets = [0, 0], sizes = [16, 128], strides = [1, 1]} : vector<16x384xf32> to vector<16x128xf32>
    %366 = vector.extract_strided_slice %364 {offsets = [0, 128], sizes = [16, 128], strides = [1, 1]} : vector<16x384xf32> to vector<16x128xf32>
    %367 = vector.extract_strided_slice %364 {offsets = [0, 256], sizes = [16, 128], strides = [1, 1]} : vector<16x384xf32> to vector<16x128xf32>
    %368 = vector.extract_strided_slice %358 {offsets = [0, 384], sizes = [16, 128], strides = [1, 1]} : vector<16x512xf32> to vector<16x128xf32>
    %369 = math.tanh %368 : vector<16x128xf32>
    %370 = arith.mulf %366, %307 : vector<16x128xf32>
    %371 = arith.mulf %365, %369 : vector<16x128xf32>
    %372 = arith.addf %370, %371 : vector<16x128xf32>
    %373 = math.tanh %372 : vector<16x128xf32>
    %374 = arith.mulf %367, %373 : vector<16x128xf32>
    %375 = vector.broadcast %351 : i32 to vector<16x1xi32>
    %376 = arith.cmpi slt, %375, %6 : vector<16x1xi32>
    %377 = vector.shape_cast %376 : vector<16x1xi1> to vector<16x1xi1>
    %378 = vector.broadcast %377 : vector<16x1xi1> to vector<16x128xi1>
    %379 = arith.select %378, %374, %304 : vector<16x128xi1>, vector<16x128xf32>
    %380 = vector.shape_cast %376 : vector<16x1xi1> to vector<16x1xi1>
    %381 = vector.broadcast %380 : vector<16x1xi1> to vector<16x128xi1>
    %382 = arith.select %381, %372, %307 : vector<16x128xi1>, vector<16x128xf32>
    %383 = arith.truncf %379 : vector<16x128xf32> to vector<16x128xbf16>
    %384 = arith.index_cast %350 : i32 to index
    %c0_78 = arith.constant 0 : index
    %c0_79 = arith.constant 0 : index
    %385 = vector.load %arg7[%384, %c0_78, %c0_79] : memref<8x16x128xbf16, #tpu.memory_space<vmem>>, vector<1x16x128xbf16>
    %386 = vector.shape_cast %385 : vector<1x16x128xbf16> to vector<16x128xbf16>
    %387 = vector.shape_cast %383 : vector<16x128xbf16> to vector<1x16x128xbf16>
    tpu.vector_store %arg7[%384, %c0_78, %c0_79], %387 {strides = array<i32>} : memref<8x16x128xbf16, #tpu.memory_space<vmem>>, vector<1x16x128xbf16>,
    %c5_i32 = arith.constant 5 : i32
    %388 = arith.addi %3, %c5_i32 : i32
    %389 = arith.index_cast %c5_i32 : i32 to index
    %c0_80 = arith.constant 0 : index
    %c0_81 = arith.constant 0 : index
    %390 = vector.load %arg1[%389, %c0_80, %c0_81] : memref<8x16x512xbf16, #tpu.memory_space<vmem>>, vector<1x16x512xbf16>
    %391 = vector.shape_cast %390 : vector<1x16x512xbf16> to vector<16x512xbf16>
    %392 = arith.extf %391 : vector<16x512xbf16> to vector<16x512xf32>
    %393 = arith.truncf %341 : vector<16x128xf32> to vector<16x128xbf16>
    %cst_82 = arith.constant dense<0.000000e+00> : vector<16x512xf32>
    %394 = tpu.matmul %393, %7, %cst_82 {dimension_numbers = #tpu.dot_dimension_numbers<[1], [0], [0], [1], [0, 0, 1, 1], [], []>} : vector<16x128xbf16>, vector<128x512xbf16>, vector<16x512xf32> -> vector<16x512xf32>
    %395 = arith.addf %392, %394 : vector<16x512xf32>
    %396 = vector.extract_strided_slice %395 {offsets = [0, 0], sizes = [16, 384], strides = [1, 1]} : vector<16x512xf32> to vector<16x384xf32>
    %397 = arith.negf %396 : vector<16x384xf32>
    %398 = math.exp %397 : vector<16x384xf32>
    %cst_83 = arith.constant 1.000000e+00 : f32
    %399 = vector.broadcast %cst_83 : f32 to vector<16x384xf32>
    %400 = arith.addf %399, %398 : vector<16x384xf32>
    %401 = arith.divf %399, %400 : vector<16x384xf32>
    %402 = vector.extract_strided_slice %401 {offsets = [0, 0], sizes = [16, 128], strides = [1, 1]} : vector<16x384xf32> to vector<16x128xf32>
    %403 = vector.extract_strided_slice %401 {offsets = [0, 128], sizes = [16, 128], strides = [1, 1]} : vector<16x384xf32> to vector<16x128xf32>
    %404 = vector.extract_strided_slice %401 {offsets = [0, 256], sizes = [16, 128], strides = [1, 1]} : vector<16x384xf32> to vector<16x128xf32>
    %405 = vector.extract_strided_slice %395 {offsets = [0, 384], sizes = [16, 128], strides = [1, 1]} : vector<16x512xf32> to vector<16x128xf32>
    %406 = math.tanh %405 : vector<16x128xf32>
    %407 = arith.mulf %403, %344 : vector<16x128xf32>
    %408 = arith.mulf %402, %406 : vector<16x128xf32>
    %409 = arith.addf %407, %408 : vector<16x128xf32>
    %410 = math.tanh %409 : vector<16x128xf32>
    %411 = arith.mulf %404, %410 : vector<16x128xf32>
    %412 = vector.broadcast %388 : i32 to vector<16x1xi32>
    %413 = arith.cmpi slt, %412, %6 : vector<16x1xi32>
    %414 = vector.shape_cast %413 : vector<16x1xi1> to vector<16x1xi1>
    %415 = vector.broadcast %414 : vector<16x1xi1> to vector<16x128xi1>
    %416 = arith.select %415, %411, %341 : vector<16x128xi1>, vector<16x128xf32>
    %417 = vector.shape_cast %413 : vector<16x1xi1> to vector<16x1xi1>
    %418 = vector.broadcast %417 : vector<16x1xi1> to vector<16x128xi1>
    %419 = arith.select %418, %409, %344 : vector<16x128xi1>, vector<16x128xf32>
    %420 = arith.truncf %416 : vector<16x128xf32> to vector<16x128xbf16>
    %421 = arith.index_cast %c5_i32 : i32 to index
    %c0_84 = arith.constant 0 : index
    %c0_85 = arith.constant 0 : index
    %422 = vector.load %arg6[%421, %c0_84, %c0_85] : memref<8x16x128xbf16, #tpu.memory_space<vmem>>, vector<1x16x128xbf16>
    %423 = vector.shape_cast %422 : vector<1x16x128xbf16> to vector<16x128xbf16>
    %424 = vector.shape_cast %420 : vector<16x128xbf16> to vector<1x16x128xbf16>
    tpu.vector_store %arg6[%421, %c0_84, %c0_85], %424 {strides = array<i32>} : memref<8x16x128xbf16, #tpu.memory_space<vmem>>, vector<1x16x128xbf16>,
    %c7_i32_86 = arith.constant 7 : i32
    %425 = arith.subi %c7_i32_86, %c5_i32 : i32
    %426 = arith.addi %5, %425 : i32
    %427 = arith.index_cast %425 : i32 to index
    %c0_87 = arith.constant 0 : index
    %c0_88 = arith.constant 0 : index
    %428 = vector.load %arg2[%427, %c0_87, %c0_88] : memref<8x16x512xbf16, #tpu.memory_space<vmem>>, vector<1x16x512xbf16>
    %429 = vector.shape_cast %428 : vector<1x16x512xbf16> to vector<16x512xbf16>
    %430 = arith.extf %429 : vector<16x512xbf16> to vector<16x512xf32>
    %431 = arith.truncf %379 : vector<16x128xf32> to vector<16x128xbf16>
    %cst_89 = arith.constant dense<0.000000e+00> : vector<16x512xf32>
    %432 = tpu.matmul %431, %8, %cst_89 {dimension_numbers = #tpu.dot_dimension_numbers<[1], [0], [0], [1], [0, 0, 1, 1], [], []>} : vector<16x128xbf16>, vector<128x512xbf16>, vector<16x512xf32> -> vector<16x512xf32>
    %433 = arith.addf %430, %432 : vector<16x512xf32>
    %434 = vector.extract_strided_slice %433 {offsets = [0, 0], sizes = [16, 384], strides = [1, 1]} : vector<16x512xf32> to vector<16x384xf32>
    %435 = arith.negf %434 : vector<16x384xf32>
    %436 = math.exp %435 : vector<16x384xf32>
    %cst_90 = arith.constant 1.000000e+00 : f32
    %437 = vector.broadcast %cst_90 : f32 to vector<16x384xf32>
    %438 = arith.addf %437, %436 : vector<16x384xf32>
    %439 = arith.divf %437, %438 : vector<16x384xf32>
    %440 = vector.extract_strided_slice %439 {offsets = [0, 0], sizes = [16, 128], strides = [1, 1]} : vector<16x384xf32> to vector<16x128xf32>
    %441 = vector.extract_strided_slice %439 {offsets = [0, 128], sizes = [16, 128], strides = [1, 1]} : vector<16x384xf32> to vector<16x128xf32>
    %442 = vector.extract_strided_slice %439 {offsets = [0, 256], sizes = [16, 128], strides = [1, 1]} : vector<16x384xf32> to vector<16x128xf32>
    %443 = vector.extract_strided_slice %433 {offsets = [0, 384], sizes = [16, 128], strides = [1, 1]} : vector<16x512xf32> to vector<16x128xf32>
    %444 = math.tanh %443 : vector<16x128xf32>
    %445 = arith.mulf %441, %382 : vector<16x128xf32>
    %446 = arith.mulf %440, %444 : vector<16x128xf32>
    %447 = arith.addf %445, %446 : vector<16x128xf32>
    %448 = math.tanh %447 : vector<16x128xf32>
    %449 = arith.mulf %442, %448 : vector<16x128xf32>
    %450 = vector.broadcast %426 : i32 to vector<16x1xi32>
    %451 = arith.cmpi slt, %450, %6 : vector<16x1xi32>
    %452 = vector.shape_cast %451 : vector<16x1xi1> to vector<16x1xi1>
    %453 = vector.broadcast %452 : vector<16x1xi1> to vector<16x128xi1>
    %454 = arith.select %453, %449, %379 : vector<16x128xi1>, vector<16x128xf32>
    %455 = vector.shape_cast %451 : vector<16x1xi1> to vector<16x1xi1>
    %456 = vector.broadcast %455 : vector<16x1xi1> to vector<16x128xi1>
    %457 = arith.select %456, %447, %382 : vector<16x128xi1>, vector<16x128xf32>
    %458 = arith.truncf %454 : vector<16x128xf32> to vector<16x128xbf16>
    %459 = arith.index_cast %425 : i32 to index
    %c0_91 = arith.constant 0 : index
    %c0_92 = arith.constant 0 : index
    %460 = vector.load %arg7[%459, %c0_91, %c0_92] : memref<8x16x128xbf16, #tpu.memory_space<vmem>>, vector<1x16x128xbf16>
    %461 = vector.shape_cast %460 : vector<1x16x128xbf16> to vector<16x128xbf16>
    %462 = vector.shape_cast %458 : vector<16x128xbf16> to vector<1x16x128xbf16>
    tpu.vector_store %arg7[%459, %c0_91, %c0_92], %462 {strides = array<i32>} : memref<8x16x128xbf16, #tpu.memory_space<vmem>>, vector<1x16x128xbf16>,
    %c6_i32 = arith.constant 6 : i32
    %463 = arith.addi %3, %c6_i32 : i32
    %464 = arith.index_cast %c6_i32 : i32 to index
    %c0_93 = arith.constant 0 : index
    %c0_94 = arith.constant 0 : index
    %465 = vector.load %arg1[%464, %c0_93, %c0_94] : memref<8x16x512xbf16, #tpu.memory_space<vmem>>, vector<1x16x512xbf16>
    %466 = vector.shape_cast %465 : vector<1x16x512xbf16> to vector<16x512xbf16>
    %467 = arith.extf %466 : vector<16x512xbf16> to vector<16x512xf32>
    %468 = arith.truncf %416 : vector<16x128xf32> to vector<16x128xbf16>
    %cst_95 = arith.constant dense<0.000000e+00> : vector<16x512xf32>
    %469 = tpu.matmul %468, %7, %cst_95 {dimension_numbers = #tpu.dot_dimension_numbers<[1], [0], [0], [1], [0, 0, 1, 1], [], []>} : vector<16x128xbf16>, vector<128x512xbf16>, vector<16x512xf32> -> vector<16x512xf32>
    %470 = arith.addf %467, %469 : vector<16x512xf32>
    %471 = vector.extract_strided_slice %470 {offsets = [0, 0], sizes = [16, 384], strides = [1, 1]} : vector<16x512xf32> to vector<16x384xf32>
    %472 = arith.negf %471 : vector<16x384xf32>
    %473 = math.exp %472 : vector<16x384xf32>
    %cst_96 = arith.constant 1.000000e+00 : f32
    %474 = vector.broadcast %cst_96 : f32 to vector<16x384xf32>
    %475 = arith.addf %474, %473 : vector<16x384xf32>
    %476 = arith.divf %474, %475 : vector<16x384xf32>
    %477 = vector.extract_strided_slice %476 {offsets = [0, 0], sizes = [16, 128], strides = [1, 1]} : vector<16x384xf32> to vector<16x128xf32>
    %478 = vector.extract_strided_slice %476 {offsets = [0, 128], sizes = [16, 128], strides = [1, 1]} : vector<16x384xf32> to vector<16x128xf32>
    %479 = vector.extract_strided_slice %476 {offsets = [0, 256], sizes = [16, 128], strides = [1, 1]} : vector<16x384xf32> to vector<16x128xf32>
    %480 = vector.extract_strided_slice %470 {offsets = [0, 384], sizes = [16, 128], strides = [1, 1]} : vector<16x512xf32> to vector<16x128xf32>
    %481 = math.tanh %480 : vector<16x128xf32>
    %482 = arith.mulf %478, %419 : vector<16x128xf32>
    %483 = arith.mulf %477, %481 : vector<16x128xf32>
    %484 = arith.addf %482, %483 : vector<16x128xf32>
    %485 = math.tanh %484 : vector<16x128xf32>
    %486 = arith.mulf %479, %485 : vector<16x128xf32>
    %487 = vector.broadcast %463 : i32 to vector<16x1xi32>
    %488 = arith.cmpi slt, %487, %6 : vector<16x1xi32>
    %489 = vector.shape_cast %488 : vector<16x1xi1> to vector<16x1xi1>
    %490 = vector.broadcast %489 : vector<16x1xi1> to vector<16x128xi1>
    %491 = arith.select %490, %486, %416 : vector<16x128xi1>, vector<16x128xf32>
    %492 = vector.shape_cast %488 : vector<16x1xi1> to vector<16x1xi1>
    %493 = vector.broadcast %492 : vector<16x1xi1> to vector<16x128xi1>
    %494 = arith.select %493, %484, %419 : vector<16x128xi1>, vector<16x128xf32>
    %495 = arith.truncf %491 : vector<16x128xf32> to vector<16x128xbf16>
    %496 = arith.index_cast %c6_i32 : i32 to index
    %c0_97 = arith.constant 0 : index
    %c0_98 = arith.constant 0 : index
    %497 = vector.load %arg6[%496, %c0_97, %c0_98] : memref<8x16x128xbf16, #tpu.memory_space<vmem>>, vector<1x16x128xbf16>
    %498 = vector.shape_cast %497 : vector<1x16x128xbf16> to vector<16x128xbf16>
    %499 = vector.shape_cast %495 : vector<16x128xbf16> to vector<1x16x128xbf16>
    tpu.vector_store %arg6[%496, %c0_97, %c0_98], %499 {strides = array<i32>} : memref<8x16x128xbf16, #tpu.memory_space<vmem>>, vector<1x16x128xbf16>,
    %c7_i32_99 = arith.constant 7 : i32
    %500 = arith.subi %c7_i32_99, %c6_i32 : i32
    %501 = arith.addi %5, %500 : i32
    %502 = arith.index_cast %500 : i32 to index
    %c0_100 = arith.constant 0 : index
    %c0_101 = arith.constant 0 : index
    %503 = vector.load %arg2[%502, %c0_100, %c0_101] : memref<8x16x512xbf16, #tpu.memory_space<vmem>>, vector<1x16x512xbf16>
    %504 = vector.shape_cast %503 : vector<1x16x512xbf16> to vector<16x512xbf16>
    %505 = arith.extf %504 : vector<16x512xbf16> to vector<16x512xf32>
    %506 = arith.truncf %454 : vector<16x128xf32> to vector<16x128xbf16>
    %cst_102 = arith.constant dense<0.000000e+00> : vector<16x512xf32>
    %507 = tpu.matmul %506, %8, %cst_102 {dimension_numbers = #tpu.dot_dimension_numbers<[1], [0], [0], [1], [0, 0, 1, 1], [], []>} : vector<16x128xbf16>, vector<128x512xbf16>, vector<16x512xf32> -> vector<16x512xf32>
    %508 = arith.addf %505, %507 : vector<16x512xf32>
    %509 = vector.extract_strided_slice %508 {offsets = [0, 0], sizes = [16, 384], strides = [1, 1]} : vector<16x512xf32> to vector<16x384xf32>
    %510 = arith.negf %509 : vector<16x384xf32>
    %511 = math.exp %510 : vector<16x384xf32>
    %cst_103 = arith.constant 1.000000e+00 : f32
    %512 = vector.broadcast %cst_103 : f32 to vector<16x384xf32>
    %513 = arith.addf %512, %511 : vector<16x384xf32>
    %514 = arith.divf %512, %513 : vector<16x384xf32>
    %515 = vector.extract_strided_slice %514 {offsets = [0, 0], sizes = [16, 128], strides = [1, 1]} : vector<16x384xf32> to vector<16x128xf32>
    %516 = vector.extract_strided_slice %514 {offsets = [0, 128], sizes = [16, 128], strides = [1, 1]} : vector<16x384xf32> to vector<16x128xf32>
    %517 = vector.extract_strided_slice %514 {offsets = [0, 256], sizes = [16, 128], strides = [1, 1]} : vector<16x384xf32> to vector<16x128xf32>
    %518 = vector.extract_strided_slice %508 {offsets = [0, 384], sizes = [16, 128], strides = [1, 1]} : vector<16x512xf32> to vector<16x128xf32>
    %519 = math.tanh %518 : vector<16x128xf32>
    %520 = arith.mulf %516, %457 : vector<16x128xf32>
    %521 = arith.mulf %515, %519 : vector<16x128xf32>
    %522 = arith.addf %520, %521 : vector<16x128xf32>
    %523 = math.tanh %522 : vector<16x128xf32>
    %524 = arith.mulf %517, %523 : vector<16x128xf32>
    %525 = vector.broadcast %501 : i32 to vector<16x1xi32>
    %526 = arith.cmpi slt, %525, %6 : vector<16x1xi32>
    %527 = vector.shape_cast %526 : vector<16x1xi1> to vector<16x1xi1>
    %528 = vector.broadcast %527 : vector<16x1xi1> to vector<16x128xi1>
    %529 = arith.select %528, %524, %454 : vector<16x128xi1>, vector<16x128xf32>
    %530 = vector.shape_cast %526 : vector<16x1xi1> to vector<16x1xi1>
    %531 = vector.broadcast %530 : vector<16x1xi1> to vector<16x128xi1>
    %532 = arith.select %531, %522, %457 : vector<16x128xi1>, vector<16x128xf32>
    %533 = arith.truncf %529 : vector<16x128xf32> to vector<16x128xbf16>
    %534 = arith.index_cast %500 : i32 to index
    %c0_104 = arith.constant 0 : index
    %c0_105 = arith.constant 0 : index
    %535 = vector.load %arg7[%534, %c0_104, %c0_105] : memref<8x16x128xbf16, #tpu.memory_space<vmem>>, vector<1x16x128xbf16>
    %536 = vector.shape_cast %535 : vector<1x16x128xbf16> to vector<16x128xbf16>
    %537 = vector.shape_cast %533 : vector<16x128xbf16> to vector<1x16x128xbf16>
    tpu.vector_store %arg7[%534, %c0_104, %c0_105], %537 {strides = array<i32>} : memref<8x16x128xbf16, #tpu.memory_space<vmem>>, vector<1x16x128xbf16>,
    %c7_i32_106 = arith.constant 7 : i32
    %538 = arith.addi %3, %c7_i32_106 : i32
    %539 = arith.index_cast %c7_i32_106 : i32 to index
    %c0_107 = arith.constant 0 : index
    %c0_108 = arith.constant 0 : index
    %540 = vector.load %arg1[%539, %c0_107, %c0_108] : memref<8x16x512xbf16, #tpu.memory_space<vmem>>, vector<1x16x512xbf16>
    %541 = vector.shape_cast %540 : vector<1x16x512xbf16> to vector<16x512xbf16>
    %542 = arith.extf %541 : vector<16x512xbf16> to vector<16x512xf32>
    %543 = arith.truncf %491 : vector<16x128xf32> to vector<16x128xbf16>
    %cst_109 = arith.constant dense<0.000000e+00> : vector<16x512xf32>
    %544 = tpu.matmul %543, %7, %cst_109 {dimension_numbers = #tpu.dot_dimension_numbers<[1], [0], [0], [1], [0, 0, 1, 1], [], []>} : vector<16x128xbf16>, vector<128x512xbf16>, vector<16x512xf32> -> vector<16x512xf32>
    %545 = arith.addf %542, %544 : vector<16x512xf32>
    %546 = vector.extract_strided_slice %545 {offsets = [0, 0], sizes = [16, 384], strides = [1, 1]} : vector<16x512xf32> to vector<16x384xf32>
    %547 = arith.negf %546 : vector<16x384xf32>
    %548 = math.exp %547 : vector<16x384xf32>
    %cst_110 = arith.constant 1.000000e+00 : f32
    %549 = vector.broadcast %cst_110 : f32 to vector<16x384xf32>
    %550 = arith.addf %549, %548 : vector<16x384xf32>
    %551 = arith.divf %549, %550 : vector<16x384xf32>
    %552 = vector.extract_strided_slice %551 {offsets = [0, 0], sizes = [16, 128], strides = [1, 1]} : vector<16x384xf32> to vector<16x128xf32>
    %553 = vector.extract_strided_slice %551 {offsets = [0, 128], sizes = [16, 128], strides = [1, 1]} : vector<16x384xf32> to vector<16x128xf32>
    %554 = vector.extract_strided_slice %551 {offsets = [0, 256], sizes = [16, 128], strides = [1, 1]} : vector<16x384xf32> to vector<16x128xf32>
    %555 = vector.extract_strided_slice %545 {offsets = [0, 384], sizes = [16, 128], strides = [1, 1]} : vector<16x512xf32> to vector<16x128xf32>
    %556 = math.tanh %555 : vector<16x128xf32>
    %557 = arith.mulf %553, %494 : vector<16x128xf32>
    %558 = arith.mulf %552, %556 : vector<16x128xf32>
    %559 = arith.addf %557, %558 : vector<16x128xf32>
    %560 = math.tanh %559 : vector<16x128xf32>
    %561 = arith.mulf %554, %560 : vector<16x128xf32>
    %562 = vector.broadcast %538 : i32 to vector<16x1xi32>
    %563 = arith.cmpi slt, %562, %6 : vector<16x1xi32>
    %564 = vector.shape_cast %563 : vector<16x1xi1> to vector<16x1xi1>
    %565 = vector.broadcast %564 : vector<16x1xi1> to vector<16x128xi1>
    %566 = arith.select %565, %561, %491 : vector<16x128xi1>, vector<16x128xf32>
    %567 = vector.shape_cast %563 : vector<16x1xi1> to vector<16x1xi1>
    %568 = vector.broadcast %567 : vector<16x1xi1> to vector<16x128xi1>
    %569 = arith.select %568, %559, %494 : vector<16x128xi1>, vector<16x128xf32>
    %570 = arith.truncf %566 : vector<16x128xf32> to vector<16x128xbf16>
    %571 = arith.index_cast %c7_i32_106 : i32 to index
    %c0_111 = arith.constant 0 : index
    %c0_112 = arith.constant 0 : index
    %572 = vector.load %arg6[%571, %c0_111, %c0_112] : memref<8x16x128xbf16, #tpu.memory_space<vmem>>, vector<1x16x128xbf16>
    %573 = vector.shape_cast %572 : vector<1x16x128xbf16> to vector<16x128xbf16>
    %574 = vector.shape_cast %570 : vector<16x128xbf16> to vector<1x16x128xbf16>
    tpu.vector_store %arg6[%571, %c0_111, %c0_112], %574 {strides = array<i32>} : memref<8x16x128xbf16, #tpu.memory_space<vmem>>, vector<1x16x128xbf16>,
    %c7_i32_113 = arith.constant 7 : i32
    %575 = arith.subi %c7_i32_113, %c7_i32_106 : i32
    %576 = arith.addi %5, %575 : i32
    %577 = arith.index_cast %575 : i32 to index
    %c0_114 = arith.constant 0 : index
    %c0_115 = arith.constant 0 : index
    %578 = vector.load %arg2[%577, %c0_114, %c0_115] : memref<8x16x512xbf16, #tpu.memory_space<vmem>>, vector<1x16x512xbf16>
    %579 = vector.shape_cast %578 : vector<1x16x512xbf16> to vector<16x512xbf16>
    %580 = arith.extf %579 : vector<16x512xbf16> to vector<16x512xf32>
    %581 = arith.truncf %529 : vector<16x128xf32> to vector<16x128xbf16>
    %cst_116 = arith.constant dense<0.000000e+00> : vector<16x512xf32>
    %582 = tpu.matmul %581, %8, %cst_116 {dimension_numbers = #tpu.dot_dimension_numbers<[1], [0], [0], [1], [0, 0, 1, 1], [], []>} : vector<16x128xbf16>, vector<128x512xbf16>, vector<16x512xf32> -> vector<16x512xf32>
    %583 = arith.addf %580, %582 : vector<16x512xf32>
    %584 = vector.extract_strided_slice %583 {offsets = [0, 0], sizes = [16, 384], strides = [1, 1]} : vector<16x512xf32> to vector<16x384xf32>
    %585 = arith.negf %584 : vector<16x384xf32>
    %586 = math.exp %585 : vector<16x384xf32>
    %cst_117 = arith.constant 1.000000e+00 : f32
    %587 = vector.broadcast %cst_117 : f32 to vector<16x384xf32>
    %588 = arith.addf %587, %586 : vector<16x384xf32>
    %589 = arith.divf %587, %588 : vector<16x384xf32>
    %590 = vector.extract_strided_slice %589 {offsets = [0, 0], sizes = [16, 128], strides = [1, 1]} : vector<16x384xf32> to vector<16x128xf32>
    %591 = vector.extract_strided_slice %589 {offsets = [0, 128], sizes = [16, 128], strides = [1, 1]} : vector<16x384xf32> to vector<16x128xf32>
    %592 = vector.extract_strided_slice %589 {offsets = [0, 256], sizes = [16, 128], strides = [1, 1]} : vector<16x384xf32> to vector<16x128xf32>
    %593 = vector.extract_strided_slice %583 {offsets = [0, 384], sizes = [16, 128], strides = [1, 1]} : vector<16x512xf32> to vector<16x128xf32>
    %594 = math.tanh %593 : vector<16x128xf32>
    %595 = arith.mulf %591, %532 : vector<16x128xf32>
    %596 = arith.mulf %590, %594 : vector<16x128xf32>
    %597 = arith.addf %595, %596 : vector<16x128xf32>
    %598 = math.tanh %597 : vector<16x128xf32>
    %599 = arith.mulf %592, %598 : vector<16x128xf32>
    %600 = vector.broadcast %576 : i32 to vector<16x1xi32>
    %601 = arith.cmpi slt, %600, %6 : vector<16x1xi32>
    %602 = vector.shape_cast %601 : vector<16x1xi1> to vector<16x1xi1>
    %603 = vector.broadcast %602 : vector<16x1xi1> to vector<16x128xi1>
    %604 = arith.select %603, %599, %529 : vector<16x128xi1>, vector<16x128xf32>
    %605 = vector.shape_cast %601 : vector<16x1xi1> to vector<16x1xi1>
    %606 = vector.broadcast %605 : vector<16x1xi1> to vector<16x128xi1>
    %607 = arith.select %606, %597, %532 : vector<16x128xi1>, vector<16x128xf32>
    %608 = arith.truncf %604 : vector<16x128xf32> to vector<16x128xbf16>
    %609 = arith.index_cast %575 : i32 to index
    %c0_118 = arith.constant 0 : index
    %c0_119 = arith.constant 0 : index
    %610 = vector.load %arg7[%609, %c0_118, %c0_119] : memref<8x16x128xbf16, #tpu.memory_space<vmem>>, vector<1x16x128xbf16>
    %611 = vector.shape_cast %610 : vector<1x16x128xbf16> to vector<16x128xbf16>
    %612 = vector.shape_cast %608 : vector<16x128xbf16> to vector<1x16x128xbf16>
    tpu.vector_store %arg7[%609, %c0_118, %c0_119], %612 {strides = array<i32>} : memref<8x16x128xbf16, #tpu.memory_space<vmem>>, vector<1x16x128xbf16>,
    %c8_i32_120 = arith.constant 8 : i32
    %c0_121 = arith.constant 0 : index
    %c0_122 = arith.constant 0 : index
    %613 = vector.load %arg10[%c0_121, %c0_122] : memref<16x128xf32, #tpu.memory_space<vmem>>, vector<16x128xf32>
    tpu.vector_store %arg10[%c0_121, %c0_122], %566 {strides = array<i32>} : memref<16x128xf32, #tpu.memory_space<vmem>>, vector<16x128xf32>,
    %c0_123 = arith.constant 0 : index
    %c0_124 = arith.constant 0 : index
    %614 = vector.load %arg11[%c0_123, %c0_124] : memref<16x128xf32, #tpu.memory_space<vmem>>, vector<16x128xf32>
    tpu.vector_store %arg11[%c0_123, %c0_124], %569 {strides = array<i32>} : memref<16x128xf32, #tpu.memory_space<vmem>>, vector<16x128xf32>,
    %c0_125 = arith.constant 0 : index
    %c0_126 = arith.constant 0 : index
    %615 = vector.load %arg12[%c0_125, %c0_126] : memref<16x128xf32, #tpu.memory_space<vmem>>, vector<16x128xf32>
    tpu.vector_store %arg12[%c0_125, %c0_126], %604 {strides = array<i32>} : memref<16x128xf32, #tpu.memory_space<vmem>>, vector<16x128xf32>,
    %c0_127 = arith.constant 0 : index
    %c0_128 = arith.constant 0 : index
    %616 = vector.load %arg13[%c0_127, %c0_128] : memref<16x128xf32, #tpu.memory_space<vmem>>, vector<16x128xf32>
    tpu.vector_store %arg13[%c0_127, %c0_128], %607 {strides = array<i32>} : memref<16x128xf32, #tpu.memory_space<vmem>>, vector<16x128xf32>,
    %c2_i32_129 = arith.constant 2 : i32
    %617 = arith.cmpi eq, %arg0, %c2_i32_129 : i32
    %618 = arith.extui %617 : i1 to i32
    %c0_i32_130 = arith.constant 0 : i32
    %619 = arith.cmpi ne, %618, %c0_i32_130 : i32
    scf.if %619 {
      %c0_131 = arith.constant 0 : index
      %c0_132 = arith.constant 0 : index
      %620 = vector.load %arg8[%c0_131, %c0_132] : memref<16x128xf32, #tpu.memory_space<vmem>>, vector<16x128xf32>
      tpu.vector_store %arg8[%c0_131, %c0_132], %566 {strides = array<i32>} : memref<16x128xf32, #tpu.memory_space<vmem>>, vector<16x128xf32>,
      %c0_133 = arith.constant 0 : index
      %c0_134 = arith.constant 0 : index
      %621 = vector.load %arg9[%c0_133, %c0_134] : memref<16x128xf32, #tpu.memory_space<vmem>>, vector<16x128xf32>
      tpu.vector_store %arg9[%c0_133, %c0_134], %604 {strides = array<i32>} : memref<16x128xf32, #tpu.memory_space<vmem>>, vector<16x128xf32>,
    } else {
    }
    return
  }
  func.func @transform_0(%arg0: i32) -> (i32, i32, i32) {
    %c0_i32 = arith.constant 0 : i32
    %c0_i32_0 = arith.constant 0 : i32
    %c0_i32_1 = arith.constant 0 : i32
    return %arg0, %c0_i32, %c0_i32_0 : i32, i32, i32
  }
  func.func @transform_1(%arg0: i32) -> (i32, i32, i32) {
    %c2_i32 = arith.constant 2 : i32
    %0 = arith.subi %c2_i32, %arg0 : i32
    %c0_i32 = arith.constant 0 : i32
    %c0_i32_0 = arith.constant 0 : i32
    %c0_i32_1 = arith.constant 0 : i32
    return %0, %c0_i32, %c0_i32_0 : i32, i32, i32
  }
  func.func @transform_2(%arg0: i32) -> (i32, i32) {
    %c0_i32 = arith.constant 0 : i32
    %c0_i32_0 = arith.constant 0 : i32
    %c0_i32_1 = arith.constant 0 : i32
    return %c0_i32, %c0_i32_0 : i32, i32
  }
  func.func @transform_3(%arg0: i32) -> (i32, i32) {
    %c0_i32 = arith.constant 0 : i32
    %c0_i32_0 = arith.constant 0 : i32
    %c0_i32_1 = arith.constant 0 : i32
    return %c0_i32, %c0_i32_0 : i32, i32
  }
  func.func @transform_4(%arg0: i32) -> (i32, i32) {
    %c0_i32 = arith.constant 0 : i32
    %c0_i32_0 = arith.constant 0 : i32
    %c0_i32_1 = arith.constant 0 : i32
    return %c0_i32, %c0_i32_0 : i32, i32
  }
  func.func @transform_5(%arg0: i32) -> (i32, i32, i32) {
    %c0_i32 = arith.constant 0 : i32
    %c0_i32_0 = arith.constant 0 : i32
    %c0_i32_1 = arith.constant 0 : i32
    return %arg0, %c0_i32, %c0_i32_0 : i32, i32, i32
  }
  func.func @transform_6(%arg0: i32) -> (i32, i32, i32) {
    %c2_i32 = arith.constant 2 : i32
    %0 = arith.subi %c2_i32, %arg0 : i32
    %c0_i32 = arith.constant 0 : i32
    %c0_i32_0 = arith.constant 0 : i32
    %c0_i32_1 = arith.constant 0 : i32
    return %0, %c0_i32, %c0_i32_0 : i32, i32, i32
  }
  func.func @transform_7(%arg0: i32) -> (i32, i32) {
    %c0_i32 = arith.constant 0 : i32
    %c0_i32_0 = arith.constant 0 : i32
    %c0_i32_1 = arith.constant 0 : i32
    return %c0_i32, %c0_i32_0 : i32, i32
  }
  func.func @transform_8(%arg0: i32) -> (i32, i32) {
    %c0_i32 = arith.constant 0 : i32
    %c0_i32_0 = arith.constant 0 : i32
    %c0_i32_1 = arith.constant 0 : i32
    return %c0_i32, %c0_i32_0 : i32, i32
  }
}

</mosaic_0001>

<bundles_post_ra>
// kernel: tpu_custom_call.1
= control target key start
LH: loop header
LB: loop body
LE: loop exit
PB: predicated region body
PF: predicated region fallthrough
CT: control target
= control target key end

     0   :  { %s7592_s0 = inlined_call_operand.hbm [shape: bf16[24,16,512], index: 0, kind: input, shape index: {}]   ;;  %s7593_s1 = inlined_call_operand.hbm [shape: bf16[24,16,512], index: 1, kind: input, shape index: {}]   ;;  %s7594_s2 = inlined_call_operand.hbm [shape: bf16[128,512], index: 2, kind: input, shape index: {}]   ;;  %s7595_s3 = inlined_call_operand.hbm [shape: bf16[128,512], index: 3, kind: input, shape index: {}]   ;;  %s7596_s4 = inlined_call_operand.vmem [shape: s32[16,1], index: 4, kind: input, shape index: {}]   ;;  %s7597_s5 = inlined_call_operand.hbm [shape: bf16[24,16,128], index: 5, kind: output, shape index: {0}]   ;;  %s7598_s6 = inlined_call_operand.hbm [shape: bf16[24,16,128], index: 6, kind: output, shape index: {1}]   ;;  %s7599_s7 = inlined_call_operand.hbm [shape: f32[16,128], index: 7, kind: output, shape index: {2}]   ;;  %s7600_s8 = inlined_call_operand.hbm [shape: f32[16,128], index: 8, kind: output, shape index: {3}]  }
   0x1   :  { %7750 = sst [smem:[#allocation70_spill]] %s7592_s0 }
   0x2   :  { %7751 = sst [smem:[#allocation71_spill]] %s7594_s2 }
   0x3   :  { %7752 = sst [smem:[#allocation72_spill]] %s7595_s3 }
   0x4   :  { %7753 = sst [smem:[#allocation73_spill]] %s7600_s8 }
   0x5   :  { %14 = vsyncpa [#allocation7], 0 }
   0x6   :  { %16 = vsyncpa [#allocation7 + $0x1], 0 }
   0x7   :  { %17 = vsyncpa [#allocation10], 0 }
   0x8   :  { %19 = vsyncpa [#allocation10 + $0x1], 0 }
   0x9   :  { %20 = vsyncpa [#allocation13], 0 }
   0xa   :  { %21 = vsyncpa [#allocation8], 0 }
   0xb   :  { %23 = vsyncpa [#allocation8 + $0x1], 0 }
   0xc   :  { %24 = vsyncpa [#allocation16], 0 }
   0xd   :  { %26 = vsyncpa [#allocation16 + $0x1], 0 }
   0xe   :  { %27 = vsyncpa [#allocation19], 0  ;;  %s5692_s27 = smov 0   ;;  %s5694_s28 = smov 0  }
   0xf   :  { %s5696_s29 = smov 0   ;;  %s5698_s30 = smov 0  }
  0x10   :  { %s5700_s9 = smov 0   ;;  %s5702_s10 = smov 0  }
  0x11   :  { %s5704_s11 = smov 0  }
  0x12 LB: > { %7754 = sst [smem:[#allocation28_spill]] %s5617_s30  ;;  %s5726_s12 = sadd.s32 4294967295, %s5629_s11   ;;  %s5629_s11 = sphi %s5704_s11, %s8022_s11   ;;  %s5625_s10 = sphi %s5702_s10, %s8021_s10   ;;  %s5621_s9 = sphi %s5700_s9, %s8020_s9   ;;  %s5617_s30 = sphi %s5698_s30, %s8019_s30   ;;  %s5613_s29 = sphi %s5696_s29, %s8018_s29   ;;  %s5609_s28 = sphi %s5694_s28, %s8017_s28   ;;  %s5605_s27 = sphi %s5692_s27, %s8016_s27  }
  0x13   : > { %s7601_s13 = sadd.s32 4294967294, %s5629_s11   ;;  %p53_p0 = scmp.ne.s32.totalorder %s5621_s9, %s5617_s30 }
  0x14   : > { %p7604_p1 = scmp.eq.s32.totalorder %s5726_s12, 0  ;;  %p81_p2 = scmp.ne.s32.totalorder %s5609_s28, %s5605_s27 }
  0x15   : > { %p174_p5 = scmp.eq.s32.totalorder %s7601_s13, 2  ;;  %p4011_p7 = scmp.ge.s32.totalorder %s5629_s11, 1 }
  0x16   : > { %p5736_p4 = por %p7604_p1, %p53_p0  ;;  %p5744_p6 = por %p81_p2, %p7604_p1 }
  0x17   : > { %p5749_p8 = por %p174_p5, %p53_p0  ;;  %p5753_p9 = por %p174_p5, %p81_p2 }
  0x18   : > { %s7755_s14 = scalar_select %p5736_p4, 1, 0 }
  0x19   : > { %s7756_s15 = scalar_select %p5744_p6, 1, 0 }
  0x1a   : > { %s7757_s16 = scalar_select %p5749_p8, 1, 0 }
  0x1b   : > { %s7759_s17 = scalar_select %p5753_p9, 1, 0 }
  0x1c   : > { %7758 = sst [smem:[#allocation29_spill]] %s7757_s16  ;;  %p251_p10 = scmp.lt.s32.totalorder %s5629_s11, 4 }
  0x1d   : > { %7760 = sst [smem:[#allocation30_spill]] %s7759_s17  ;;  %s5631_s19 = smov [#allocation11]  }
  0x1e   : > { %p5759_p12 = pnand %p4011_p7, %p251_p10  ;;  %s263_s20 = sshll.u32 %s5631_s19, 4  ;;  %s5763_s20 = int_to_ptr.vmem [resolvable:$true] %s263_s20 }
  0x1f   : > { %s5632_s22 = smov [#allocation12]   ;;  %s7763_s2 = sld [smem:[#allocation71_spill]] }
  0x20   : > { %p4482_p13 = pneg %p5759_p12  ;;  %s276_s23 = sshll.u32 %s5632_s22, 4  ;;  %s5773_s23 = int_to_ptr.vmem [resolvable:$true] %s276_s23 }
  0x22   : > { %p5769_p0 = pnand %p4482_p13, %p7604_p1 }
  0x24   : > { %p5321_p5 = pneg %p5769_p0 }
  0x25   : > { %s5319_s27 = scalar_lea.hbm %s7763_s2, 4096 }
  0x26   : > { %p5320_p2 = scmp.ne.s32.totalorder %s7763_s2, %s5319_s27  ;;  %p5326_p13 = scmp.lt.u32.totalorder %s5319_s27, %s7763_s2 }
  0x28   : > { %p5322_p7 = pnand %p5321_p5, %p5320_p2 }
  0x2a   : > { %p5323_p10 = pneg %p5322_p7 }
  0x2c   : > { %p5328_p11 = pnand %p5326_p13, %p5323_p10 }
  0x2e   : > { %5331 = shalt.err (!%p5328_p11)
}
  0x2f   : > { %s5332_s22 = scalar_lea.vmem %s5763_s20, 4096  ;;  %p5340_p8 = scmp.lt.s32.totalorder %s5763_s20, %s5763_s20 }
  0x30   : > { %p5333_p1 = scmp.ne.s32.totalorder %s5763_s20, %s5332_s22  ;;  %p5341_p2 = scmp.lt.s32.totalorder %s5332_s22, %s5332_s22 }
  0x32   : > { %p5335_p3 = pnand %p5333_p1, %p5321_p5  ;;  %p5342_p7 = por %p5341_p2, %p5340_p8 }
  0x34   : > { %p5336_p9 = pneg %p5335_p3 }
  0x36   : > { %p5343_p6 = pnand %p5342_p7, %p5336_p9 }
  0x38   : > { %5346 = shalt.err (!%p5343_p6)
}
  0x39   : > { %s7608_s13 = smov 256   ;;  %s7614_s16 = smov 16  }
  0x3a   : > { %4485 = dma.hbm_to_vmem [thread:$0]  (!%p5769_p0), %s7763_s2, 4096, %s5763_s20, [#allocation10], %s7608_s13, %s7608_s13, %s7614_s16  }
  0x3b   : > { %s7764_s3 = sld [smem:[#allocation72_spill]] }
  0x41   : > { %s5347_s19 = scalar_lea.hbm %s7764_s3, 4096 }
  0x42   : > { %p5348_p1 = scmp.ne.s32.totalorder %s7764_s3, %s5347_s19  ;;  %p5354_p8 = scmp.lt.u32.totalorder %s5347_s19, %s7764_s3 }
  0x44   : > { %p5350_p3 = pnand %p5348_p1, %p5321_p5 }
  0x46   : > { %p5351_p6 = pneg %p5350_p3 }
  0x48   : > { %p5356_p9 = pnand %p5354_p8, %p5351_p6 }
  0x4a   : > { %5359 = shalt.err (!%p5356_p9)
}
  0x4b   : > { %s5360_s20 = scalar_lea.vmem %s5773_s23, 4096  ;;  %p5368_p2 = scmp.lt.s32.totalorder %s5773_s23, %s5773_s23 }
  0x4c   : > { %p5361_p11 = scmp.ne.s32.totalorder %s5773_s23, %s5360_s20  ;;  %p5369_p7 = scmp.lt.s32.totalorder %s5360_s20, %s5360_s20 }
  0x4e   : > { %p5363_p10 = pnand %p5361_p11, %p5321_p5  ;;  %p5370_p1 = por %p5369_p7, %p5368_p2 }
  0x50   : > { %p5364_p13 = pneg %p5363_p10 }
  0x52   : > { %p5371_p3 = pnand %p5370_p1, %p5364_p13 }
  0x54   : > { %5374 = shalt.err (!%p5371_p3)
}
  0x55   : > { %4488 = dma.hbm_to_vmem [thread:$0]  (!%p5769_p0), %s7764_s3, 4096, %s5773_s23, [#allocation13], %s7608_s13, %s7608_s13, %s7614_s16  }
  0x56   : > { %p47_p5 = scmp.ne.s32.totalorder %s5625_s10, %s5621_s9  ;;  %p7611_p6 = scmp.eq.s32.totalorder %s5629_s11, 0 }
  0x57   : > { %p7610_p8 = scmp.lt.s32.totalorder %s5629_s11, 3  ;;  %s293_s21 = sand.u32 1, %s5625_s10  }
  0x58   : > { %p49_p9 = por %p7611_p6, %p47_p5  ;;  %p7765_p11 = scmp.eq.s32.totalorder %s5726_s12, 2 }
  0x59   : > { %s4015_s17 = sshll.u32 %s293_s21, 8  ;;  %s4325_s25 = sshll.u32 %s5629_s11, 12 }
  0x5a   : > { %p5843_p10 = por %p7765_p11, %p47_p5  ;;  %s7767_s0 = sld [smem:[#allocation70_spill]] }
  0x5b   : > { %s297_s23 = scalar_lea.vmem [#allocation6], %s4015_s17  ;;  %p5857_p0 = pnand %p7610_p8, %p49_p9 }
  0x5c   : > { %s7766_s24 = scalar_select %p5843_p10, 1, 0 }
  0x5d   : > { %s305_s22 = sshll.u32 %s297_s23, 4  ;;  %s5862_s8 = sadd.s32 1, %s5629_s11   ;;  %s5853_s22 = int_to_ptr.vmem [resolvable:$true] %s305_s22 }
  0x5e   : > { %s5864_s30 = scalar_lea.sflag [#allocation7], %s293_s21  ;;  %p5377_p2 = pneg %p5857_p0 }
  0x60   : > { %s5851_s19 = scalar_lea.hbm %s7767_s0, %s4325_s25  ;;  %s5380_s27 = scalar_lea.hbm %s7767_s0, 12288 }
  0x61   : > { %s5375_s25 = scalar_lea.hbm %s5851_s19, 4096  ;;  %p5381_p3 = scmp.lt.u32.totalorder %s5851_s19, %s7767_s0 }
  0x62   : > { %p5376_p13 = scmp.ne.s32.totalorder %s5851_s19, %s5375_s25  ;;  %p5382_p5 = scmp.lt.u32.totalorder %s5380_s27, %s5375_s25 }
  0x63   : > { %p5384_p11 = scmp.lt.u32.totalorder %s5375_s25, %s5851_s19 }
  0x64   : > { %p5378_p7 = pnand %p5377_p2, %p5376_p13  ;;  %p5383_p9 = por %p5382_p5, %p5381_p3 }
  0x66   : > { %p5379_p1 = pneg %p5378_p7  ;;  %p5385_p8 = por %p5384_p11, %p5383_p9 }
  0x68   : > { %p5386_p6 = pnand %p5385_p8, %p5379_p1 }
  0x6a   : > { %5389 = shalt.err (!%p5386_p6)
}
  0x6b   : > { %s5390_s21 = scalar_lea.vmem %s5853_s22, 4096  ;;  %s5635_s17 = smov [#allocation6]  }
  0x6c   : > { %p5391_p13 = scmp.ne.s32.totalorder %s5853_s22, %s5390_s21  ;;  %s5395_s26 = sshll.u32 %s5635_s17, 4  ;;  %s5396_s26 = int_to_ptr.vmem [resolvable:$false] %s5395_s26 }
  0x6d   : > { %s5397_s13 = scalar_lea.vmem %s5396_s26, 8192  ;;  %p5398_p4 = scmp.lt.s32.totalorder %s5853_s22, %s5396_s26 }
  0x6e   : > { %p5393_p7 = pnand %p5391_p13, %p5377_p2  ;;  %p5399_p3 = scmp.lt.s32.totalorder %s5397_s13, %s5390_s21 }
  0x70   : > { %p5394_p10 = pneg %p5393_p7  ;;  %p5400_p5 = por %p5399_p3, %p5398_p4 }
  0x72   : > { %p5401_p9 = pnand %p5400_p5, %p5394_p10 }
  0x74   : > { %5404 = shalt.err (!%p5401_p9)
}
  0x75   : > { %s7769_s25 = smov 256   ;;  %s37_s20 = ssub.s32 %s5629_s11, %s5862_s8 }
  0x76   : > { %4492 = dma.hbm_to_vmem [thread:$0]  (!%p5857_p0), %s5851_s19, 4096, %s5853_s22, %s5864_s30, %s7769_s25, %s7769_s25, %s7614_s16  }
  0x77   : > { %s63_s27 = ssub.s32 2, %s5629_s11  ;;  %p38_p4 = scmp.eq.s32.totalorder %s37_s20, 0 }
  0x78   : > { %s64_s23 = ssub.s32 2, %s5862_s8  ;;  %s68_s17 = sadd.s32 1, %s5613_s29 }
  0x79   : > { %s65_s21 = ssub.s32 %s63_s27, %s64_s23  ;;  %s7770_s26 = sadd.s32 1, %s5625_s10 }
  0x7a   : > { %s5903_s13 = scalar_select %p38_p4, %s5625_s10, %s7770_s26  }
  0x7b   : > { %p66_p6 = scmp.eq.s32.totalorder %s65_s21, 0  ;;  %p75_p8 = scmp.ne.s32.totalorder %s5613_s29, %s5609_s28 }
  0x7c   : > { %s315_s0 = sand.u32 1, %s5629_s11   ;;  %s317_s2 = sand.u32 1, %s5613_s29  }
  0x7d   : > { %s5910_s3 = scalar_select %p66_p6, %s5613_s29, %s68_s17  }
  0x7e   : > { %p7771_p10 = scmp.eq.s32.totalorder %s5629_s11, 0  ;;  %p7772_p1 = scmp.eq.s32.totalorder %s5726_s12, 2 }
  0x7f   : > { %s4019_s22 = sshll.u32 %s317_s2, 8  ;;  %s4327_s30 = sshll.u32 %s63_s27, 12 }
  0x80   : > { %p77_p2 = por %p75_p8, %p7771_p10  ;;  %p5916_p0 = por %p7772_p1, %p75_p8 }
  0x81   : > { %s5923_s26 = scalar_lea.hbm %s7593_s1, %s4327_s30  ;;  %s319_s21 = scalar_lea.vmem [#allocation9], %s4019_s22 }
  0x82   : > { %s7773_s19 = scalar_select %p5916_p0, 1, 0 }
  0x83   : > { %s328_s17 = sshll.u32 %s319_s21, 4  ;;  %p7774_p11 = scmp.lt.s32.totalorder %s5629_s11, 3  ;;  %s5925_s17 = int_to_ptr.vmem [resolvable:$true] %s328_s17 }
  0x84   : > { %s5933_s2 = scalar_lea.sflag [#allocation10], %s315_s0  ;;  %s5405_s27 = scalar_lea.hbm %s5923_s26, 4096 }
  0x85   : > { %p5929_p13 = pnand %p7774_p11, %p77_p2  ;;  %p5406_p7 = scmp.ne.s32.totalorder %s5923_s26, %s5405_s27 }
  0x86   : > { %s5410_s20 = scalar_lea.hbm %s7593_s1, 12288  ;;  %p5411_p4 = scmp.lt.u32.totalorder %s5923_s26, %s7593_s1 }
  0x87   : > { %p5407_p3 = pneg %p5929_p13  ;;  %p5412_p6 = scmp.lt.u32.totalorder %s5410_s20, %s5405_s27 }
  0x88   : > { %p5414_p10 = scmp.lt.u32.totalorder %s5405_s27, %s5923_s26 }
  0x89   : > { %p5408_p5 = pnand %p5407_p3, %p5406_p7  ;;  %p5413_p8 = por %p5412_p6, %p5411_p4 }
  0x8b   : > { %p5409_p9 = pneg %p5408_p5  ;;  %p5415_p2 = por %p5414_p10, %p5413_p8 }
  0x8d   : > { %p5416_p1 = pnand %p5415_p2, %p5409_p9 }
  0x8f   : > { %5419 = shalt.err (!%p5416_p1)
}
  0x90   : > { %s5420_s0 = scalar_lea.vmem %s5925_s17, 4096  ;;  %s5636_s22 = smov [#allocation9]  }
  0x91   : > { %p5421_p11 = scmp.ne.s32.totalorder %s5925_s17, %s5420_s0  ;;  %s5425_s30 = sshll.u32 %s5636_s22, 4  ;;  %s5426_s30 = int_to_ptr.vmem [resolvable:$false] %s5425_s30 }
  0x92   : > { %s5427_s23 = scalar_lea.vmem %s5426_s30, 8192  ;;  %p5428_p0 = scmp.lt.s32.totalorder %s5925_s17, %s5426_s30 }
  0x93   : > { %p5423_p7 = pnand %p5421_p11, %p5407_p3  ;;  %p5429_p4 = scmp.lt.s32.totalorder %s5427_s23, %s5420_s0 }
  0x95   : > { %p5424_p5 = pneg %p5423_p7  ;;  %p5430_p6 = por %p5429_p4, %p5428_p0 }
  0x97   : > { %p5431_p8 = pnand %p5430_p6, %p5424_p5 }
  0x99   : > { %5434 = shalt.err (!%p5431_p8)
}
  0x9a   : > { %s7776_s27 = smov 16   ;;  %340 = sbr.rel (%p5759_p12) target bundleno = 2481 (0x9b1), region = 40 }
  0x9b   : > { %4495 = dma.hbm_to_vmem [thread:$0]  (!%p5929_p13), %s5923_s26, 4096, %s5925_s17, %s5933_s2, %s7769_s25, %s7769_s25, %s7776_s27  }
  0xa1   : > { %s5967_s20 = sand.u32 1, %s5621_s9   ;;  %p7777_p0 = scmp.ne.s32.totalorder %s7755_s14, 0 }
  0xa2   : > { %s4024_s21 = sshll.u32 %s5967_s20, 8  ;;  %s343_s0 = scalar_lea.sflag [#allocation7], %s5967_s20 }
  0xa3   : > { %s5971_s22 = scalar_lea.vmem [#allocation6], %s4024_s21 }
  0xa4   : > { %5572 = dma.done.wait (%p7777_p0), %s343_s0, 4096  }
  0xa5   : > { %5574 = vsyncadd (%p7777_p0), %s343_s0, 4294963200  ;;  %s351_s18 = sand.u32 1, %s5726_s12   ;;  %s353_s16 = sand.u32 1, %s5609_s28  }
  0xa6   : > { %s4025_s25 = sshll.u32 %s353_s16, 8  ;;  %s352_s26 = scalar_lea.sflag [#allocation10], %s351_s18 }
  0xa7   : > { %s5981_s17 = scalar_lea.vmem [#allocation9], %s4025_s25  ;;  %p7778_p12 = scmp.ne.s32.totalorder %s7756_s15, 0 }
  0xa9   : > { %5576 = dma.done.wait (%p7778_p12), %s352_s26, 4096  }
  0xaa   : > { %5578 = vsyncadd (%p7778_p12), %s352_s26, 4294963200  ;;  %p7779_p13 = scmp.eq.s32.totalorder %s5726_s12, 0 }
  0xac   : > { %5580 = dma.done.wait (%p7779_p13), [#allocation10], 4096   ;;  %p7780_p3 = pmov %p7779_p13 }
  0xae   : > { %5582 = vsyncadd (%p7780_p3), [#allocation10], 4294963200  ;;  %p7781_p9 = pmov %p7780_p3 }
  0xaf   : > { %p7782_p10 = pmov %p7780_p3 }
  0xb0   : > { %5584 = dma.done.wait (%p7781_p9), [#allocation13], 4096  }
  0xb1   : > { %5586 = vsyncadd (%p7782_p10), [#allocation13], 4294963200  ;;  %s4028_s14 = sshll.u32 %s5967_s20, 6  ;;  %s4029_s2 = sshll.u32 %s353_s16, 6 }
  0xb2   : > { %s5996_s30 = scalar_lea.vmem [#allocation14], %s4028_s14  ;;  %s5998_s23 = scalar_lea.vmem [#allocation15], %s4029_s2 }
  0xb3   : > { %p7783_p2 = scmp.ne.s32.totalorder %s5726_s12, 0 }
  0xb4   : > { %v5637_v0 = vmov (!%p7783_p2), 0.0  }
  0xb5   : > { %416 = sbr.rel (%p7783_p2) target bundleno = 188 (0xbc), region = 60  ;;  %417 = vst [vmem:[#allocation2] sm:$0xff] (!%p7783_p2), %v5637_v0  ;;  %418 = vst [vmem:[#allocation2 + $0x8] sm:$0xff] (!%p7783_p2), %v5637_v0 }
  0xb6   : > { %419 = vst [vmem:[#allocation3] sm:$0xff] (!%p7783_p2), %v5637_v0  ;;  %420 = vst [vmem:[#allocation3 + $0x8] sm:$0xff] (!%p7783_p2), %v5637_v0 }
  0xb7   : > { %421 = vst [vmem:[#allocation4] sm:$0xff] (!%p7783_p2), %v5637_v0  ;;  %422 = vst [vmem:[#allocation4 + $0x8] sm:$0xff] (!%p7783_p2), %v5637_v0 }
  0xb8   : > { %423 = vst [vmem:[#allocation5] sm:$0xff] (!%p7783_p2), %v5637_v0  ;;  %424 = vst [vmem:[#allocation5 + $0x8] sm:$0xff] (!%p7783_p2), %v5637_v0 }
  0xbc PF: > { %v6002_v1 = vld [vmem:[#allocation11 + $0x4] ss:$16 sps:$4 sm:$0xff]   ;;  %v6004_v2 = vld [vmem:[#allocation11] ss:$16 sps:$4 sm:$0xff]   ;;  %v7631_v3 = vmov 0   ;;  %v6091_v32 = vld [vmem:[#allocation2 + $0x8] sm:$0xff] }
  0xbd   : > { %707 = vmatprep.mubr.bf16.mxu0 %v7631_v3  ;;  %750 = vmatprep.mubr.bf16.mxu1 %v7631_v3  ;;  %v6009_v4 = vld [vmem:[#allocation11 + $0x24] ss:$16 sps:$4 sm:$0xff]   ;;  %v6013_v5 = vld [vmem:[#allocation11 + $0x20] ss:$16 sps:$4 sm:$0xff]   ;;  %v6019_v7 = vld [vmem:[#allocation11 + $0xc] ss:$16 sps:$4 sm:$0xff]  }
  0xbe   : > { %675 = vmatprep.subr.bf16.mxu0 %v6002_v1  ;;  %4581 = vset.pattern.permute.xlu0 %v7631_v3  ;;  %v6017_v6 = vld [vmem:[#allocation11 + $0x44] ss:$16 sps:$4 sm:$0xff]   ;;  %v6021_v8 = vld [vmem:[#allocation11 + $0x8] ss:$16 sps:$4 sm:$0xff]   ;;  %v6024_v9 = vld [vmem:[#allocation11 + $0x40] ss:$16 sps:$4 sm:$0xff]  }
  0xbf   : > { %676 = vmatpush1.bf16.msra.mxu0 %v6004_v2  ;;  %4582 = vset.pattern.permute.xlu1 %v7631_v3  ;;  %v6028_v10 = vld [vmem:[#allocation11 + $0x64] ss:$16 sps:$4 sm:$0xff]   ;;  %v6031_v11 = vld [vmem:[#allocation11 + $0x2c] ss:$16 sps:$4 sm:$0xff]   ;;  %v6033_v12 = vld [vmem:[#allocation11 + $0x28] ss:$16 sps:$4 sm:$0xff]  }
  0xc0   : > { %677 = vmatprep.subr.bf16.mxu0 %v6009_v4  ;;  %718 = vmatprep.subr.bf16.mxu1 %v6019_v7  ;;  %v6037_v13 = vld [vmem:[#allocation11 + $0x60] ss:$16 sps:$4 sm:$0xff]   ;;  %v6039_v14 = vld [vmem:[#allocation11 + $0x84] ss:$16 sps:$4 sm:$0xff]   ;;  %v6041_v15 = vld [vmem:[#allocation11 + $0x4c] ss:$16 sps:$4 sm:$0xff]  }
  0xc1   : > { %719 = vmatpush1.bf16.msra.mxu1 %v6021_v8  ;;  %v6045_v16 = vld [vmem:[#allocation11 + $0x48] ss:$16 sps:$4 sm:$0xff]   ;;  %v6048_v17 = vld [vmem:[#allocation11 + $0x6c] ss:$16 sps:$4 sm:$0xff]   ;;  %v6051_v18 = vld [vmem:[#allocation11 + $0x80] ss:$16 sps:$4 sm:$0xff]  }
  0xc2   : > { %720 = vmatprep.subr.bf16.mxu1 %v6031_v11  ;;  %v6054_v19 = vld [vmem:[#allocation11 + $0xa4] ss:$16 sps:$4 sm:$0xff]   ;;  %v6057_v20 = vld [vmem:[#allocation11 + $0x68] ss:$16 sps:$4 sm:$0xff]   ;;  %v6060_v21 = vld [vmem:[#allocation11 + $0x8c] ss:$16 sps:$4 sm:$0xff]  }
  0xc3   : > { %678 = vmatpush1.bf16.msra.mxu0 %v6013_v5  ;;  %v6063_v22 = vld [vmem:[#allocation11 + $0xa0] ss:$16 sps:$4 sm:$0xff]   ;;  %v6066_v23 = vld [vmem:[#allocation11 + $0xc4] ss:$16 sps:$4 sm:$0xff]   ;;  %v6069_v24 = vld [vmem:[#allocation11 + $0x88] ss:$16 sps:$4 sm:$0xff]  }
  0xc4   : > { %679 = vmatprep.subr.bf16.mxu0 %v6017_v6  ;;  %v6072_v25 = vld [vmem:[#allocation11 + $0xac] ss:$16 sps:$4 sm:$0xff]   ;;  %v6074_v26 = vld [vmem:[#allocation11 + $0xc0] ss:$16 sps:$4 sm:$0xff]   ;;  %v6077_v27 = vld [vmem:[#allocation11 + $0xe4] ss:$16 sps:$4 sm:$0xff]  }
  0xc5   : > { %721 = vmatpush1.bf16.msra.mxu1 %v6033_v12  ;;  %v6081_v28 = vld [vmem:[#allocation11 + $0xa8] ss:$16 sps:$4 sm:$0xff]   ;;  %v6083_v29 = vld [vmem:[#allocation11 + $0xe0] ss:$16 sps:$4 sm:$0xff]   ;;  %v6086_v30 = vld [vmem:[#allocation11 + $0xcc] ss:$16 sps:$4 sm:$0xff]  }
  0xc6   : > { %722 = vmatprep.subr.bf16.mxu1 %v6041_v15  ;;  %v6088_v31 = vld [vmem:[#allocation2] sm:$0xff]  ;;  %v6097_v34 = vld [vmem:[#allocation11 + $0xc8] ss:$16 sps:$4 sm:$0xff]   ;;  %v6100_v35 = vld [vmem:[#allocation11 + $0xec] ss:$16 sps:$4 sm:$0xff]   ;;  %s6135_s15 = sshll.u32 %s5726_s12, 3 }
  0xc7   : > { %680 = vmatpush1.bf16.msra.mxu0 %v6024_v9  ;;  %v6094_v33 = vld [vmem:[#allocation12 + $0x4] ss:$16 sps:$4 sm:$0xff]   ;;  %v514_v36 = vpack.c.bf16 %v6091_v32, %v6088_v31  ;;  %v6104_v37 = vld [vmem:[#allocation12] ss:$16 sps:$4 sm:$0xff]   ;;  %v6111_v39 = vld [vmem:[#allocation11 + $0xe8] ss:$16 sps:$4 sm:$0xff]   ;;  %v817_v49 = vstv %s6135_s15 }
  0xc8   : > { %681 = vmatprep.subr.bf16.mxu0 %v6028_v10  ;;  %v6107_v38 = vld [vmem:[#allocation12 + $0x24] ss:$16 sps:$4 sm:$0xff]   ;;  %v6114_v40 = vld [vmem:[#allocation12 + $0xc] ss:$16 sps:$4 sm:$0xff]   ;;  %v6117_v41 = vld [vmem:[#allocation12 + $0x20] ss:$16 sps:$4 sm:$0xff]  }
  0xc9   : > { %723 = vmatpush1.bf16.msra.mxu1 %v6045_v16  ;;  %v6121_v42 = vld [vmem:[#allocation12 + $0x44] ss:$16 sps:$4 sm:$0xff]   ;;  %v6124_v43 = vld [vmem:[#allocation12 + $0x8] ss:$16 sps:$4 sm:$0xff]   ;;  %v6127_v44 = vld [vmem:[#allocation12 + $0x2c] ss:$16 sps:$4 sm:$0xff]  }
  0xca   : > { %724 = vmatprep.subr.bf16.mxu1 %v6048_v17  ;;  %v6130_v45 = vld [vmem:[#allocation12 + $0x40] ss:$16 sps:$4 sm:$0xff]   ;;  %v6132_v46 = vld [vmem:[#allocation12 + $0x64] ss:$16 sps:$4 sm:$0xff]   ;;  %s426_s27 = ssub.s32 2, %s5726_s12  ;;  %s1189_s21 = sadd.s32 1, %s6135_s15 }
  0xcb   : > { %682 = vmatpush1.bf16.msra.mxu0 %v6037_v13  ;;  %7784 = vst [vmem:[#allocation31_spill] sm:$0xff] %v6132_v46  ;;  %v6140_v47 = vld [vmem:[#allocation12 + $0x28] ss:$16 sps:$4 sm:$0xff]   ;;  %v6143_v48 = vld [vmem:[#allocation12 + $0x4c] ss:$16 sps:$4 sm:$0xff]   ;;  %s6150_s0 = sshll.u32 %s426_s27, 3  ;;  %v1345_v57 = vstv %s1189_s21 }
  0xcc   : > { %683 = vmatprep.subr.bf16.mxu0 %v6039_v14  ;;  %v6153_v50 = vld [vmem:[#allocation12 + $0x60] ss:$16 sps:$4 sm:$0xff]   ;;  %v6155_v51 = vld [vmem:[#allocation12 + $0x84] ss:$16 sps:$4 sm:$0xff]   ;;  %s844_s16 = sadd.s32 7, %s6150_s0  ;;  %v6170_v54 = vld [vmem:[%s7596_s4 + $0x8] sm:$0xff] }
  0xcd   : > { %725 = vmatpush1.bf16.msra.mxu1 %v6057_v20  ;;  %7785 = vst [vmem:[#allocation32_spill] sm:$0xff] %v6153_v50  ;;  %7786 = vst [vmem:[#allocation33_spill] sm:$0xff] %v6155_v51  ;;  %v6160_v52 = vld [vmem:[#allocation12 + $0x48] ss:$16 sps:$4 sm:$0xff]   ;;  %v6165_v53 = vld [vmem:[%s7596_s4] sm:$0xff]  ;;  %vm819_vm1 = vcmp.lt.s32.totalorder %v817_v49, %v6170_v54  ;;  %v1161_v58 = vstv %s844_s16  ;;  %s1373_s25 = sadd.s32 6, %s6150_s0  ;;  %vm1347_vm6 = vcmp.lt.s32.totalorder %v1345_v57, %v6170_v54 }
  0xce   : > { %726 = vmatprep.subr.bf16.mxu1 %v6060_v21  ;;  %v6173_v55 = vld [vmem:[#allocation12 + $0x6c] ss:$16 sps:$4 sm:$0xff]   ;;  %vm818_vm0 = vcmp.lt.s32.totalorder %v817_v49, %v6165_v53  ;;  %v6179_v59 = vld [vmem:[#allocation12 + $0x80] ss:$16 sps:$4 sm:$0xff]   ;;  %v6183_v60 = vld [vmem:[#allocation12 + $0xa4] ss:$16 sps:$4 sm:$0xff]   ;;  %vm1346_vm2 = vcmp.lt.s32.totalorder %v1345_v57, %v6165_v53  ;;  %vm1162_vm3 = vcmp.lt.s32.totalorder %v1161_v58, %v6165_v53  ;;  %v1529_v0 = vstv %s1373_s25 }
  0xcf   : > { %684 = vmatpush1.bf16.msra.mxu0 %v6051_v18  ;;  %7787 = vst [vmem:[#allocation34_spill] sm:$0xff] %v6173_v55  ;;  %v820_v56 = vsel %vm818_vm0, 1, %v7631_v3  ;;  %7788 = vst [vmem:[#allocation35_spill] sm:$0xff] %v6179_v59  ;;  %v6186_v61 = vld [vmem:[#allocation12 + $0x68] ss:$16 sps:$4 sm:$0xff]   ;;  %v821_v62 = vsel %vm819_vm1, 1, %v7631_v3  ;;  %vm1163_vm4 = vcmp.lt.s32.totalorder %v1161_v58, %v6170_v54  ;;  %vm1530_vm5 = vcmp.lt.s32.totalorder %v1529_v0, %v6165_v53 }
  0xd0   : > { %685 = vmatprep.subr.bf16.mxu0 %v6054_v19  ;;  %823 = vperm.xlu0 %4581, %v820_v56   ;;  %7789 = vst [vmem:[#allocation36_spill] sm:$0xff] %v6183_v60  ;;  %7790 = vst [vmem:[#allocation37_spill] sm:$0xff] %v6186_v61  ;;  %v6190_v63 = vld [vmem:[#allocation12 + $0x8c] ss:$16 sps:$4 sm:$0xff]   ;;  %v6196_v49 = vld [vmem:[#allocation12 + $0xa0] ss:$16 sps:$4 sm:$0xff]   ;;  %vm1531_vm8 = vcmp.lt.s32.totalorder %v1529_v0, %v6170_v54 }
  0xd1   : > { %727 = vmatpush1.bf16.msra.mxu1 %v6069_v24  ;;  %7791 = vst [vmem:[#allocation38_spill] sm:$0xff] %v6190_v63  ;;  %7792 = vst [vmem:[#allocation39_spill] sm:$0xff] %v6196_v49  ;;  %s1557_s21 = sadd.s32 2, %s6135_s15  ;;  %v6201_v56 = vld [vmem:[#allocation12 + $0xc4] ss:$16 sps:$4 sm:$0xff]   ;;  %v1165_v58 = vsel %vm1163_vm4, 1, %v7631_v3 }
  0xd2   : > { %728 = vmatprep.subr.bf16.mxu1 %v6072_v25  ;;  %7793 = vst [vmem:[#allocation40_spill] sm:$0xff] %v6201_v56  ;;  %s1741_s16 = sadd.s32 5, %s6150_s0  ;;  %v1349_v57 = vsel %vm1347_vm6, 1, %v7631_v3  ;;  %s1925_s26 = sadd.s32 3, %s6135_s15  ;;  %v1533_v0 = vsel %vm1531_vm8, 1, %v7631_v3 }
  0xd3   : > { %686 = vmatpush1.bf16.msra.mxu0 %v6063_v22  ;;  %s2109_s14 = sadd.s32 4, %s6150_s0  ;;  %s2293_s2 = sadd.s32 4, %s6135_s15 }
  0xd4   : > { %687 = vmatprep.subr.bf16.mxu0 %v6066_v23  ;;  %826 = vperm.xlu0 %4581, %v821_v62   ;;  %v1713_v62 = vstv %s1557_s21  ;;  %s2477_s25 = sadd.s32 3, %s6150_s0  ;;  %s2661_s21 = sadd.s32 5, %s6135_s15 }
  0xd5   : > { %729 = vmatpush1.bf16.msra.mxu1 %v6081_v28  ;;  %vm1714_vm7 = vcmp.lt.s32.totalorder %v1713_v62, %v6165_v53  ;;  %vm1715_vm10 = vcmp.lt.s32.totalorder %v1713_v62, %v6170_v54  ;;  %v2449_v62 = vstv %s2293_s2  ;;  %s3397_s2 = sadd.s32 7, %s6135_s15  ;;  %p4309_p1 = scmp.ne.s32.totalorder %s5726_s12, 2 }
  0xd6   : > { %730 = vmatprep.subr.bf16.mxu1 %v6086_v30  ;;  %vm2450_vm15 = vcmp.lt.s32.totalorder %v2449_v62, %v6165_v53 }
  0xd7   : > { %688 = vmatpush1.bf16.msra.mxu0 %v6074_v26 }
  0xd8   : > { %689 = vmatprep.subr.bf16.mxu0 %v6077_v27 }
  0xd9   : > { %731 = vmatpush1.bf16.msra.mxu1 %v6097_v34 }
  0xda   : > { %732 = vmatprep.subr.bf16.mxu1 %v6100_v35 }
  0xdb   : > { %690 = vmatpush1.bf16.msra.mxu0 %v6083_v29 }
  0xdc   : > { %1019 = vmatprep.subr.bf16.mxu0 %v6094_v33 }
  0xdd   : > { %733 = vmatpush1.bf16.msra.mxu1 %v6111_v39 }
  0xde   : > { %708 = vmatmul.mubr.bf16.vlgmr.msra.gmra.mrb[0].mxu0 %v514_v36  ;;  %1062 = vmatprep.subr.bf16.mxu1 %v6114_v40 }
  0xdf   : > { %1020 = vmatpush1.bf16.msra.mxu0 %v6104_v37  ;;  %1051 = vmatprep.mubr.bf16.mxu0 %v7631_v3 }
  0xe0   : > { %1021 = vmatprep.subr.bf16.mxu0 %v6107_v38  ;;  %751 = vmatmul.mubr.bf16.vlgmr.msra.gmra.mrb[0].mxu1 %v514_v36  ;;  %v1164_v36 = vsel %vm1162_vm3, 1, %v7631_v3 }
  0xe1   : > { %1063 = vmatpush1.bf16.msra.mxu1 %v6124_v43  ;;  %1094 = vmatprep.mubr.bf16.mxu1 %v7631_v3 }
  0xe2   : > { %1064 = vmatprep.subr.bf16.mxu1 %v6127_v44  ;;  %1167 = vperm.xlu1 %4582, %v1164_v36   ;;  %v1532_v36 = vsel %vm1530_vm5, 1, %v7631_v3 }
  0xe3   : > { %1022 = vmatpush1.bf16.msra.mxu0 %v6117_v41 }
  0xe4   : > { %1023 = vmatprep.subr.bf16.mxu0 %v6121_v42 }
  0xe5   : > { %1065 = vmatpush1.bf16.msra.mxu1 %v6140_v47 }
  0xe6   : > { %1066 = vmatprep.subr.bf16.mxu1 %v6143_v48  ;;  %1170 = vperm.xlu1 %4582, %v1165_v58   ;;  %v6240_v58 = vld [vmem:[#allocation12 + $0xc8] ss:$16 sps:$4 sm:$0xff]  }
  0xe7   : > { %1024 = vmatpush1.bf16.msra.mxu0 %v6130_v45 }
  0xe8   : > { %1025 = vmatprep.subr.bf16.mxu0 %v6132_v46  ;;  %v2081_v46 = vstv %s1925_s26  ;;  %s3029_s26 = sadd.s32 6, %s6135_s15 }
  0xe9   : > { %1067 = vmatpush1.bf16.msra.mxu1 %v6160_v52  ;;  %vm2082_vm11 = vcmp.lt.s32.totalorder %v2081_v46, %v6165_v53  ;;  %vm2083_vm14 = vcmp.lt.s32.totalorder %v2081_v46, %v6170_v54 }
  0xea   : > { %1068 = vmatprep.subr.bf16.mxu1 %v6173_v55  ;;  %v6232_v55 = vld [vmem:[#allocation4] sm:$0xff]  ;;  %1354 = vperm.xlu1 %4582, %v1349_v57   ;;  %v2265_v57 = vstv %s2109_s14  ;;  %s3213_s14 = sadd.s32 1, %s6150_s0 }
  0xeb   : > { %1026 = vmatpush1.bf16.msra.mxu0 %v6153_v50  ;;  %v1348_v50 = vsel %vm1346_vm2, 1, %v7631_v3  ;;  %vm2266_vm13 = vcmp.lt.s32.totalorder %v2265_v57, %v6165_v53  ;;  %vm2267_vm0 = vcmp.lt.s32.totalorder %v2265_v57, %v6170_v54  ;;  %vm2451_vm2 = vcmp.lt.s32.totalorder %v2449_v62, %v6170_v54 }
  0xec   : > { %1027 = vmatprep.subr.bf16.mxu0 %v6155_v51  ;;  %v6204_v51 = vld [vmem:[#allocation12 + $0x88] ss:$16 sps:$4 sm:$0xff]   ;;  %1351 = vperm.xlu0 %4581, %v1348_v50   ;;  %v1897_v50 = vstv %s1741_s16  ;;  %s2845_s16 = sadd.s32 2, %s6150_s0 }
  0xed   : > { %1069 = vmatpush1.bf16.msra.mxu1 %v6186_v61  ;;  %7794 = vst [vmem:[#allocation41_spill] sm:$0xff] %v6204_v51  ;;  %v6221_v61 = vld [vmem:[#allocation12 + $0xa8] ss:$16 sps:$4 sm:$0xff]   ;;  %vm1898_vm9 = vcmp.lt.s32.totalorder %v1897_v50, %v6165_v53  ;;  %vm1899_vm12 = vcmp.lt.s32.totalorder %v1897_v50, %v6170_v54 }
  0xee   : > { %1070 = vmatprep.subr.bf16.mxu1 %v6190_v63  ;;  %v6218_v63 = vld [vmem:[#allocation12 + $0xe4] ss:$16 sps:$4 sm:$0xff]   ;;  %1538 = vperm.xlu1 %4582, %v1533_v0   ;;  %v1901_v0 = vsel %vm1899_vm12, 1, %v7631_v3 }
  0xef   : > { %1028 = vmatpush1.bf16.msra.mxu0 %v6179_v59  ;;  %v6208_v59 = vld [vmem:[#allocation12 + $0xac] ss:$16 sps:$4 sm:$0xff]   ;;  %7797 = vst [vmem:[#allocation44_spill] sm:$0xff] %v6218_v63 }
  0xf0   : > { %1029 = vmatprep.subr.bf16.mxu0 %v6183_v60  ;;  %7795 = vst [vmem:[#allocation42_spill] sm:$0xff] %v6208_v59  ;;  %v6213_v60 = vld [vmem:[#allocation12 + $0xc0] ss:$16 sps:$4 sm:$0xff]   ;;  %1535 = vperm.xlu0 %4581, %v1532_v36  }
  0xf1   : > { %7796 = vst [vmem:[#allocation43_spill] sm:$0xff] %v6213_v60  ;;  %1071 = vmatpush1.bf16.msra.mxu1 %v6204_v51  ;;  %v6234_v51 = vld [vmem:[#allocation4 + $0x8] sm:$0xff] }
  0xf2   : > { %1072 = vmatprep.subr.bf16.mxu1 %v6208_v59  ;;  %v1716_v59 = vsel %vm1714_vm7, 1, %v7631_v3  ;;  %v858_v36 = vpack.c.bf16 %v6234_v51, %v6232_v55 }
  0xf3   : > { %1030 = vmatpush1.bf16.msra.mxu0 %v6196_v49  ;;  %v6225_v49 = vld [vmem:[#allocation12 + $0xcc] ss:$16 sps:$4 sm:$0xff]  }
  0xf4   : > { %1031 = vmatprep.subr.bf16.mxu0 %v6201_v56  ;;  %7798 = vst [vmem:[#allocation45_spill] sm:$0xff] %v6225_v49  ;;  %v6230_v56 = vld [vmem:[#allocation12 + $0xe0] ss:$16 sps:$4 sm:$0xff]   ;;  %1719 = vperm.xlu0 %4581, %v1716_v59   ;;  %v1717_v59 = vsel %vm1715_vm10, 1, %v7631_v3 }
  0xf5   : > { %1073 = vmatpush1.bf16.msra.mxu1 %v6221_v61  ;;  %1722 = vperm.xlu1 %4582, %v1717_v59  }
  0xf6   : > { %1074 = vmatprep.subr.bf16.mxu1 %v6225_v49  ;;  %v1900_v49 = vsel %vm1898_vm9, 1, %v7631_v3 }
  0xf7   : > { %1032 = vmatpush1.bf16.msra.mxu0 %v6213_v60  ;;  %v6244_v60 = vld [vmem:[#allocation12 + $0xec] ss:$16 sps:$4 sm:$0xff]  }
  0xf8   : > { %1033 = vmatprep.subr.bf16.mxu0 %v6218_v63  ;;  %v6254_v63 = vld [vmem:[#allocation12 + $0xe8] ss:$16 sps:$4 sm:$0xff]   ;;  %1903 = vperm.xlu0 %4581, %v1900_v49  }
  0xf9   : > { %1075 = vmatpush1.bf16.msra.mxu1 %v6240_v58  ;;  %1906 = vperm.xlu1 %4582, %v1901_v0   ;;  %v503_v49 = vld [vmem:[%s5971_s22 + $0x8] sm:$0xff] }
  0xfa   : > { %1076 = vmatprep.subr.bf16.mxu1 %v6244_v60 }
  0xfb   : > { %1034 = vmatpush1.bf16.msra.mxu0 %v6230_v56 }
  0xfc   : > { %1203 = vmatprep.subr.bf16.mxu0 %v6002_v1  ;;  %v2084_v1 = vsel %vm2082_vm11, 1, %v7631_v3 }
  0xfd   : > { %1077 = vmatpush1.bf16.msra.mxu1 %v6254_v63  ;;  %2087 = vperm.xlu0 %4581, %v2084_v1   ;;  %v505_v1 = vld [vmem:[%s5971_s22 + $0x18] sm:$0xff] }
  0xfe   : > { %1052 = vmatmul.mubr.bf16.vlgmr.msra.gmra.mrb[4].mxu0 %v858_v36  ;;  %1246 = vmatprep.subr.bf16.mxu1 %v6019_v7  ;;  %v2085_v7 = vsel %vm2083_vm14, 1, %v7631_v3 }
  0xff   : > { %1204 = vmatpush1.bf16.msra.mxu0 %v6004_v2  ;;  %1235 = vmatprep.mubr.bf16.mxu0 %v7631_v3  ;;  %v2268_v2 = vsel %vm2266_vm13, 1, %v7631_v3 }
 0x100   : > { %1205 = vmatprep.subr.bf16.mxu0 %v6009_v4  ;;  %1095 = vmatmul.mubr.bf16.vlgmr.msra.gmra.mrb[4].mxu1 %v858_v36  ;;  %v2633_v4 = vstv %s2477_s25 }
 0x101   : > { %1247 = vmatpush1.bf16.msra.mxu1 %v6021_v8  ;;  %1278 = vmatprep.mubr.bf16.mxu1 %v7631_v3  ;;  %v2452_v8 = vsel %vm2450_vm15, 1, %v7631_v3  ;;  %vm2634_vm1 = vcmp.lt.s32.totalorder %v2633_v4, %v6165_v53  ;;  %vm2635_vm4 = vcmp.lt.s32.totalorder %v2633_v4, %v6170_v54 }
 0x102   : > { %1248 = vmatprep.subr.bf16.mxu1 %v6031_v11  ;;  %2271 = vperm.xlu0 %4581, %v2268_v2   ;;  %v2636_v11 = vsel %vm2634_vm1, 1, %v7631_v3  ;;  %v508_v2 = vunpack.c.l.bf16 %v503_v49 }
 0x103   : > { %1206 = vmatpush1.bf16.msra.mxu0 %v6013_v5  ;;  %2090 = vperm.xlu1 %4582, %v2085_v7   ;;  %v2817_v5 = vstv %s2661_s21 }
 0x104   : > { %1207 = vmatprep.subr.bf16.mxu0 %v6017_v6  ;;  %v2269_v6 = vsel %vm2267_vm0, 1, %v7631_v3  ;;  %vm2818_vm3 = vcmp.lt.s32.totalorder %v2817_v5, %v6165_v53  ;;  %vm2819_vm6 = vcmp.lt.s32.totalorder %v2817_v5, %v6170_v54 }
 0x105   : > { %1249 = vmatpush1.bf16.msra.mxu1 %v6033_v12  ;;  %v2453_v12 = vsel %vm2451_vm2, 1, %v7631_v3 }
 0x106   : > { %1250 = vmatprep.subr.bf16.mxu1 %v6041_v15  ;;  %2455 = vperm.xlu0 %4581, %v2452_v8   ;;  %v2637_v15 = vsel %vm2635_vm4, 1, %v7631_v3 }
 0x107   : > { %1208 = vmatpush1.bf16.msra.mxu0 %v6024_v9  ;;  %2274 = vperm.xlu1 %4582, %v2269_v6   ;;  %v3001_v9 = vstv %s2845_s16  ;;  %v512_v6 = vunpack.c.l.bf16 %v505_v1 }
 0x108   : > { %1209 = vmatprep.subr.bf16.mxu0 %v6028_v10  ;;  %v2820_v10 = vsel %vm2818_vm3, 1, %v7631_v3  ;;  %vm3002_vm5 = vcmp.lt.s32.totalorder %v3001_v9, %v6165_v53  ;;  %vm3003_vm8 = vcmp.lt.s32.totalorder %v3001_v9, %v6170_v54  ;;  %v509_v9 = vunpack.c.h.bf16 %v503_v49 }
 0x109   : > { %1251 = vmatpush1.bf16.msra.mxu1 %v6045_v16  ;;  %v3369_v16 = vstv %s3213_s14 }
 0x10a   : > { %1252 = vmatprep.subr.bf16.mxu1 %v6048_v17  ;;  %2639 = vperm.xlu0 %4581, %v2636_v11   ;;  %v2821_v17 = vsel %vm2819_vm6, 1, %v7631_v3  ;;  %vm3370_vm9 = vcmp.lt.s32.totalorder %v3369_v16, %v6165_v53  ;;  %vm3371_vm12 = vcmp.lt.s32.totalorder %v3369_v16, %v6170_v54 }
 0x10b   : > { %1210 = vmatpush1.bf16.msra.mxu0 %v6037_v13  ;;  %2458 = vperm.xlu1 %4582, %v2453_v12   ;;  %v3185_v13 = vstv %s3029_s26 }
 0x10c   : > { %1211 = vmatprep.subr.bf16.mxu0 %v6039_v14  ;;  %v3004_v14 = vsel %vm3002_vm5, 1, %v7631_v3  ;;  %vm3186_vm7 = vcmp.lt.s32.totalorder %v3185_v13, %v6165_v53  ;;  %vm3187_vm10 = vcmp.lt.s32.totalorder %v3185_v13, %v6170_v54 }
 0x10d   : > { %1253 = vmatpush1.bf16.msra.mxu1 %v6057_v20  ;;  %v3005_v20 = vsel %vm3003_vm8, 1, %v7631_v3 }
 0x10e   : > { %1254 = vmatprep.subr.bf16.mxu1 %v6060_v21  ;;  %2823 = vperm.xlu0 %4581, %v2820_v10   ;;  %v3372_v21 = vsel %vm3370_vm9, 1, %v7631_v3 }
 0x10f   : > { %1212 = vmatpush1.bf16.msra.mxu0 %v6051_v18  ;;  %2642 = vperm.xlu1 %4582, %v2637_v15   ;;  %v3188_v18 = vsel %vm3186_vm7, 1, %v7631_v3  ;;  %v513_v15 = vunpack.c.h.bf16 %v505_v1 }
 0x110   : > { %1213 = vmatprep.subr.bf16.mxu0 %v6054_v19  ;;  %v3553_v19 = vstv %s3397_s2 }
 0x111   : > { %1255 = vmatpush1.bf16.msra.mxu1 %v6069_v24  ;;  %vm3554_vm11 = vcmp.lt.s32.totalorder %v3553_v19, %v6165_v53  ;;  %vm3555_vm14 = vcmp.lt.s32.totalorder %v3553_v19, %v6170_v54 }
 0x112   : > { %1256 = vmatprep.subr.bf16.mxu1 %v6072_v25  ;;  %3007 = vperm.xlu0 %4581, %v3004_v14   ;;  %v3556_v24 = vsel %vm3554_vm11, 1, %v7631_v3  ;;  %v3373_v25 = vsel %vm3371_vm12, 1, %v7631_v3 }
 0x113   : > { %1214 = vmatpush1.bf16.msra.mxu0 %v6063_v22  ;;  %2826 = vperm.xlu1 %4582, %v2821_v17   ;;  %v3735_v22 = vstv %s6150_s0 }
 0x114   : > { %1215 = vmatprep.subr.bf16.mxu0 %v6066_v23  ;;  %v3189_v23 = vsel %vm3187_vm10, 1, %v7631_v3  ;;  %vm3736_vm13 = vcmp.lt.s32.totalorder %v3735_v22, %v6165_v53  ;;  %vm3737_vm15 = vcmp.lt.s32.totalorder %v3735_v22, %v6170_v54 }
 0x115   : > { %1257 = vmatpush1.bf16.msra.mxu1 %v6081_v28  ;;  %v3739_v28 = vsel %vm3737_vm15, 1, %v7631_v3 }
 0x116   : > { %1258 = vmatprep.subr.bf16.mxu1 %v6086_v30  ;;  %3191 = vperm.xlu0 %4581, %v3188_v18   ;;  %v504_v30 = vld [vmem:[%s5971_s22 + $0x10] sm:$0xff] }
 0x117   : > { %1216 = vmatpush1.bf16.msra.mxu0 %v6074_v26  ;;  %3010 = vperm.xlu1 %4582, %v3005_v20   ;;  %v3738_v26 = vsel %vm3736_vm13, 1, %v7631_v3  ;;  %v511_v53 = vunpack.c.h.bf16 %v504_v30 }
 0x118   : > { %1217 = vmatprep.subr.bf16.mxu0 %v6077_v27  ;;  %v3557_v27 = vsel %vm3555_vm14, 1, %v7631_v3 }
 0x119   : > { %1259 = vmatpush1.bf16.msra.mxu1 %v6097_v34 }
 0x11a   : > { %1260 = vmatprep.subr.bf16.mxu1 %v6100_v35  ;;  %3375 = vperm.xlu0 %4581, %v3372_v21   ;;  %v510_v35 = vunpack.c.l.bf16 %v504_v30 }
 0x11b   : > { %1218 = vmatpush1.bf16.msra.mxu0 %v6083_v29  ;;  %3194 = vperm.xlu1 %4582, %v3189_v23   ;;  %v502_v29 = vld [vmem:[%s5971_s22] sm:$0xff] }
 0x11c   : > { %1387 = vmatprep.subr.bf16.mxu0 %v6094_v33  ;;  %v506_v33 = vunpack.c.l.bf16 %v502_v29  ;;  %v507_v34 = vunpack.c.h.bf16 %v502_v29 }
 0x11d   : > { %1261 = vmatpush1.bf16.msra.mxu1 %v6111_v39 }
 0x11e   : > { %1430 = vmatprep.subr.bf16.mxu1 %v6114_v40  ;;  %3559 = vperm.xlu0 %4581, %v3556_v24  }
 0x11f   : > { %3378 = vperm.xlu1 %4582, %v3373_v25  }
 0x122   : > { %3741 = vperm.xlu0 %4581, %v3738_v26  }
 0x123   : > { %3562 = vperm.xlu1 %4582, %v3557_v27  }
 0x127   : > { %3744 = vperm.xlu1 %4582, %v3739_v28  }
 0x1b1   : > { %v709_v46 = vpop.f32.mrb[0].mxu0 }
 0x1b2   : > { %v761_v50 = vadd.f32 %v709_v46, %v506_v33  ;;  %v711_v36 = vpop.f32.mrb[1].mxu0 }
 0x1b3   : > { %v762_v57 = vadd.f32 %v711_v36, %v507_v34  ;;  %v713_v59 = vpop.f32.mrb[2].mxu0  ;;  %v752_v5 = vpop.f32.mrb[0].mxu1  ;;  %v4075_v36 = vld [vmem:[%s5981_s17 + $0xf0] sm:$0xff] }
 0x1b4   : > { %v4065_v62 = vmul.f32 -1.442695, %v761_v50  ;;  %v765_v54 = vadd.f32 %v713_v59, %v510_v35  ;;  %v715_v0 = vpop.f32.mrb[3].mxu0  ;;  %v754_v12 = vpop.f32.mrb[1].mxu1  ;;  %v763_v10 = vadd.f32 %v752_v5, %v508_v2  ;;  %v4073_v35 = vld [vmem:[%s5981_s17 + $0xe0] sm:$0xff]  ;;  %v497_v59 = vld [vmem:[#allocation3 + $0x8] sm:$0xff]  ;;  %v854_v5 = vunpack.c.l.bf16 %v4075_v36 }
 0x1b5   : > { %v4066_v4 = vmul.f32 -1.442695, %v762_v57  ;;  %v766_v7 = vadd.f32 %v715_v0, %v511_v53  ;;  %v756_v13 = vpop.f32.mrb[2].mxu1  ;;  %v764_v17 = vadd.f32 %v754_v12, %v509_v9  ;;  %v6350_v34 = vpop.permute.xlu0 %823  ;;  %v496_v53 = vld [vmem:[#allocation3] sm:$0xff]  ;;  %v851_v2 = vunpack.c.h.bf16 %v4073_v35 }
 0x1b6   : > { %4679 = vpow2.f32 %v4065_v62  ;;  %v4068_v8 = vmul.f32 -1.442695, %v765_v54  ;;  %v758_v14 = vpop.f32.mrb[3].mxu1  ;;  %v767_v16 = vadd.f32 %v756_v13, %v512_v6  ;;  %v4067_v18 = vmul.f32 -1.442695, %v763_v10  ;;  %v4074_v13 = vld [vmem:[%s5981_s17 + $0xe8] sm:$0xff] }
 0x1b7   : > { %4681 = vpow2.f32 %v4066_v4  ;;  %v4069_v11 = vmul.f32 -1.442695, %v766_v7  ;;  %v768_v19 = vadd.f32 %v758_v14, %v513_v15  ;;  %v850_v62 = vunpack.c.l.bf16 %v4073_v35 }
 0x1b8   : > { %4683 = vpow2.f32 %v4068_v8  ;;  %v4070_v20 = vmul.f32 -1.442695, %v767_v16  ;;  %vm828_vm0 = vcmp.eq.s32.totalorder %v6350_v34, 1  ;;  %v855_v10 = vunpack.c.h.bf16 %v4075_v36 }
 0x1b9   : > { %4685 = vpow2.f32 %v4069_v11  ;;  %v827_v6 = vpop.permute.xlu0 %826  ;;  %v853_v35 = vunpack.c.h.bf16 %v4074_v13 }
 0x1ba   : > { %4687 = vtanh.f32 %v764_v17  ;;  %vm829_vm1 = vcmp.eq.s32.totalorder %v827_v6, 1  ;;  %v1168_v6 = vpop.permute.xlu1 %1167 }
 0x1bb   : > { %4689 = vpow2.f32 %v4067_v18  ;;  %vm1172_vm2 = vcmp.eq.s32.totalorder %v1168_v6, 1  ;;  %v6469_v6 = vld [vmem:[#allocation11 + $0x60] ss:$16 sps:$4 sm:$0xff]  }
 0x1bc   : > { %4691 = vtanh.f32 %v768_v19  ;;  %v4076_v19 = vld [vmem:[%s5981_s17 + $0xf8] sm:$0xff] }
 0x1bd   : > { %4693 = vpow2.f32 %v4070_v20 }
 0x1c0   : > { %v4680_v21 = vpop.eup %4679 }
 0x1c1   : > { %v4682_v22 = vpop.eup %4681  ;;  %v787_v23 = vadd.f32 1.0, %v4680_v21 }
 0x1c2   : > { %v4684_v24 = vpop.eup %4683  ;;  %v788_v25 = vadd.f32 1.0, %v4682_v22 }
 0x1c3   : > { %v4686_v26 = vpop.eup %4685  ;;  %4695 = vrcp.f32 %v787_v23  ;;  %v790_v27 = vadd.f32 1.0, %v4684_v24  ;;  %v852_v24 = vunpack.c.l.bf16 %v4074_v13 }
 0x1c4   : > { %4697 = vrcp.f32 %v788_v25  ;;  %v791_v28 = vadd.f32 1.0, %v4686_v26  ;;  %v4688_v29 = vpop.eup %4687 }
 0x1c5   : > { %4699 = vrcp.f32 %v790_v27  ;;  %v4690_v30 = vpop.eup %4689 }
 0x1c6   : > { %4701 = vrcp.f32 %v791_v28  ;;  %v4692_v33 = vpop.eup %4691  ;;  %v789_v50 = vadd.f32 1.0, %v4690_v30  ;;  %v856_v30 = vunpack.c.l.bf16 %v4076_v19 }
 0x1c7   : > { %v4694_v46 = vpop.eup %4693 }
 0x1c8   : > { %v792_v7 = vadd.f32 1.0, %v4694_v46  ;;  %4703 = vrcp.f32 %v789_v50  ;;  %v857_v50 = vunpack.c.h.bf16 %v4076_v19 }
 0x1cd   : > { %v4696_v49 = vpop.eup %4695 }
 0x1ce   : > { %v4698_v57 = vpop.eup %4697  ;;  %v809_v1 = vmul.f32 %v4696_v49, %v4688_v29 }
 0x1cf   : > { %v4700_v54 = vpop.eup %4699  ;;  %v807_v0 = vmul.f32 %v4698_v57, %v496_v53 }
 0x1d0   : > { %v4702_v4 = vpop.eup %4701  ;;  %v810_v8 = vmul.f32 %v4700_v54, %v4692_v33 }
 0x1d1   : > { %v808_v11 = vmul.f32 %v4702_v4, %v497_v59  ;;  %v811_v9 = vadd.f32 %v809_v1, %v807_v0  ;;  %v1053_v12 = vpop.f32.mrb[4].mxu0 }
 0x1d2   : > { %v1105_v15 = vadd.f32 %v1053_v12, %v850_v62  ;;  %v1055_v14 = vpop.f32.mrb[5].mxu0  ;;  %v4704_v1 = vpop.eup %4703 }
 0x1d3   : > { %4705 = vtanh.f32 %v811_v9  ;;  %v812_v16 = vadd.f32 %v810_v8, %v808_v11  ;;  %v1106_v17 = vadd.f32 %v1055_v14, %v851_v2  ;;  %v1057_v18 = vpop.f32.mrb[6].mxu0  ;;  %v6359_v20 = vsel %vm828_vm0, %v811_v9, %v496_v53  ;;  %v1096_v29 = vpop.f32.mrb[4].mxu1 }
 0x1d4   : > { %4707 = vrcp.f32 %v792_v7  ;;  %v4109_v21 = vmul.f32 -1.442695, %v1105_v15  ;;  %v1109_v22 = vadd.f32 %v1057_v18, %v854_v5  ;;  %v1059_v23 = vpop.f32.mrb[7].mxu0  ;;  %v1098_v46 = vpop.f32.mrb[5].mxu1  ;;  %v1107_v53 = vadd.f32 %v1096_v29, %v852_v24 }
 0x1d5   : > { %4709 = vtanh.f32 %v812_v16  ;;  %v4110_v25 = vmul.f32 -1.442695, %v1106_v17  ;;  %v1110_v26 = vadd.f32 %v1059_v23, %v855_v10  ;;  %v6362_v27 = vsel %vm829_vm1, %v812_v16, %v497_v59  ;;  %v1100_v49 = vpop.f32.mrb[6].mxu1 }
 0x1d6   : > { %4711 = vpow2.f32 %v4109_v21  ;;  %v4112_v28 = vmul.f32 -1.442695, %v1109_v22  ;;  %v1102_v36 = vpop.f32.mrb[7].mxu1  ;;  %v1111_v57 = vadd.f32 %v1100_v49, %v856_v30  ;;  %v1108_v62 = vadd.f32 %v1098_v46, %v853_v35  ;;  %v501_v22 = vld [vmem:[#allocation5 + $0x8] sm:$0xff]  ;;  %v7803_v35 = vld [vmem:[#allocation33_spill] sm:$0xff] }
 0x1d7   : > { %4713 = vpow2.f32 %v4110_v25  ;;  %v4113_v33 = vmul.f32 -1.442695, %v1110_v26  ;;  %v4111_v54 = vmul.f32 -1.442695, %v1107_v53  ;;  %v1112_v0 = vadd.f32 %v1102_v36, %v857_v50  ;;  %v7800_v25 = vld [vmem:[#allocation34_spill] sm:$0xff]  ;;  %v7805_v50 = vld [vmem:[#allocation35_spill] sm:$0xff] }
 0x1d8   : > { %4715 = vpow2.f32 %v4112_v28  ;;  %v4114_v4 = vmul.f32 -1.442695, %v1111_v57  ;;  %v1171_v28 = vpop.permute.xlu1 %1170  ;;  %v7804_v46 = vld [vmem:[#allocation38_spill] sm:$0xff]  ;;  %v7806_v36 = vld [vmem:[#allocation41_spill] sm:$0xff]  ;;  %v7807_v57 = vld [vmem:[#allocation36_spill] sm:$0xff] }
 0x1d9   : > { %4717 = vpow2.f32 %v4113_v33  ;;  %vm1173_vm3 = vcmp.eq.s32.totalorder %v1171_v28, 1  ;;  %v7801_v33 = vld [vmem:[#allocation32_spill] sm:$0xff]  ;;  %7821 = vst [vmem:[#allocation41_spill] sm:$0xff] %v6469_v6 }
 0x1da   : > { %4719 = vtanh.f32 %v1108_v62  ;;  %v7809_v62 = vld [vmem:[#allocation39_spill] sm:$0xff]  ;;  %v6514_v28 = vld [vmem:[#allocation11 + $0xec] ss:$16 sps:$4 sm:$0xff]  }
 0x1db   : > { %4721 = vpow2.f32 %v4111_v54  ;;  %7836 = vst [vmem:[#allocation53_spill] sm:$0xff] %v6514_v28 }
 0x1dc   : > { %4723 = vtanh.f32 %v1112_v0  ;;  %v7811_v0 = vld [vmem:[#allocation45_spill] sm:$0xff] }
 0x1dd   : > { %v4706_v59 = vpop.eup %4705  ;;  %4725 = vpow2.f32 %v4114_v4 }
 0x1de   : > { %v4708_v2 = vpop.eup %4707  ;;  %v815_v7 = vmul.f32 %v4706_v59, %v4704_v1  ;;  %v7808_v1 = vld [vmem:[#allocation42_spill] sm:$0xff]  ;;  %v7810_v59 = vld [vmem:[#allocation40_spill] sm:$0xff] }
 0x1df   : > { %v4710_v8 = vpop.eup %4709 }
 0x1e0   : > { %v4712_v5 = vpop.eup %4711  ;;  %v816_v11 = vmul.f32 %v4710_v8, %v4708_v2  ;;  %v6367_v15 = vsel %vm828_vm0, %v815_v7, %v6088_v31  ;;  %v7812_v7 = vld [vmem:[#allocation43_spill] sm:$0xff] }
 0x1e1   : > { %v4714_v9 = vpop.eup %4713  ;;  %v1131_v12 = vadd.f32 1.0, %v4712_v5 }
 0x1e2   : > { %v4716_v10 = vpop.eup %4715  ;;  %v1132_v13 = vadd.f32 1.0, %v4714_v9  ;;  %v6371_v14 = vsel %vm829_vm1, %v816_v11, %v6091_v32  ;;  %v7813_v11 = vld [vmem:[#allocation44_spill] sm:$0xff] }
 0x1e3   : > { %v4718_v16 = vpop.eup %4717  ;;  %4727 = vrcp.f32 %v1131_v12  ;;  %v1134_v17 = vadd.f32 1.0, %v4716_v10  ;;  %v834_v18 = vpack.c.bf16 %v6371_v14, %v6367_v15  ;;  %v6424_v10 = vld [vmem:[#allocation11 + $0x4] ss:$16 sps:$4 sm:$0xff]  }
 0x1e4   : > { %4729 = vrcp.f32 %v1132_v13  ;;  %v1135_v19 = vadd.f32 1.0, %v4718_v16  ;;  %v4720_v31 = vpop.eup %4719  ;;  %v6445_v13 = vld [vmem:[#allocation11 + $0x20] ss:$16 sps:$4 sm:$0xff]   ;;  %v6448_v16 = vld [vmem:[#allocation11 + $0x28] ss:$16 sps:$4 sm:$0xff]  }
 0x1e5   : > { %4731 = vrcp.f32 %v1134_v17  ;;  %4368 = vst [vmem:[%s5996_s30] sm:$0xff] %v834_v18   ;;  %1236 = vmatmul.mubr.bf16.vlgmr.msra.gmra.mrb[8].mxu0 %v834_v18  ;;  %1279 = vmatmul.mubr.bf16.vlgmr.msra.gmra.mrb[8].mxu1 %v834_v18  ;;  %v4722_v32 = vpop.eup %4721  ;;  %v6451_v17 = vld [vmem:[#allocation11 + $0x44] ss:$16 sps:$4 sm:$0xff]   ;;  %v6454_v18 = vld [vmem:[#allocation11 + $0x4c] ss:$16 sps:$4 sm:$0xff]  }
 0x1e6   : > { %4733 = vrcp.f32 %v1135_v19  ;;  %1388 = vmatpush1.bf16.msra.mxu0 %v6104_v37  ;;  %1431 = vmatpush1.bf16.msra.mxu1 %v6124_v43  ;;  %v4724_v34 = vpop.eup %4723  ;;  %7815 = vst [vmem:[#allocation34_spill] sm:$0xff] %v6451_v17  ;;  %7816 = vst [vmem:[#allocation32_spill] sm:$0xff] %v6454_v18  ;;  %v6457_v19 = vld [vmem:[#allocation11 + $0x40] ss:$16 sps:$4 sm:$0xff]  }
 0x1e7   : > { %1389 = vmatprep.subr.bf16.mxu0 %v6107_v38  ;;  %1432 = vmatprep.subr.bf16.mxu1 %v6127_v44  ;;  %v4726_v37 = vpop.eup %4725  ;;  %v500_v38 = vld [vmem:[#allocation5] sm:$0xff]  ;;  %v1133_v44 = vadd.f32 1.0, %v4722_v32 }
 0x1e8   : > { %1419 = vmatprep.mubr.bf16.mxu0 %v7631_v3  ;;  %1462 = vmatprep.mubr.bf16.mxu1 %v7631_v3  ;;  %v6463_v32 = vld [vmem:[#allocation11 + $0x64] ss:$16 sps:$4 sm:$0xff]  }
 0x1e9   : > { %4735 = vrcp.f32 %v1133_v44  ;;  %7819 = vst [vmem:[#allocation38_spill] sm:$0xff] %v6463_v32  ;;  %v6481_v44 = vld [vmem:[#allocation11 + $0x80] ss:$16 sps:$4 sm:$0xff]  }
 0x1ea   : > { %1390 = vmatpush1.bf16.msra.mxu0 %v6117_v41  ;;  %1433 = vmatpush1.bf16.msra.mxu1 %v6140_v47  ;;  %v7799_v47 = vld [vmem:[#allocation31_spill] sm:$0xff]  ;;  %7825 = vst [vmem:[#allocation40_spill] sm:$0xff] %v6481_v44 }
 0x1eb   : > { %1391 = vmatprep.subr.bf16.mxu0 %v6121_v42  ;;  %1434 = vmatprep.subr.bf16.mxu1 %v6143_v48  ;;  %v1136_v48 = vadd.f32 1.0, %v4726_v37  ;;  %7814 = vst [vmem:[#allocation31_spill] sm:$0xff] %v6448_v16  ;;  %v6472_v37 = vld [vmem:[#allocation11 + $0x68] ss:$16 sps:$4 sm:$0xff]  }
 0x1ec   : > { %7822 = vst [vmem:[#allocation36_spill] sm:$0xff] %v6472_v37 }
 0x1ed   : > { %v4728_v43 = vpop.eup %4727 }
 0x1ee   : > { %v4730_v21 = vpop.eup %4729  ;;  %v1153_v23 = vmul.f32 %v4728_v43, %v4720_v31  ;;  %1392 = vmatpush1.bf16.msra.mxu0 %v6130_v45  ;;  %1435 = vmatpush1.bf16.msra.mxu1 %v6160_v52  ;;  %v7802_v45 = vld [vmem:[#allocation37_spill] sm:$0xff]  ;;  %v6460_v31 = vld [vmem:[#allocation11 + $0x48] ss:$16 sps:$4 sm:$0xff]   ;;  %v6478_v43 = vld [vmem:[#allocation11 + $0x8c] ss:$16 sps:$4 sm:$0xff]  }
 0x1ef   : > { %v4732_v41 = vpop.eup %4731  ;;  %v1151_v24 = vmul.f32 %v4730_v21, %v500_v38  ;;  %1393 = vmatprep.subr.bf16.mxu0 %v7799_v47  ;;  %1436 = vmatprep.subr.bf16.mxu1 %v7800_v25  ;;  %7817 = vst [vmem:[#allocation37_spill] sm:$0xff] %v6457_v19  ;;  %7818 = vst [vmem:[#allocation33_spill] sm:$0xff] %v6460_v31  ;;  %v6484_v21 = vld [vmem:[#allocation11 + $0x88] ss:$16 sps:$4 sm:$0xff]   ;;  %v6499_v47 = vld [vmem:[#allocation11 + $0xc4] ss:$16 sps:$4 sm:$0xff]  }
 0x1f0   : > { %v4734_v42 = vpop.eup %4733  ;;  %v1154_v26 = vmul.f32 %v4732_v41, %v4724_v34  ;;  %v6466_v34 = vld [vmem:[#allocation11 + $0x6c] ss:$16 sps:$4 sm:$0xff]   ;;  %7824 = vst [vmem:[#allocation39_spill] sm:$0xff] %v6478_v43  ;;  %7826 = vst [vmem:[#allocation45_spill] sm:$0xff] %v6484_v21  ;;  %v6493_v41 = vld [vmem:[#allocation11 + $0xa0] ss:$16 sps:$4 sm:$0xff]  }
 0x1f1   : > { %v1152_v29 = vmul.f32 %v4734_v42, %v501_v22  ;;  %v1155_v30 = vadd.f32 %v1153_v23, %v1151_v24  ;;  %7820 = vst [vmem:[#allocation35_spill] sm:$0xff] %v6466_v34  ;;  %v6490_v23 = vld [vmem:[#allocation11 + $0xac] ss:$16 sps:$4 sm:$0xff]   ;;  %7829 = vst [vmem:[#allocation46_spill] sm:$0xff] %v6493_v41  ;;  %v6496_v24 = vld [vmem:[#allocation11 + $0xa8] ss:$16 sps:$4 sm:$0xff]  }
 0x1f2   : > { %1394 = vmatpush1.bf16.msra.mxu0 %v7801_v33  ;;  %1437 = vmatpush1.bf16.msra.mxu1 %v7802_v45  ;;  %7828 = vst [vmem:[#allocation44_spill] sm:$0xff] %v6490_v23  ;;  %7830 = vst [vmem:[#allocation47_spill] sm:$0xff] %v6496_v24  ;;  %v6502_v25 = vld [vmem:[#allocation11 + $0xcc] ss:$16 sps:$4 sm:$0xff]   ;;  %v6505_v42 = vld [vmem:[#allocation11 + $0xc0] ss:$16 sps:$4 sm:$0xff]  }
 0x1f3   : > { %4737 = vtanh.f32 %v1155_v30  ;;  %v1156_v52 = vadd.f32 %v1154_v26, %v1152_v29  ;;  %1395 = vmatprep.subr.bf16.mxu0 %v7803_v35  ;;  %1438 = vmatprep.subr.bf16.mxu1 %v7804_v46  ;;  %v6395_v53 = vsel %vm1172_vm2, %v1155_v30, %v500_v38  ;;  %v4736_v54 = vpop.eup %4735  ;;  %v6475_v38 = vld [vmem:[#allocation11 + $0x84] ss:$16 sps:$4 sm:$0xff]   ;;  %7831 = vst [vmem:[#allocation48_spill] sm:$0xff] %v6499_v47  ;;  %7832 = vst [vmem:[#allocation49_spill] sm:$0xff] %v6502_v25  ;;  %v6517_v29 = vld [vmem:[#allocation11 + $0xe0] ss:$16 sps:$4 sm:$0xff]  }
 0x1f4   : > { %4739 = vrcp.f32 %v1136_v48  ;;  %7823 = vst [vmem:[#allocation42_spill] sm:$0xff] %v6475_v38  ;;  %7833 = vst [vmem:[#allocation50_spill] sm:$0xff] %v6505_v42  ;;  %v6508_v48 = vld [vmem:[#allocation11 + $0xc8] ss:$16 sps:$4 sm:$0xff]   ;;  %v6511_v26 = vld [vmem:[#allocation11 + $0xe4] ss:$16 sps:$4 sm:$0xff]  }
 0x1f5   : > { %4741 = vtanh.f32 %v1156_v52  ;;  %v6398_v49 = vsel %vm1173_vm3, %v1156_v52, %v501_v22  ;;  %v6487_v22 = vld [vmem:[#allocation11 + $0xa4] ss:$16 sps:$4 sm:$0xff]   ;;  %7834 = vst [vmem:[#allocation51_spill] sm:$0xff] %v6508_v48  ;;  %7835 = vst [vmem:[#allocation52_spill] sm:$0xff] %v6511_v26 }
 0x1f6   : > { %1396 = vmatpush1.bf16.msra.mxu0 %v7805_v50  ;;  %1439 = vmatpush1.bf16.msra.mxu1 %v7806_v36  ;;  %7827 = vst [vmem:[#allocation43_spill] sm:$0xff] %v6487_v22  ;;  %7837 = vst [vmem:[#allocation54_spill] sm:$0xff] %v6517_v29  ;;  %v6521_v30 = vld [vmem:[#allocation12 + $0x4] ss:$16 sps:$4 sm:$0xff]  }
 0x1f7   : > { %1397 = vmatprep.subr.bf16.mxu0 %v7807_v57  ;;  %1440 = vmatprep.subr.bf16.mxu1 %v7808_v1  ;;  %7838 = vst [vmem:[#allocation55_spill] sm:$0xff] %v6521_v30  ;;  %v4119_v33 = vld [vmem:[%s5971_s22 + $0x20] sm:$0xff]  ;;  %v4121_v45 = vld [vmem:[%s5971_s22 + $0x30] sm:$0xff] }
 0x1f8   : > { %v1195_v52 = vunpack.c.l.bf16 %v4119_v33  ;;  %v1196_v35 = vunpack.c.h.bf16 %v4119_v33  ;;  %v1199_v46 = vunpack.c.l.bf16 %v4121_v45  ;;  %v1200_v57 = vunpack.c.h.bf16 %v4121_v45 }
 0x1fa   : > { %1398 = vmatpush1.bf16.msra.mxu0 %v7809_v62  ;;  %1441 = vmatpush1.bf16.msra.mxu1 %v6221_v61  ;;  %v4120_v62 = vld [vmem:[%s5971_s22 + $0x28] sm:$0xff] }
 0x1fb   : > { %1399 = vmatprep.subr.bf16.mxu0 %v7810_v59  ;;  %1442 = vmatprep.subr.bf16.mxu1 %v7811_v0  ;;  %v1198_v45 = vunpack.c.h.bf16 %v4120_v62 }
 0x1fd   : > { %v4738_v2 = vpop.eup %4737 }
 0x1fe   : > { %v4740_v4 = vpop.eup %4739  ;;  %1400 = vmatpush1.bf16.msra.mxu0 %v7812_v7  ;;  %1443 = vmatpush1.bf16.msra.mxu1 %v6240_v58  ;;  %v1159_v8 = vmul.f32 %v4738_v2, %v4736_v54  ;;  %v4122_v2 = vld [vmem:[%s5971_s22 + $0x38] sm:$0xff] }
 0x1ff   : > { %v4742_v5 = vpop.eup %4741  ;;  %1401 = vmatprep.subr.bf16.mxu0 %v7813_v11  ;;  %1444 = vmatprep.subr.bf16.mxu1 %v6244_v60  ;;  %v6427_v60 = vld [vmem:[#allocation11 + $0xc] ss:$16 sps:$4 sm:$0xff]   ;;  %v1197_v11 = vunpack.c.l.bf16 %v4120_v62 }
 0x200   : > { %v1160_v9 = vmul.f32 %v4742_v5, %v4740_v4  ;;  %v6416_v61 = vsel %vm1172_vm2, %v1159_v8, %v6232_v55  ;;  %v6431_v55 = vld [vmem:[#allocation11] ss:$16 sps:$4 sm:$0xff]  }
 0x202   : > { %1402 = vmatpush1.bf16.msra.mxu0 %v6230_v56  ;;  %1445 = vmatpush1.bf16.msra.mxu1 %v6254_v63  ;;  %v6420_v12 = vsel %vm1173_vm3, %v1160_v9, %v6234_v51  ;;  %v6434_v51 = vld [vmem:[#allocation11 + $0x8] ss:$16 sps:$4 sm:$0xff]   ;;  %v6437_v63 = vld [vmem:[#allocation11 + $0x24] ss:$16 sps:$4 sm:$0xff]   ;;  %v6440_v56 = vld [vmem:[#allocation11 + $0x2c] ss:$16 sps:$4 sm:$0xff]  }
 0x203   : > { %v1178_v58 = vpack.c.bf16 %v6420_v12, %v6416_v61  ;;  %1571 = vmatprep.subr.bf16.mxu0 %v6424_v10  ;;  %1614 = vmatprep.subr.bf16.mxu1 %v6427_v60 }
 0x205   : > { %4444 = vst [vmem:[%s5998_s23 + $0x38] sm:$0xff] %v1178_v58   ;;  %1420 = vmatmul.mubr.bf16.vlgmr.msra.gmra.mrb[12].mxu0 %v1178_v58  ;;  %1463 = vmatmul.mubr.bf16.vlgmr.msra.gmra.mrb[12].mxu1 %v1178_v58 }
 0x206   : > { %1572 = vmatpush1.bf16.msra.mxu0 %v6431_v55  ;;  %1615 = vmatpush1.bf16.msra.mxu1 %v6434_v51 }
 0x207   : > { %1573 = vmatprep.subr.bf16.mxu0 %v6437_v63  ;;  %1616 = vmatprep.subr.bf16.mxu1 %v6440_v56 }
 0x208   : > { %1603 = vmatprep.mubr.bf16.mxu0 %v7631_v3  ;;  %1646 = vmatprep.mubr.bf16.mxu1 %v7631_v3  ;;  %v1201_v3 = vunpack.c.l.bf16 %v4122_v2 }
 0x20a   : > { %1574 = vmatpush1.bf16.msra.mxu0 %v6445_v13  ;;  %1617 = vmatpush1.bf16.msra.mxu1 %v6448_v16 }
 0x20b   : > { %1575 = vmatprep.subr.bf16.mxu0 %v6451_v17  ;;  %1618 = vmatprep.subr.bf16.mxu1 %v6454_v18 }
 0x20e   : > { %1576 = vmatpush1.bf16.msra.mxu0 %v6457_v19  ;;  %1619 = vmatpush1.bf16.msra.mxu1 %v6460_v31 }
 0x20f   : > { %1577 = vmatprep.subr.bf16.mxu0 %v6463_v32  ;;  %1620 = vmatprep.subr.bf16.mxu1 %v6466_v34 }
 0x212   : > { %1578 = vmatpush1.bf16.msra.mxu0 %v6469_v6  ;;  %1621 = vmatpush1.bf16.msra.mxu1 %v6472_v37 }
 0x213   : > { %1579 = vmatprep.subr.bf16.mxu0 %v6475_v38  ;;  %1622 = vmatprep.subr.bf16.mxu1 %v6478_v43 }
 0x216   : > { %1580 = vmatpush1.bf16.msra.mxu0 %v6481_v44  ;;  %1623 = vmatpush1.bf16.msra.mxu1 %v6484_v21 }
 0x217   : > { %1581 = vmatprep.subr.bf16.mxu0 %v6487_v22  ;;  %1624 = vmatprep.subr.bf16.mxu1 %v6490_v23 }
 0x21a   : > { %1582 = vmatpush1.bf16.msra.mxu0 %v6493_v41  ;;  %1625 = vmatpush1.bf16.msra.mxu1 %v6496_v24 }
 0x21b   : > { %1583 = vmatprep.subr.bf16.mxu0 %v6499_v47  ;;  %1626 = vmatprep.subr.bf16.mxu1 %v6502_v25 }
 0x21e   : > { %1584 = vmatpush1.bf16.msra.mxu0 %v6505_v42  ;;  %1627 = vmatpush1.bf16.msra.mxu1 %v6508_v48 }
 0x21f   : > { %1585 = vmatprep.subr.bf16.mxu0 %v6511_v26  ;;  %1628 = vmatprep.subr.bf16.mxu1 %v6514_v28 }
 0x222   : > { %1586 = vmatpush1.bf16.msra.mxu0 %v6517_v29  ;;  %1629 = vmatpush1.bf16.msra.mxu1 %v6111_v39 }
 0x223   : > { %1755 = vmatprep.subr.bf16.mxu0 %v6521_v30  ;;  %1798 = vmatprep.subr.bf16.mxu1 %v6114_v40 }
 0x2b8   : > { %v1237_v50 = vpop.f32.mrb[8].mxu0  ;;  %v1280_v36 = vpop.f32.mrb[8].mxu1 }
 0x2b9   : > { %v1289_v1 = vadd.f32 %v1237_v50, %v1195_v52  ;;  %v1239_v54 = vpop.f32.mrb[9].mxu0  ;;  %v1282_v59 = vpop.f32.mrb[9].mxu1  ;;  %v1291_v52 = vadd.f32 %v1280_v36, %v1197_v11 }
 0x2ba   : > { %v1290_v39 = vadd.f32 %v1239_v54, %v1196_v35  ;;  %v1241_v0 = vpop.f32.mrb[10].mxu0  ;;  %v1284_v4 = vpop.f32.mrb[10].mxu1  ;;  %v1292_v35 = vadd.f32 %v1282_v59, %v1198_v45  ;;  %v1202_v54 = vunpack.c.h.bf16 %v4122_v2 }
 0x2bb   : > { %v4123_v7 = vmul.f32 -1.442695, %v1289_v1  ;;  %v1293_v8 = vadd.f32 %v1241_v0, %v1199_v46  ;;  %v1243_v5 = vpop.f32.mrb[11].mxu0  ;;  %v1286_v40 = vpop.f32.mrb[11].mxu1  ;;  %v1295_v50 = vadd.f32 %v1284_v4, %v1201_v3  ;;  %v4125_v29 = vmul.f32 -1.442695, %v1291_v52 }
 0x2bc   : > { %v4124_v9 = vmul.f32 -1.442695, %v1290_v39  ;;  %v1294_v58 = vadd.f32 %v1243_v5, %v1200_v57  ;;  %v1296_v0 = vadd.f32 %v1286_v40, %v1202_v54  ;;  %v4133_v4 = vld [vmem:[%s5981_s17 + $0xc0] sm:$0xff]  ;;  %v4135_v5 = vld [vmem:[%s5981_s17 + $0xd0] sm:$0xff]  ;;  %v6531_v45 = vpop.permute.xlu0 %1351  ;;  %v6533_v52 = vpop.permute.xlu1 %1354 }
 0x2bd   : > { %4743 = vpow2.f32 %v4123_v7  ;;  %v4126_v33 = vmul.f32 -1.442695, %v1293_v8  ;;  %v4128_v1 = vmul.f32 -1.442695, %v1295_v50  ;;  %v1379_v11 = vunpack.c.l.bf16 %v4133_v4 }
 0x2be   : > { %v4127_v30 = vmul.f32 -1.442695, %v1294_v58  ;;  %4745 = vpow2.f32 %v4124_v9  ;;  %vm1356_vm4 = vcmp.eq.s32.totalorder %v6531_v45, 1  ;;  %vm1357_vm5 = vcmp.eq.s32.totalorder %v6533_v52, 1  ;;  %v6564_v45 = vld [vmem:[#allocation12] ss:$16 sps:$4 sm:$0xff]  }
 0x2bf   : > { %4747 = vpow2.f32 %v4126_v33  ;;  %v6573_v52 = vld [vmem:[#allocation12 + $0x2c] ss:$16 sps:$4 sm:$0xff]  }
 0x2c0   : > { %4749 = vpow2.f32 %v4127_v30 }
 0x2c1   : > { %4751 = vtanh.f32 %v1292_v35  ;;  %v1383_v35 = vunpack.c.l.bf16 %v4135_v5 }
 0x2c2   : > { %4753 = vpow2.f32 %v4125_v29 }
 0x2c3   : > { %4755 = vpow2.f32 %v4128_v1 }
 0x2c7   : > { %v4744_v46 = vpop.eup %4743 }
 0x2c8   : > { %v1315_v28 = vadd.f32 1.0, %v4744_v46  ;;  %v4746_v57 = vpop.eup %4745 }
 0x2c9   : > { %v4748_v39 = vpop.eup %4747  ;;  %v1316_v62 = vadd.f32 1.0, %v4746_v57 }
 0x2ca   : > { %4757 = vrcp.f32 %v1315_v28  ;;  %v1318_v36 = vadd.f32 1.0, %v4748_v39  ;;  %v4750_v3 = vpop.eup %4749  ;;  %v1380_v28 = vunpack.c.h.bf16 %v4133_v4 }
 0x2cb   : > { %4759 = vtanh.f32 %v1296_v0  ;;  %v1319_v30 = vadd.f32 1.0, %v4750_v3  ;;  %v4752_v59 = vpop.eup %4751 }
 0x2cc   : > { %4761 = vrcp.f32 %v1316_v62  ;;  %v4754_v2 = vpop.eup %4753 }
 0x2cd   : > { %4763 = vrcp.f32 %v1318_v36  ;;  %v4756_v7 = vpop.eup %4755  ;;  %v1317_v58 = vadd.f32 1.0, %v4754_v2  ;;  %v4134_v2 = vld [vmem:[%s5981_s17 + $0xc8] sm:$0xff] }
 0x2ce   : > { %4765 = vrcp.f32 %v1319_v30  ;;  %v1320_v54 = vadd.f32 1.0, %v4756_v7  ;;  %v1384_v30 = vunpack.c.h.bf16 %v4135_v5 }
 0x2cf   : > { %4767 = vrcp.f32 %v1317_v58  ;;  %v1381_v58 = vunpack.c.l.bf16 %v4134_v2 }
 0x2d4   : > { %v4758_v8 = vpop.eup %4757 }
 0x2d5   : > { %v4760_v29 = vpop.eup %4759  ;;  %v1337_v40 = vmul.f32 %v4758_v8, %v4752_v59 }
 0x2d6   : > { %v4762_v9 = vpop.eup %4761 }
 0x2d7   : > { %v4764_v33 = vpop.eup %4763  ;;  %v1335_v50 = vmul.f32 %v4762_v9, %v6359_v20 }
 0x2d8   : > { %v1338_v1 = vmul.f32 %v4764_v33, %v4760_v29  ;;  %v1421_v46 = vpop.f32.mrb[12].mxu0  ;;  %v1464_v0 = vpop.f32.mrb[12].mxu1 }
 0x2d9   : > { %v4766_v57 = vpop.eup %4765  ;;  %v1339_v39 = vadd.f32 %v1337_v40, %v1335_v50  ;;  %v1473_v62 = vadd.f32 %v1421_v46, %v1379_v11  ;;  %v1423_v36 = vpop.f32.mrb[13].mxu0  ;;  %v4136_v11 = vld [vmem:[%s5981_s17 + $0xd8] sm:$0xff] }
 0x2da   : > { %v1466_v3 = vpop.f32.mrb[13].mxu1  ;;  %v1336_v59 = vmul.f32 %v4766_v57, %v6362_v27  ;;  %v1474_v4 = vadd.f32 %v1423_v36, %v1380_v28  ;;  %v1425_v8 = vpop.f32.mrb[14].mxu0  ;;  %v1385_v57 = vunpack.c.l.bf16 %v4136_v11 }
 0x2db   : > { %v1468_v26 = vpop.f32.mrb[14].mxu1  ;;  %4769 = vtanh.f32 %v1339_v39  ;;  %v4137_v7 = vmul.f32 -1.442695, %v1473_v62  ;;  %v1477_v29 = vadd.f32 %v1425_v8, %v1383_v35  ;;  %v1427_v9 = vpop.f32.mrb[15].mxu0  ;;  %v6544_v28 = vsel %vm1356_vm4, %v1339_v39, %v6359_v20 }
 0x2dc   : > { %v1470_v33 = vpop.f32.mrb[15].mxu1  ;;  %4771 = vrcp.f32 %v1320_v54  ;;  %v1340_v40 = vadd.f32 %v1338_v1, %v1336_v59  ;;  %v4138_v5 = vmul.f32 -1.442695, %v1474_v4  ;;  %v1478_v46 = vadd.f32 %v1427_v9, %v1384_v30  ;;  %7839 = vst [vmem:[#allocation56_spill] sm:$0xff] %v6544_v28  ;;  %v4768_v30 = vpop.eup %4767 }
 0x2dd   : > { %4773 = vpow2.f32 %v4137_v7  ;;  %v4140_v50 = vmul.f32 -1.442695, %v1477_v29  ;;  %v1382_v1 = vunpack.c.h.bf16 %v4134_v2  ;;  %v1475_v62 = vadd.f32 %v1464_v0, %v1381_v58 }
 0x2de   : > { %4775 = vtanh.f32 %v1340_v40  ;;  %v6549_v35 = vsel %vm1357_vm5, %v1340_v40, %v6362_v27  ;;  %v4141_v54 = vmul.f32 -1.442695, %v1478_v46  ;;  %v1479_v36 = vadd.f32 %v1468_v26, %v1385_v57 }
 0x2df   : > { %4777 = vpow2.f32 %v4138_v5  ;;  %v1476_v59 = vadd.f32 %v1466_v3, %v1382_v1  ;;  %v1386_v4 = vunpack.c.h.bf16 %v4136_v11  ;;  %v4139_v7 = vmul.f32 -1.442695, %v1475_v62  ;;  %v6578_v1 = vld [vmem:[#allocation12 + $0x20] ss:$16 sps:$4 sm:$0xff]   ;;  %v6581_v62 = vld [vmem:[#allocation12 + $0x28] ss:$16 sps:$4 sm:$0xff]  }
 0x2e0   : > { %4779 = vpow2.f32 %v4140_v50  ;;  %v4142_v9 = vmul.f32 -1.442695, %v1479_v36 }
 0x2e1   : > { %4781 = vpow2.f32 %v4141_v54  ;;  %v1480_v40 = vadd.f32 %v1470_v33, %v1386_v4 }
 0x2e2   : > { %4783 = vtanh.f32 %v1476_v59  ;;  %v6587_v59 = vld [vmem:[#allocation12 + $0x4c] ss:$16 sps:$4 sm:$0xff]  }
 0x2e3   : > { %4785 = vpow2.f32 %v4139_v7 }
 0x2e5   : > { %v4770_v8 = vpop.eup %4769 }
 0x2e6   : > { %v4772_v20 = vpop.eup %4771  ;;  %v1343_v39 = vmul.f32 %v4770_v8, %v4768_v30  ;;  %v6584_v30 = vld [vmem:[#allocation12 + $0x44] ss:$16 sps:$4 sm:$0xff]  }
 0x2e7   : > { %v4774_v29 = vpop.eup %4773 }
 0x2e8   : > { %v4776_v28 = vpop.eup %4775  ;;  %v1499_v27 = vadd.f32 1.0, %v4774_v29  ;;  %v6554_v3 = vsel %vm1356_vm4, %v1343_v39, %v6367_v15  ;;  %v6567_v15 = vld [vmem:[#allocation12 + $0x8] ss:$16 sps:$4 sm:$0xff]   ;;  %v6590_v29 = vld [vmem:[#allocation12 + $0x40] ss:$16 sps:$4 sm:$0xff]  }
 0x2e9   : > { %v1344_v2 = vmul.f32 %v4776_v28, %v4772_v20  ;;  %v4778_v0 = vpop.eup %4777  ;;  %v7840_v28 = vmov 0  }
 0x2ea   : > { %4787 = vrcp.f32 %v1499_v27  ;;  %v4780_v26 = vpop.eup %4779  ;;  %v1500_v5 = vadd.f32 1.0, %v4778_v0  ;;  %v6600_v0 = vld [vmem:[#allocation12 + $0x6c] ss:$16 sps:$4 sm:$0xff]  }
 0x2eb   : > { %4789 = vpow2.f32 %v4142_v9  ;;  %v6559_v11 = vsel %vm1357_vm5, %v1344_v2, %v6371_v14  ;;  %v1502_v58 = vadd.f32 1.0, %v4780_v26  ;;  %v4782_v50 = vpop.eup %4781  ;;  %v6570_v14 = vld [vmem:[#allocation12 + $0x24] ss:$16 sps:$4 sm:$0xff]   ;;  %v6593_v9 = vld [vmem:[#allocation12 + $0x48] ss:$16 sps:$4 sm:$0xff]  }
 0x2ec   : > { %4791 = vtanh.f32 %v1480_v40  ;;  %v1362_v33 = vpack.c.bf16 %v6559_v11, %v6554_v3  ;;  %v1503_v46 = vadd.f32 1.0, %v4782_v50  ;;  %v4784_v57 = vpop.eup %4783  ;;  %v6597_v2 = vld [vmem:[#allocation12 + $0x64] ss:$16 sps:$4 sm:$0xff]  }
 0x2ed   : > { %4793 = vrcp.f32 %v1500_v5  ;;  %v4786_v54 = vpop.eup %4785 }
 0x2ee   : > { %4795 = vrcp.f32 %v1502_v58  ;;  %4445 = vst [vmem:[%s5996_s30 + $0x8] sm:$0xff] %v1362_v33   ;;  %1604 = vmatmul.mubr.bf16.vlgmr.msra.gmra.mrb[16].mxu0 %v1362_v33  ;;  %1647 = vmatmul.mubr.bf16.vlgmr.msra.gmra.mrb[16].mxu1 %v1362_v33  ;;  %v1501_v39 = vadd.f32 1.0, %v4786_v54  ;;  %v1536_v58 = vpop.permute.xlu0 %1535  ;;  %v6607_v54 = vld [vmem:[#allocation12 + $0x68] ss:$16 sps:$4 sm:$0xff]  }
 0x2ef   : > { %1756 = vmatpush1.bf16.msra.mxu0 %v6564_v45  ;;  %1799 = vmatpush1.bf16.msra.mxu1 %v6567_v15  ;;  %4797 = vrcp.f32 %v1503_v46  ;;  %vm1540_vm6 = vcmp.eq.s32.totalorder %v1536_v58, 1  ;;  %v7854_v58 = vld [vmem:[#allocation54_spill] sm:$0xff] }
 0x2f0   : > { %1757 = vmatprep.subr.bf16.mxu0 %v6570_v14  ;;  %1800 = vmatprep.subr.bf16.mxu1 %v6573_v52  ;;  %4799 = vrcp.f32 %v1501_v39  ;;  %v6620_v39 = vld [vmem:[#allocation12 + $0x80] ss:$16 sps:$4 sm:$0xff]  }
 0x2f1   : > { %1787 = vmatprep.mubr.bf16.mxu0 %v7840_v28  ;;  %1830 = vmatprep.mubr.bf16.mxu1 %v7840_v28  ;;  %7842 = vst [vmem:[#allocation58_spill] sm:$0xff] %v6620_v39 }
 0x2f3   : > { %1758 = vmatpush1.bf16.msra.mxu0 %v6578_v1  ;;  %1801 = vmatpush1.bf16.msra.mxu1 %v6581_v62 }
 0x2f4   : > { %v4788_v36 = vpop.eup %4787  ;;  %1759 = vmatprep.subr.bf16.mxu0 %v6584_v30  ;;  %1802 = vmatprep.subr.bf16.mxu1 %v6587_v59 }
 0x2f5   : > { %v4790_v4 = vpop.eup %4789  ;;  %v1521_v8 = vmul.f32 %v4788_v36, %v4784_v57  ;;  %v6604_v57 = vld [vmem:[#allocation12 + $0x60] ss:$16 sps:$4 sm:$0xff]   ;;  %v6610_v36 = vld [vmem:[#allocation12 + $0x84] ss:$16 sps:$4 sm:$0xff]  }
 0x2f6   : > { %v4792_v7 = vpop.eup %4791  ;;  %v1504_v50 = vadd.f32 1.0, %v4790_v4 }
 0x2f7   : > { %v4794_v20 = vpop.eup %4793  ;;  %1760 = vmatpush1.bf16.msra.mxu0 %v6590_v29  ;;  %1803 = vmatpush1.bf16.msra.mxu1 %v6593_v9 }
 0x2f8   : > { %v4796_v27 = vpop.eup %4795  ;;  %v1519_v40 = vmul.f32 %v4794_v20, %v6395_v53  ;;  %1761 = vmatprep.subr.bf16.mxu0 %v6597_v2  ;;  %1804 = vmatprep.subr.bf16.mxu1 %v6600_v0 }
 0x2f9   : > { %v1522_v26 = vmul.f32 %v4796_v27, %v4792_v7  ;;  %v4798_v5 = vpop.eup %4797  ;;  %v6613_v7 = vld [vmem:[#allocation12 + $0x8c] ss:$16 sps:$4 sm:$0xff]   ;;  %v6623_v27 = vld [vmem:[#allocation12 + $0x88] ss:$16 sps:$4 sm:$0xff]  }
 0x2fa   : > { %v1523_v33 = vadd.f32 %v1521_v8, %v1519_v40  ;;  %v1520_v46 = vmul.f32 %v4798_v5, %v6398_v49  ;;  %7841 = vst [vmem:[#allocation57_spill] sm:$0xff] %v6613_v7  ;;  %v1539_v8 = vpop.permute.xlu1 %1538  ;;  %7843 = vst [vmem:[#allocation59_spill] sm:$0xff] %v6623_v27  ;;  %v6630_v5 = vld [vmem:[#allocation12 + $0xa4] ss:$16 sps:$4 sm:$0xff]  }
 0x2fb   : > { %1762 = vmatpush1.bf16.msra.mxu0 %v6604_v57  ;;  %1805 = vmatpush1.bf16.msra.mxu1 %v6607_v54  ;;  %vm1541_vm7 = vcmp.eq.s32.totalorder %v1539_v8, 1  ;;  %7844 = vst [vmem:[#allocation60_spill] sm:$0xff] %v6630_v5  ;;  %v6710_v8 = vld [vmem:[#allocation11 + $0xe8] ss:$16 sps:$4 sm:$0xff]  }
 0x2fc   : > { %4801 = vtanh.f32 %v1523_v33  ;;  %1763 = vmatprep.subr.bf16.mxu0 %v6610_v36  ;;  %1806 = vmatprep.subr.bf16.mxu1 %v6613_v7  ;;  %v6618_v4 = vsel %vm1540_vm6, %v1523_v33, %v6395_v53  ;;  %v1524_v20 = vadd.f32 %v1522_v26, %v1520_v46  ;;  %v6633_v53 = vld [vmem:[#allocation12 + $0xac] ss:$16 sps:$4 sm:$0xff]   ;;  %v6636_v26 = vld [vmem:[#allocation12 + $0xa0] ss:$16 sps:$4 sm:$0xff]   ;;  %v6639_v33 = vld [vmem:[#allocation12 + $0xa8] ss:$16 sps:$4 sm:$0xff]   ;;  %v4800_v46 = vpop.eup %4799 }
 0x2fd   : > { %4803 = vrcp.f32 %v1504_v50  ;;  %7845 = vst [vmem:[#allocation61_spill] sm:$0xff] %v6633_v53  ;;  %7846 = vst [vmem:[#allocation62_spill] sm:$0xff] %v6636_v26  ;;  %v6642_v50 = vld [vmem:[#allocation12 + $0xc4] ss:$16 sps:$4 sm:$0xff]   ;;  %v6660_v7 = vld [vmem:[#allocation12 + $0xe0] ss:$16 sps:$4 sm:$0xff]  }
 0x2fe   : > { %4805 = vtanh.f32 %v1524_v20  ;;  %v6628_v40 = vsel %vm1541_vm7, %v1524_v20, %v6398_v49  ;;  %7847 = vst [vmem:[#allocation63_spill] sm:$0xff] %v6639_v33  ;;  %7848 = vst [vmem:[#allocation64_spill] sm:$0xff] %v6642_v50  ;;  %v6645_v49 = vld [vmem:[#allocation12 + $0xcc] ss:$16 sps:$4 sm:$0xff]  }
 0x2ff   : > { %1764 = vmatpush1.bf16.msra.mxu0 %v6620_v39  ;;  %1807 = vmatpush1.bf16.msra.mxu1 %v6623_v27  ;;  %7849 = vst [vmem:[#allocation65_spill] sm:$0xff] %v6645_v49  ;;  %v6654_v27 = vld [vmem:[#allocation12 + $0xe4] ss:$16 sps:$4 sm:$0xff]   ;;  %7855 = vst [vmem:[#allocation68_spill] sm:$0xff] %v6710_v8 }
 0x300   : > { %1765 = vmatprep.subr.bf16.mxu0 %v6630_v5  ;;  %1808 = vmatprep.subr.bf16.mxu1 %v6633_v53  ;;  %v6648_v5 = vld [vmem:[#allocation12 + $0xc0] ss:$16 sps:$4 sm:$0xff]   ;;  %v6651_v53 = vld [vmem:[#allocation12 + $0xc8] ss:$16 sps:$4 sm:$0xff]  }
 0x301   : > { %7850 = vst [vmem:[#allocation66_spill] sm:$0xff] %v6648_v5 }
 0x303   : > { %1766 = vmatpush1.bf16.msra.mxu0 %v6636_v26  ;;  %1809 = vmatpush1.bf16.msra.mxu1 %v6639_v33 }
 0x304   : > { %1767 = vmatprep.subr.bf16.mxu0 %v6642_v50  ;;  %1810 = vmatprep.subr.bf16.mxu1 %v6645_v49  ;;  %v6657_v50 = vld [vmem:[#allocation12 + $0xec] ss:$16 sps:$4 sm:$0xff]  }
 0x306   : > { %v4802_v20 = vpop.eup %4801 }
 0x307   : > { %1768 = vmatpush1.bf16.msra.mxu0 %v6648_v5  ;;  %1811 = vmatpush1.bf16.msra.mxu1 %v6651_v53  ;;  %v1527_v26 = vmul.f32 %v4802_v20, %v4800_v46  ;;  %v4804_v33 = vpop.eup %4803  ;;  %v6663_v5 = vld [vmem:[#allocation12 + $0xe8] ss:$16 sps:$4 sm:$0xff]  }
 0x308   : > { %1769 = vmatprep.subr.bf16.mxu0 %v6654_v27  ;;  %1812 = vmatprep.subr.bf16.mxu1 %v6657_v50  ;;  %v4806_v49 = vpop.eup %4805  ;;  %7851 = vst [vmem:[#allocation67_spill] sm:$0xff] %v6663_v5 }
 0x309   : > { %v1528_v39 = vmul.f32 %v4806_v49, %v4804_v33  ;;  %v6668_v46 = vsel %vm1540_vm6, %v1527_v26, %v6416_v61  ;;  %v7852_v61 = vld [vmem:[#allocation52_spill] sm:$0xff]  ;;  %v4147_v49 = vld [vmem:[%s5971_s22 + $0x40] sm:$0xff] }
 0x30a   : > { %v6714_v26 = vld [vmem:[#allocation12 + $0xc] ss:$16 sps:$4 sm:$0xff]  }
 0x30b   : > { %1770 = vmatpush1.bf16.msra.mxu0 %v6660_v7  ;;  %1813 = vmatpush1.bf16.msra.mxu1 %v6663_v5  ;;  %v6672_v20 = vsel %vm1541_vm7, %v1528_v39, %v6420_v12  ;;  %v7853_v12 = vld [vmem:[#allocation53_spill] sm:$0xff]  ;;  %v7856_v39 = vld [vmem:[#allocation55_spill] sm:$0xff]  ;;  %7857 = vst [vmem:[#allocation69_spill] sm:$0xff] %v6714_v26 }
 0x30c   : > { %1939 = vmatprep.subr.bf16.mxu0 %v6424_v10  ;;  %1982 = vmatprep.subr.bf16.mxu1 %v6427_v60  ;;  %v1546_v33 = vpack.c.bf16 %v6672_v20, %v6668_v46 }
 0x30e   : > { %4446 = vst [vmem:[%s5998_s23 + $0x30] sm:$0xff] %v1546_v33   ;;  %1788 = vmatmul.mubr.bf16.vlgmr.msra.gmra.mrb[20].mxu0 %v1546_v33  ;;  %1831 = vmatmul.mubr.bf16.vlgmr.msra.gmra.mrb[20].mxu1 %v1546_v33  ;;  %v4149_v33 = vld [vmem:[%s5971_s22 + $0x50] sm:$0xff] }
 0x30f   : > { %1940 = vmatpush1.bf16.msra.mxu0 %v6431_v55  ;;  %1983 = vmatpush1.bf16.msra.mxu1 %v6434_v51 }
 0x310   : > { %1941 = vmatprep.subr.bf16.mxu0 %v6437_v63  ;;  %1984 = vmatprep.subr.bf16.mxu1 %v6440_v56 }
 0x311   : > { %1971 = vmatprep.mubr.bf16.mxu0 %v7840_v28  ;;  %2014 = vmatprep.mubr.bf16.mxu1 %v7840_v28 }
 0x313   : > { %1942 = vmatpush1.bf16.msra.mxu0 %v6445_v13  ;;  %1985 = vmatpush1.bf16.msra.mxu1 %v6448_v16 }
 0x314   : > { %1943 = vmatprep.subr.bf16.mxu0 %v6451_v17  ;;  %1986 = vmatprep.subr.bf16.mxu1 %v6454_v18 }
 0x317   : > { %1944 = vmatpush1.bf16.msra.mxu0 %v6457_v19  ;;  %1987 = vmatpush1.bf16.msra.mxu1 %v6460_v31 }
 0x318   : > { %1945 = vmatprep.subr.bf16.mxu0 %v6463_v32  ;;  %1988 = vmatprep.subr.bf16.mxu1 %v6466_v34 }
 0x31b   : > { %1946 = vmatpush1.bf16.msra.mxu0 %v6469_v6  ;;  %1989 = vmatpush1.bf16.msra.mxu1 %v6472_v37 }
 0x31c   : > { %1947 = vmatprep.subr.bf16.mxu0 %v6475_v38  ;;  %1990 = vmatprep.subr.bf16.mxu1 %v6478_v43 }
 0x31f   : > { %1948 = vmatpush1.bf16.msra.mxu0 %v6481_v44  ;;  %1991 = vmatpush1.bf16.msra.mxu1 %v6484_v21 }
 0x320   : > { %1949 = vmatprep.subr.bf16.mxu0 %v6487_v22  ;;  %1992 = vmatprep.subr.bf16.mxu1 %v6490_v23 }
 0x323   : > { %1950 = vmatpush1.bf16.msra.mxu0 %v6493_v41  ;;  %1993 = vmatpush1.bf16.msra.mxu1 %v6496_v24  ;;  %v4148_v24 = vld [vmem:[%s5971_s22 + $0x48] sm:$0xff] }
 0x324   : > { %1951 = vmatprep.subr.bf16.mxu0 %v6499_v47  ;;  %1994 = vmatprep.subr.bf16.mxu1 %v6502_v25  ;;  %v1568_v47 = vunpack.c.h.bf16 %v4149_v33  ;;  %v1565_v37 = vunpack.c.l.bf16 %v4148_v24 }
 0x327   : > { %1952 = vmatpush1.bf16.msra.mxu0 %v6505_v42  ;;  %1995 = vmatpush1.bf16.msra.mxu1 %v6508_v48  ;;  %v1563_v48 = vunpack.c.l.bf16 %v4147_v49  ;;  %v1567_v42 = vunpack.c.l.bf16 %v4149_v33 }
 0x328   : > { %1953 = vmatprep.subr.bf16.mxu0 %v7852_v61  ;;  %1996 = vmatprep.subr.bf16.mxu1 %v7853_v12  ;;  %v1564_v61 = vunpack.c.h.bf16 %v4147_v49 }
 0x32b   : > { %1954 = vmatpush1.bf16.msra.mxu0 %v7854_v58  ;;  %1997 = vmatpush1.bf16.msra.mxu1 %v6710_v8 }
 0x32c   : > { %2123 = vmatprep.subr.bf16.mxu0 %v7856_v39  ;;  %2166 = vmatprep.subr.bf16.mxu1 %v6714_v26  ;;  %v4150_v39 = vld [vmem:[%s5971_s22 + $0x58] sm:$0xff] }
 0x32d   : > { %v1569_v32 = vunpack.c.l.bf16 %v4150_v39 }
 0x3c1   : > { %v1605_v12 = vpop.f32.mrb[16].mxu0  ;;  %v1648_v25 = vpop.f32.mrb[16].mxu1 }
 0x3c2   : > { %v1657_v58 = vadd.f32 %v1605_v12, %v1563_v48  ;;  %v1607_v41 = vpop.f32.mrb[17].mxu0  ;;  %v1650_v23 = vpop.f32.mrb[17].mxu1  ;;  %v1566_v48 = vunpack.c.h.bf16 %v4148_v24  ;;  %v1659_v12 = vadd.f32 %v1648_v25, %v1565_v37  ;;  %v4163_v25 = vld [vmem:[%s5981_s17 + $0xb0] sm:$0xff] }
 0x3c3   : > { %v1658_v8 = vadd.f32 %v1607_v41, %v1564_v61  ;;  %v1609_v22 = vpop.f32.mrb[18].mxu0  ;;  %v1652_v21 = vpop.f32.mrb[18].mxu1  ;;  %v1570_v61 = vunpack.c.h.bf16 %v4150_v39 }
 0x3c4   : > { %v4151_v44 = vmul.f32 -1.442695, %v1657_v58  ;;  %v1661_v43 = vadd.f32 %v1609_v22, %v1567_v42  ;;  %v1611_v38 = vpop.f32.mrb[19].mxu0  ;;  %v1654_v26 = vpop.f32.mrb[19].mxu1  ;;  %v1663_v33 = vadd.f32 %v1652_v21, %v1569_v32  ;;  %v1660_v41 = vadd.f32 %v1650_v23, %v1566_v48  ;;  %v4161_v23 = vld [vmem:[%s5981_s17 + $0xa0] sm:$0xff] }
 0x3c5   : > { %v4152_v6 = vmul.f32 -1.442695, %v1658_v8  ;;  %v1662_v34 = vadd.f32 %v1611_v38, %v1568_v47  ;;  %v4153_v19 = vmul.f32 -1.442695, %v1659_v12  ;;  %v1664_v42 = vadd.f32 %v1654_v26, %v1570_v61 }
 0x3c6   : > { %4807 = vpow2.f32 %v4151_v44  ;;  %v4154_v49 = vmul.f32 -1.442695, %v1661_v43  ;;  %v4156_v58 = vmul.f32 -1.442695, %v1663_v33  ;;  %v1748_v12 = vunpack.c.h.bf16 %v4161_v23  ;;  %v6724_v33 = vpop.permute.xlu0 %1719 }
 0x3c7   : > { %v4155_v31 = vmul.f32 -1.442695, %v1662_v34  ;;  %4809 = vpow2.f32 %v4152_v6  ;;  %vm1724_vm8 = vcmp.eq.s32.totalorder %v6724_v33, 1 }
 0x3c8   : > { %4811 = vpow2.f32 %v4154_v49  ;;  %v7858_v49 = vld [vmem:[#allocation56_spill] sm:$0xff] }
 0x3c9   : > { %4813 = vpow2.f32 %v4155_v31 }
 0x3ca   : > { %4815 = vtanh.f32 %v1660_v41  ;;  %v6726_v41 = vpop.permute.xlu1 %1722 }
 0x3cb   : > { %4817 = vpow2.f32 %v4153_v19  ;;  %vm1725_vm9 = vcmp.eq.s32.totalorder %v6726_v41, 1 }
 0x3cc   : > { %4819 = vpow2.f32 %v4156_v58  ;;  %v1751_v58 = vunpack.c.l.bf16 %v4163_v25 }
 0x3d0   : > { %v4808_v22 = vpop.eup %4807 }
 0x3d1   : > { %v1683_v18 = vadd.f32 1.0, %v4808_v22  ;;  %v4810_v38 = vpop.eup %4809 }
 0x3d2   : > { %v4812_v43 = vpop.eup %4811  ;;  %v1684_v34 = vadd.f32 1.0, %v4810_v38 }
 0x3d3   : > { %4821 = vrcp.f32 %v1683_v18  ;;  %v1686_v6 = vadd.f32 1.0, %v4812_v43  ;;  %v4814_v32 = vpop.eup %4813  ;;  %v1747_v18 = vunpack.c.l.bf16 %v4161_v23  ;;  %v4162_v23 = vld [vmem:[%s5981_s17 + $0xa8] sm:$0xff] }
 0x3d4   : > { %4823 = vtanh.f32 %v1664_v42  ;;  %v1687_v31 = vadd.f32 1.0, %v4814_v32  ;;  %v4816_v37 = vpop.eup %4815 }
 0x3d5   : > { %4825 = vrcp.f32 %v1684_v34  ;;  %v4818_v44 = vpop.eup %4817 }
 0x3d6   : > { %4827 = vrcp.f32 %v1686_v6  ;;  %v4820_v21 = vpop.eup %4819  ;;  %v1685_v39 = vadd.f32 1.0, %v4818_v44  ;;  %v1752_v6 = vunpack.c.h.bf16 %v4163_v25 }
 0x3d7   : > { %4829 = vrcp.f32 %v1687_v31  ;;  %v1688_v38 = vadd.f32 1.0, %v4820_v21 }
 0x3d8   : > { %4831 = vrcp.f32 %v1685_v39 }
 0x3dd   : > { %v4822_v24 = vpop.eup %4821 }
 0x3de   : > { %v4824_v19 = vpop.eup %4823  ;;  %v1705_v47 = vmul.f32 %v4822_v24, %v4816_v37 }
 0x3df   : > { %v4826_v8 = vpop.eup %4825 }
 0x3e0   : > { %v4828_v26 = vpop.eup %4827  ;;  %v1703_v48 = vmul.f32 %v4826_v8, %v7858_v49 }
 0x3e1   : > { %v1706_v61 = vmul.f32 %v4828_v26, %v4824_v19  ;;  %v4830_v22 = vpop.eup %4829  ;;  %v1789_v43 = vpop.f32.mrb[20].mxu0 }
 0x3e2   : > { %v1707_v42 = vadd.f32 %v1705_v47, %v1703_v48  ;;  %v1832_v34 = vpop.f32.mrb[20].mxu1  ;;  %v1704_v32 = vmul.f32 %v4830_v22, %v6549_v35  ;;  %v1841_v31 = vadd.f32 %v1789_v43, %v1747_v18  ;;  %v1791_v37 = vpop.f32.mrb[21].mxu0  ;;  %v4164_v48 = vld [vmem:[%s5981_s17 + $0xb8] sm:$0xff] }
 0x3e3   : > { %v1834_v44 = vpop.f32.mrb[21].mxu1  ;;  %v1842_v24 = vadd.f32 %v1791_v37, %v1748_v12  ;;  %v1793_v19 = vpop.f32.mrb[22].mxu0  ;;  %v1749_v12 = vunpack.c.l.bf16 %v4162_v23 }
 0x3e4   : > { %4833 = vtanh.f32 %v1707_v42  ;;  %v1836_v8 = vpop.f32.mrb[22].mxu1  ;;  %v6734_v21 = vsel %vm1724_vm8, %v1707_v42, %v7858_v49  ;;  %v1708_v47 = vadd.f32 %v1706_v61, %v1704_v32  ;;  %v4165_v25 = vmul.f32 -1.442695, %v1841_v31  ;;  %v1795_v39 = vpop.f32.mrb[23].mxu0 }
 0x3e5   : > { %7859 = vst [vmem:[#allocation56_spill] sm:$0xff] %v6734_v21  ;;  %v1845_v26 = vadd.f32 %v1793_v19, %v1751_v58  ;;  %v1838_v17 = vpop.f32.mrb[23].mxu1  ;;  %4835 = vrcp.f32 %v1688_v38  ;;  %v4166_v18 = vmul.f32 -1.442695, %v1842_v24  ;;  %v1846_v22 = vadd.f32 %v1795_v39, %v1752_v6  ;;  %v4832_v31 = vpop.eup %4831 }
 0x3e6   : > { %4837 = vtanh.f32 %v1708_v47  ;;  %v6741_v37 = vsel %vm1725_vm9, %v1708_v47, %v6549_v35  ;;  %v1753_v49 = vunpack.c.l.bf16 %v4164_v48  ;;  %v1750_v58 = vunpack.c.h.bf16 %v4162_v23 }
 0x3e7   : > { %v4168_v43 = vmul.f32 -1.442695, %v1845_v26  ;;  %4839 = vpow2.f32 %v4165_v25  ;;  %v4169_v61 = vmul.f32 -1.442695, %v1846_v22  ;;  %v1843_v42 = vadd.f32 %v1832_v34, %v1749_v12 }
 0x3e8   : > { %4841 = vpow2.f32 %v4166_v18  ;;  %v1847_v32 = vadd.f32 %v1836_v8, %v1753_v49  ;;  %v1844_v6 = vadd.f32 %v1834_v44, %v1750_v58  ;;  %v1754_v24 = vunpack.c.h.bf16 %v4164_v48 }
 0x3e9   : > { %4843 = vpow2.f32 %v4168_v43  ;;  %v4167_v19 = vmul.f32 -1.442695, %v1843_v42 }
 0x3ea   : > { %4845 = vpow2.f32 %v4169_v61  ;;  %v4170_v21 = vmul.f32 -1.442695, %v1847_v32  ;;  %v1848_v47 = vadd.f32 %v1838_v17, %v1754_v24 }
 0x3eb   : > { %4847 = vtanh.f32 %v1844_v6 }
 0x3ec   : > { %4849 = vpow2.f32 %v4167_v19 }
 0x3ed   : > { %4851 = vpow2.f32 %v4170_v21 }
 0x3ee   : > { %v4834_v38 = vpop.eup %4833 }
 0x3ef   : > { %v1711_v26 = vmul.f32 %v4834_v38, %v4832_v31  ;;  %v4836_v39 = vpop.eup %4835  ;;  %v1904_v38 = vpop.permute.xlu0 %1903 }
 0x3f0   : > { %v4838_v16 = vpop.eup %4837  ;;  %vm1908_vm10 = vcmp.eq.s32.totalorder %v1904_v38, 1  ;;  %v7885_v38 = vld [vmem:[#allocation43_spill] sm:$0xff] }
 0x3f1   : > { %v4840_v35 = vpop.eup %4839  ;;  %v1712_v25 = vmul.f32 %v4838_v16, %v4836_v39  ;;  %v6746_v23 = vsel %vm1724_vm8, %v1711_v26, %v6554_v3  ;;  %v7860_v26 = vld [vmem:[#allocation57_spill] sm:$0xff] }
 0x3f2   : > { %v1867_v18 = vadd.f32 1.0, %v4840_v35  ;;  %v4842_v34 = vpop.eup %4841  ;;  %v1907_v35 = vpop.permute.xlu1 %1906 }
 0x3f3   : > { %v6751_v44 = vsel %vm1725_vm9, %v1712_v25, %v6559_v11  ;;  %v4844_v8 = vpop.eup %4843  ;;  %v1868_v48 = vadd.f32 1.0, %v4842_v34  ;;  %vm1909_vm11 = vcmp.eq.s32.totalorder %v1907_v35, 1  ;;  %v7861_v25 = vld [vmem:[#allocation58_spill] sm:$0xff]  ;;  %v7863_v34 = vld [vmem:[#allocation60_spill] sm:$0xff] }
 0x3f4   : > { %4853 = vrcp.f32 %v1867_v18  ;;  %v1730_v16 = vpack.c.bf16 %v6751_v44, %v6746_v23  ;;  %v1870_v17 = vadd.f32 1.0, %v4844_v8  ;;  %v4846_v22 = vpop.eup %4845  ;;  %v7862_v18 = vld [vmem:[#allocation59_spill] sm:$0xff]  ;;  %v7864_v8 = vld [vmem:[#allocation61_spill] sm:$0xff]  ;;  %v7889_v35 = vld [vmem:[#allocation48_spill] sm:$0xff] }
 0x3f5   : > { %4855 = vtanh.f32 %v1848_v47  ;;  %v1871_v3 = vadd.f32 1.0, %v4846_v22  ;;  %v4848_v11 = vpop.eup %4847  ;;  %v7868_v22 = vld [vmem:[#allocation65_spill] sm:$0xff] }
 0x3f6   : > { %4857 = vrcp.f32 %v1868_v48  ;;  %4447 = vst [vmem:[%s5996_s30 + $0x10] sm:$0xff] %v1730_v16   ;;  %1972 = vmatmul.mubr.bf16.vlgmr.msra.gmra.mrb[24].mxu0 %v1730_v16  ;;  %2015 = vmatmul.mubr.bf16.vlgmr.msra.gmra.mrb[24].mxu1 %v1730_v16  ;;  %v4850_v33 = vpop.eup %4849  ;;  %v7865_v16 = vld [vmem:[#allocation62_spill] sm:$0xff] }
 0x3f7   : > { %4859 = vrcp.f32 %v1870_v17  ;;  %2124 = vmatpush1.bf16.msra.mxu0 %v6564_v45  ;;  %2167 = vmatpush1.bf16.msra.mxu1 %v6567_v15  ;;  %v4852_v41 = vpop.eup %4851  ;;  %v1869_v61 = vadd.f32 1.0, %v4850_v33  ;;  %v7867_v17 = vld [vmem:[#allocation64_spill] sm:$0xff]  ;;  %v7869_v33 = vld [vmem:[#allocation66_spill] sm:$0xff] }
 0x3f8   : > { %2125 = vmatprep.subr.bf16.mxu0 %v6570_v14  ;;  %2168 = vmatprep.subr.bf16.mxu1 %v6573_v52  ;;  %4861 = vrcp.f32 %v1871_v3  ;;  %v1872_v24 = vadd.f32 1.0, %v4852_v41 }
 0x3f9   : > { %2155 = vmatprep.mubr.bf16.mxu0 %v7840_v28  ;;  %2198 = vmatprep.mubr.bf16.mxu1 %v7840_v28  ;;  %4863 = vrcp.f32 %v1869_v61 }
 0x3fb   : > { %2126 = vmatpush1.bf16.msra.mxu0 %v6578_v1  ;;  %2169 = vmatpush1.bf16.msra.mxu1 %v6581_v62 }
 0x3fc   : > { %2127 = vmatprep.subr.bf16.mxu0 %v6584_v30  ;;  %2170 = vmatprep.subr.bf16.mxu1 %v6587_v59 }
 0x3fe   : > { %v4854_v21 = vpop.eup %4853 }
 0x3ff   : > { %v4856_v12 = vpop.eup %4855  ;;  %v1889_v43 = vmul.f32 %v4854_v21, %v4848_v11  ;;  %2128 = vmatpush1.bf16.msra.mxu0 %v6590_v29  ;;  %2171 = vmatpush1.bf16.msra.mxu1 %v6593_v9 }
 0x400   : > { %v4858_v49 = vpop.eup %4857  ;;  %2129 = vmatprep.subr.bf16.mxu0 %v6597_v2  ;;  %2172 = vmatprep.subr.bf16.mxu1 %v6600_v0 }
 0x401   : > { %v4860_v58 = vpop.eup %4859  ;;  %v1887_v42 = vmul.f32 %v4858_v49, %v6618_v4 }
 0x402   : > { %v1890_v32 = vmul.f32 %v4860_v58, %v4856_v12  ;;  %v4862_v31 = vpop.eup %4861  ;;  %v7880_v58 = vld [vmem:[#allocation36_spill] sm:$0xff] }
 0x403   : > { %v1891_v6 = vadd.f32 %v1889_v43, %v1887_v42  ;;  %2130 = vmatpush1.bf16.msra.mxu0 %v6604_v57  ;;  %2173 = vmatpush1.bf16.msra.mxu1 %v6607_v54  ;;  %v1888_v19 = vmul.f32 %v4862_v31, %v6628_v40  ;;  %v4864_v3 = vpop.eup %4863  ;;  %v7881_v42 = vld [vmem:[#allocation42_spill] sm:$0xff]  ;;  %v7884_v31 = vld [vmem:[#allocation45_spill] sm:$0xff] }
 0x404   : > { %2131 = vmatprep.subr.bf16.mxu0 %v6610_v36  ;;  %2174 = vmatprep.subr.bf16.mxu1 %v7860_v26 }
 0x405   : > { %4865 = vtanh.f32 %v1891_v6  ;;  %v6778_v39 = vsel %vm1908_vm10, %v1891_v6, %v6618_v4  ;;  %v1892_v47 = vadd.f32 %v1890_v32, %v1888_v19  ;;  %v7866_v4 = vld [vmem:[#allocation63_spill] sm:$0xff]  ;;  %v7883_v32 = vld [vmem:[#allocation40_spill] sm:$0xff] }
 0x406   : > { %4867 = vrcp.f32 %v1872_v24  ;;  %v7886_v6 = vld [vmem:[#allocation44_spill] sm:$0xff]  ;;  %v7887_v24 = vld [vmem:[#allocation46_spill] sm:$0xff]  ;;  %v7888_v19 = vld [vmem:[#allocation47_spill] sm:$0xff] }
 0x407   : > { %2132 = vmatpush1.bf16.msra.mxu0 %v7861_v25  ;;  %2175 = vmatpush1.bf16.msra.mxu1 %v7862_v18  ;;  %4869 = vtanh.f32 %v1892_v47  ;;  %v6786_v48 = vsel %vm1909_vm11, %v1892_v47, %v6628_v40  ;;  %v7890_v47 = vld [vmem:[#allocation49_spill] sm:$0xff] }
 0x408   : > { %2133 = vmatprep.subr.bf16.mxu0 %v7863_v34  ;;  %2176 = vmatprep.subr.bf16.mxu1 %v7864_v8 }
 0x40b   : > { %2134 = vmatpush1.bf16.msra.mxu0 %v7865_v16  ;;  %2177 = vmatpush1.bf16.msra.mxu1 %v7866_v4 }
 0x40c   : > { %2135 = vmatprep.subr.bf16.mxu0 %v7867_v17  ;;  %2178 = vmatprep.subr.bf16.mxu1 %v7868_v22 }
 0x40f   : > { %v4866_v11 = vpop.eup %4865  ;;  %2136 = vmatpush1.bf16.msra.mxu0 %v7869_v33  ;;  %2179 = vmatpush1.bf16.msra.mxu1 %v6651_v53 }
 0x410   : > { %2137 = vmatprep.subr.bf16.mxu0 %v6654_v27  ;;  %2180 = vmatprep.subr.bf16.mxu1 %v6657_v50  ;;  %v1895_v40 = vmul.f32 %v4866_v11, %v4864_v3  ;;  %v4868_v41 = vpop.eup %4867  ;;  %v7891_v3 = vld [vmem:[#allocation50_spill] sm:$0xff]  ;;  %v7892_v11 = vld [vmem:[#allocation51_spill] sm:$0xff] }
 0x411   : > { %v4870_v21 = vpop.eup %4869 }
 0x412   : > { %v1896_v12 = vmul.f32 %v4870_v21, %v4868_v41  ;;  %v6802_v43 = vsel %vm1908_vm10, %v1895_v40, %v6668_v46  ;;  %v7874_v46 = vld [vmem:[#allocation32_spill] sm:$0xff]  ;;  %v7894_v41 = vld [vmem:[#allocation53_spill] sm:$0xff]  ;;  %v7895_v21 = vld [vmem:[#allocation54_spill] sm:$0xff] }
 0x413   : > { %2138 = vmatpush1.bf16.msra.mxu0 %v6660_v7  ;;  %2181 = vmatpush1.bf16.msra.mxu1 %v6663_v5  ;;  %7870 = vst [vmem:[#allocation57_spill] sm:$0xff] %v6802_v43  ;;  %v7893_v40 = vld [vmem:[#allocation52_spill] sm:$0xff] }
 0x414   : > { %2307 = vmatprep.subr.bf16.mxu0 %v6424_v10  ;;  %2350 = vmatprep.subr.bf16.mxu1 %v6427_v60  ;;  %v6806_v49 = vsel %vm1909_vm11, %v1896_v12, %v6672_v20  ;;  %v7872_v10 = vld [vmem:[#allocation31_spill] sm:$0xff]  ;;  %v7873_v60 = vld [vmem:[#allocation34_spill] sm:$0xff]  ;;  %v7875_v20 = vld [vmem:[#allocation37_spill] sm:$0xff] }
 0x415   : > { %7871 = vst [vmem:[#allocation58_spill] sm:$0xff] %v6806_v49  ;;  %v1914_v61 = vpack.c.bf16 %v6806_v49, %v6802_v43  ;;  %v7896_v12 = vld [vmem:[#allocation68_spill] sm:$0xff] }
 0x417   : > { %4448 = vst [vmem:[%s5998_s23 + $0x28] sm:$0xff] %v1914_v61   ;;  %2156 = vmatmul.mubr.bf16.vlgmr.msra.gmra.mrb[28].mxu0 %v1914_v61  ;;  %2199 = vmatmul.mubr.bf16.vlgmr.msra.gmra.mrb[28].mxu1 %v1914_v61  ;;  %v7897_v61 = vld [vmem:[#allocation55_spill] sm:$0xff] }
 0x418   : > { %2308 = vmatpush1.bf16.msra.mxu0 %v6431_v55  ;;  %2351 = vmatpush1.bf16.msra.mxu1 %v6434_v51  ;;  %v7876_v55 = vld [vmem:[#allocation33_spill] sm:$0xff]  ;;  %v7877_v51 = vld [vmem:[#allocation38_spill] sm:$0xff] }
 0x419   : > { %2309 = vmatprep.subr.bf16.mxu0 %v6437_v63  ;;  %2352 = vmatprep.subr.bf16.mxu1 %v6440_v56  ;;  %v7878_v63 = vld [vmem:[#allocation35_spill] sm:$0xff]  ;;  %v7879_v56 = vld [vmem:[#allocation41_spill] sm:$0xff] }
 0x41a   : > { %2339 = vmatprep.mubr.bf16.mxu0 %v7840_v28  ;;  %2382 = vmatprep.mubr.bf16.mxu1 %v7840_v28 }
 0x41c   : > { %2310 = vmatpush1.bf16.msra.mxu0 %v6445_v13  ;;  %2353 = vmatpush1.bf16.msra.mxu1 %v7872_v10  ;;  %v7882_v13 = vld [vmem:[#allocation39_spill] sm:$0xff]  ;;  %v7898_v10 = vld [vmem:[#allocation69_spill] sm:$0xff] }
 0x41d   : > { %2311 = vmatprep.subr.bf16.mxu0 %v7873_v60  ;;  %2354 = vmatprep.subr.bf16.mxu1 %v7874_v46  ;;  %v4175_v60 = vld [vmem:[%s5971_s22 + $0x60] sm:$0xff]  ;;  %v4177_v46 = vld [vmem:[%s5971_s22 + $0x70] sm:$0xff] }
 0x420   : > { %2312 = vmatpush1.bf16.msra.mxu0 %v7875_v20  ;;  %2355 = vmatpush1.bf16.msra.mxu1 %v7876_v55  ;;  %v1931_v20 = vunpack.c.l.bf16 %v4175_v60  ;;  %v1932_v55 = vunpack.c.h.bf16 %v4175_v60 }
 0x421   : > { %2313 = vmatprep.subr.bf16.mxu0 %v7877_v51  ;;  %2356 = vmatprep.subr.bf16.mxu1 %v7878_v63  ;;  %v1935_v51 = vunpack.c.l.bf16 %v4177_v46 }
 0x424   : > { %2314 = vmatpush1.bf16.msra.mxu0 %v7879_v56  ;;  %2357 = vmatpush1.bf16.msra.mxu1 %v7880_v58  ;;  %v1936_v58 = vunpack.c.h.bf16 %v4177_v46 }
 0x425   : > { %2315 = vmatprep.subr.bf16.mxu0 %v7881_v42  ;;  %2358 = vmatprep.subr.bf16.mxu1 %v7882_v13  ;;  %v4176_v13 = vld [vmem:[%s5971_s22 + $0x68] sm:$0xff] }
 0x426   : > { %v1934_v46 = vunpack.c.h.bf16 %v4176_v13 }
 0x428   : > { %2316 = vmatpush1.bf16.msra.mxu0 %v7883_v32  ;;  %2359 = vmatpush1.bf16.msra.mxu1 %v7884_v31 }
 0x429   : > { %2317 = vmatprep.subr.bf16.mxu0 %v7885_v38  ;;  %2360 = vmatprep.subr.bf16.mxu1 %v7886_v6 }
 0x42c   : > { %2318 = vmatpush1.bf16.msra.mxu0 %v7887_v24  ;;  %2361 = vmatpush1.bf16.msra.mxu1 %v7888_v19  ;;  %v4178_v24 = vld [vmem:[%s5971_s22 + $0x78] sm:$0xff] }
 0x42d   : > { %2319 = vmatprep.subr.bf16.mxu0 %v7889_v35  ;;  %2362 = vmatprep.subr.bf16.mxu1 %v7890_v47  ;;  %v1937_v60 = vunpack.c.l.bf16 %v4178_v24 }
 0x430   : > { %2320 = vmatpush1.bf16.msra.mxu0 %v7891_v3  ;;  %2363 = vmatpush1.bf16.msra.mxu1 %v7892_v11 }
 0x431   : > { %2321 = vmatprep.subr.bf16.mxu0 %v7893_v40  ;;  %2364 = vmatprep.subr.bf16.mxu1 %v7894_v41  ;;  %v1933_v40 = vunpack.c.l.bf16 %v4176_v13 }
 0x434   : > { %2322 = vmatpush1.bf16.msra.mxu0 %v7895_v21  ;;  %2365 = vmatpush1.bf16.msra.mxu1 %v7896_v12 }
 0x435   : > { %2491 = vmatprep.subr.bf16.mxu0 %v7897_v61  ;;  %2534 = vmatprep.subr.bf16.mxu1 %v7898_v10 }
 0x4c9   : > { %v1973_v63 = vpop.f32.mrb[24].mxu0  ;;  %v2016_v56 = vpop.f32.mrb[24].mxu1 }
 0x4ca   : > { %v2025_v42 = vadd.f32 %v1973_v63, %v1931_v20  ;;  %v1975_v32 = vpop.f32.mrb[25].mxu0  ;;  %v2018_v31 = vpop.f32.mrb[25].mxu1  ;;  %v2027_v20 = vadd.f32 %v2016_v56, %v1933_v40 }
 0x4cb   : > { %v2026_v38 = vadd.f32 %v1975_v32, %v1932_v55  ;;  %v1977_v6 = vpop.f32.mrb[26].mxu0  ;;  %v2020_v19 = vpop.f32.mrb[26].mxu1  ;;  %v2028_v55 = vadd.f32 %v2018_v31, %v1934_v46  ;;  %v1938_v32 = vunpack.c.h.bf16 %v4178_v24 }
 0x4cc   : > { %v4179_v35 = vmul.f32 -1.442695, %v2025_v42  ;;  %v2029_v47 = vadd.f32 %v1977_v6, %v1935_v51  ;;  %v1979_v3 = vpop.f32.mrb[27].mxu0  ;;  %v2022_v11 = vpop.f32.mrb[27].mxu1  ;;  %v2031_v63 = vadd.f32 %v2020_v19, %v1937_v60  ;;  %v4181_v12 = vmul.f32 -1.442695, %v2027_v20 }
 0x4cd   : > { %v4180_v41 = vmul.f32 -1.442695, %v2026_v38  ;;  %v2030_v21 = vadd.f32 %v1979_v3, %v1936_v58  ;;  %v2032_v6 = vadd.f32 %v2022_v11, %v1938_v32  ;;  %v4189_v3 = vld [vmem:[%s5981_s17 + $0x80] sm:$0xff]  ;;  %v2088_v32 = vpop.permute.xlu0 %2087 }
 0x4ce   : > { %4871 = vpow2.f32 %v4179_v35  ;;  %v4182_v61 = vmul.f32 -1.442695, %v2029_v47  ;;  %v4184_v42 = vmul.f32 -1.442695, %v2031_v63  ;;  %v2115_v46 = vunpack.c.l.bf16 %v4189_v3 }
 0x4cf   : > { %v4183_v10 = vmul.f32 -1.442695, %v2030_v21  ;;  %4873 = vpow2.f32 %v4180_v41  ;;  %v4191_v21 = vld [vmem:[%s5981_s17 + $0x90] sm:$0xff]  ;;  %v2116_v63 = vunpack.c.h.bf16 %v4189_v3  ;;  %vm2092_vm12 = vcmp.eq.s32.totalorder %v2088_v32, 1 }
 0x4d0   : > { %4875 = vpow2.f32 %v4182_v61  ;;  %v7899_v61 = vld [vmem:[#allocation56_spill] sm:$0xff] }
 0x4d1   : > { %4877 = vpow2.f32 %v4183_v10 }
 0x4d2   : > { %4879 = vtanh.f32 %v2028_v55 }
 0x4d3   : > { %4881 = vpow2.f32 %v4181_v12 }
 0x4d4   : > { %4883 = vpow2.f32 %v4184_v42  ;;  %v2091_v42 = vpop.permute.xlu1 %2090 }
 0x4d5   : > { %vm2093_vm13 = vcmp.eq.s32.totalorder %v2091_v42, 1 }
 0x4d8   : > { %v4872_v51 = vpop.eup %4871 }
 0x4d9   : > { %v2051_v49 = vadd.f32 1.0, %v4872_v51  ;;  %v4874_v58 = vpop.eup %4873 }
 0x4da   : > { %v4876_v38 = vpop.eup %4875  ;;  %v2052_v35 = vadd.f32 1.0, %v4874_v58  ;;  %v2119_v58 = vunpack.c.l.bf16 %v4191_v21 }
 0x4db   : > { %4885 = vrcp.f32 %v2051_v49  ;;  %v2054_v13 = vadd.f32 1.0, %v4876_v38  ;;  %v4878_v56 = vpop.eup %4877 }
 0x4dc   : > { %4887 = vtanh.f32 %v2032_v6  ;;  %v2055_v10 = vadd.f32 1.0, %v4878_v56  ;;  %v4880_v31 = vpop.eup %4879  ;;  %v2120_v56 = vunpack.c.h.bf16 %v4191_v21 }
 0x4dd   : > { %4889 = vrcp.f32 %v2052_v35  ;;  %v4882_v24 = vpop.eup %4881 }
 0x4de   : > { %4891 = vrcp.f32 %v2054_v13  ;;  %v4884_v19 = vpop.eup %4883  ;;  %v2053_v41 = vadd.f32 1.0, %v4882_v24 }
 0x4df   : > { %4893 = vrcp.f32 %v2055_v10  ;;  %v2056_v6 = vadd.f32 1.0, %v4884_v19 }
 0x4e0   : > { %4895 = vrcp.f32 %v2053_v41 }
 0x4e5   : > { %v4886_v47 = vpop.eup %4885 }
 0x4e6   : > { %v4888_v12 = vpop.eup %4887  ;;  %v2073_v11 = vmul.f32 %v4886_v47, %v4880_v31  ;;  %v4190_v31 = vld [vmem:[%s5981_s17 + $0x88] sm:$0xff] }
 0x4e7   : > { %v4890_v40 = vpop.eup %4889 }
 0x4e8   : > { %v4892_v49 = vpop.eup %4891  ;;  %v2071_v60 = vmul.f32 %v4890_v40, %v7899_v61 }
 0x4e9   : > { %v2074_v20 = vmul.f32 %v4892_v49, %v4888_v12  ;;  %v4894_v55 = vpop.eup %4893 }
 0x4ea   : > { %v2075_v51 = vadd.f32 %v2073_v11, %v2071_v60  ;;  %v2072_v38 = vmul.f32 %v4894_v55, %v6741_v37  ;;  %v2157_v35 = vpop.f32.mrb[28].mxu0  ;;  %v2200_v13 = vpop.f32.mrb[28].mxu1 }
 0x4eb   : > { %v2209_v10 = vadd.f32 %v2157_v35, %v2115_v46  ;;  %v2159_v24 = vpop.f32.mrb[29].mxu0  ;;  %v2202_v47 = vpop.f32.mrb[29].mxu1  ;;  %v2117_v46 = vunpack.c.l.bf16 %v4190_v31  ;;  %v4192_v35 = vld [vmem:[%s5981_s17 + $0x98] sm:$0xff] }
 0x4ec   : > { %4897 = vtanh.f32 %v2075_v51  ;;  %v6856_v3 = vsel %vm2092_vm12, %v2075_v51, %v7899_v61  ;;  %v2076_v12 = vadd.f32 %v2074_v20, %v2072_v38  ;;  %v2210_v19 = vadd.f32 %v2159_v24, %v2116_v63  ;;  %v2161_v11 = vpop.f32.mrb[30].mxu0  ;;  %v2204_v40 = vpop.f32.mrb[30].mxu1 }
 0x4ed   : > { %7900 = vst [vmem:[#allocation59_spill] sm:$0xff] %v6856_v3  ;;  %4899 = vrcp.f32 %v2056_v6  ;;  %v4193_v41 = vmul.f32 -1.442695, %v2209_v10  ;;  %v2213_v49 = vadd.f32 %v2161_v11, %v2119_v58  ;;  %v2163_v60 = vpop.f32.mrb[31].mxu0  ;;  %v2206_v21 = vpop.f32.mrb[31].mxu1  ;;  %v2121_v20 = vunpack.c.l.bf16 %v4192_v35 }
 0x4ee   : > { %4901 = vtanh.f32 %v2076_v12  ;;  %v4194_v55 = vmul.f32 -1.442695, %v2210_v19  ;;  %v2214_v43 = vadd.f32 %v2163_v60, %v2120_v56  ;;  %v6861_v61 = vsel %vm2093_vm13, %v2076_v12, %v6741_v37  ;;  %v4896_v58 = vpop.eup %4895 }
 0x4ef   : > { %4903 = vpow2.f32 %v4193_v41  ;;  %v4196_v5 = vmul.f32 -1.442695, %v2213_v49  ;;  %v2211_v51 = vadd.f32 %v2200_v13, %v2117_v46  ;;  %v2118_v6 = vunpack.c.h.bf16 %v4190_v31 }
 0x4f0   : > { %4905 = vpow2.f32 %v4194_v55  ;;  %v4197_v63 = vmul.f32 -1.442695, %v2214_v43  ;;  %v2215_v10 = vadd.f32 %v2204_v40, %v2121_v20  ;;  %v2122_v41 = vunpack.c.h.bf16 %v4192_v35  ;;  %v2275_v20 = vpop.permute.xlu1 %2274 }
 0x4f1   : > { %4907 = vpow2.f32 %v4196_v5  ;;  %v4195_v24 = vmul.f32 -1.442695, %v2211_v51  ;;  %v2212_v56 = vadd.f32 %v2202_v47, %v2118_v6  ;;  %vm2277_vm15 = vcmp.eq.s32.totalorder %v2275_v20, 1  ;;  %v6947_v51 = vld [vmem:[#allocation11 + $0x20] ss:$16 sps:$4 sm:$0xff]  }
 0x4f2   : > { %4909 = vpow2.f32 %v4197_v63  ;;  %v4198_v3 = vmul.f32 -1.442695, %v2215_v10  ;;  %v2216_v13 = vadd.f32 %v2206_v21, %v2122_v41  ;;  %v6950_v6 = vld [vmem:[#allocation11 + $0x28] ss:$16 sps:$4 sm:$0xff]   ;;  %v6959_v10 = vld [vmem:[#allocation11 + $0x40] ss:$16 sps:$4 sm:$0xff]  }
 0x4f3   : > { %4911 = vpow2.f32 %v4195_v24  ;;  %7904 = vst [vmem:[#allocation60_spill] sm:$0xff] %v6950_v6  ;;  %7907 = vst [vmem:[#allocation63_spill] sm:$0xff] %v6959_v10  ;;  %v6962_v24 = vld [vmem:[#allocation11 + $0x48] ss:$16 sps:$4 sm:$0xff]  }
 0x4f4   : > { %4913 = vtanh.f32 %v2212_v56  ;;  %7908 = vst [vmem:[#allocation64_spill] sm:$0xff] %v6962_v24  ;;  %v6971_v56 = vld [vmem:[#allocation11 + $0x60] ss:$16 sps:$4 sm:$0xff]   ;;  %v6974_v41 = vld [vmem:[#allocation11 + $0x68] ss:$16 sps:$4 sm:$0xff]  }
 0x4f5   : > { %7911 = vst [vmem:[#allocation31_spill] sm:$0xff] %v6971_v56  ;;  %7912 = vst [vmem:[#allocation34_spill] sm:$0xff] %v6974_v41 }
 0x4f6   : > { %v4898_v38 = vpop.eup %4897 }
 0x4f7   : > { %v2079_v19 = vmul.f32 %v4898_v38, %v4896_v58  ;;  %v4900_v11 = vpop.eup %4899  ;;  %v6953_v58 = vld [vmem:[#allocation11 + $0x44] ss:$16 sps:$4 sm:$0xff]   ;;  %v6956_v38 = vld [vmem:[#allocation11 + $0x4c] ss:$16 sps:$4 sm:$0xff]  }
 0x4f8   : > { %v4902_v49 = vpop.eup %4901  ;;  %7905 = vst [vmem:[#allocation61_spill] sm:$0xff] %v6953_v58  ;;  %7906 = vst [vmem:[#allocation62_spill] sm:$0xff] %v6956_v38 }
 0x4f9   : > { %v4904_v60 = vpop.eup %4903  ;;  %v2080_v37 = vmul.f32 %v4902_v49, %v4900_v11  ;;  %v6865_v5 = vsel %vm2092_vm12, %v2079_v19, %v6746_v23  ;;  %v6965_v19 = vld [vmem:[#allocation11 + $0x64] ss:$16 sps:$4 sm:$0xff]   ;;  %v6968_v11 = vld [vmem:[#allocation11 + $0x6c] ss:$16 sps:$4 sm:$0xff]  }
 0x4fa   : > { %v2235_v12 = vadd.f32 1.0, %v4904_v60  ;;  %v4906_v43 = vpop.eup %4905  ;;  %7909 = vst [vmem:[#allocation65_spill] sm:$0xff] %v6965_v19  ;;  %7910 = vst [vmem:[#allocation66_spill] sm:$0xff] %v6968_v11  ;;  %v6977_v49 = vld [vmem:[#allocation11 + $0x84] ss:$16 sps:$4 sm:$0xff]  }
 0x4fb   : > { %v6869_v31 = vsel %vm2093_vm13, %v2080_v37, %v6751_v44  ;;  %v2236_v47 = vadd.f32 1.0, %v4906_v43  ;;  %v4908_v46 = vpop.eup %4907  ;;  %7913 = vst [vmem:[#allocation32_spill] sm:$0xff] %v6977_v49  ;;  %v6980_v60 = vld [vmem:[#allocation11 + $0x8c] ss:$16 sps:$4 sm:$0xff]   ;;  %v6983_v37 = vld [vmem:[#allocation11 + $0x80] ss:$16 sps:$4 sm:$0xff]  }
 0x4fc   : > { %4915 = vrcp.f32 %v2235_v12  ;;  %v2098_v40 = vpack.c.bf16 %v6869_v31, %v6865_v5  ;;  %v2238_v55 = vadd.f32 1.0, %v4908_v46  ;;  %v4910_v21 = vpop.eup %4909  ;;  %7914 = vst [vmem:[#allocation37_spill] sm:$0xff] %v6980_v60  ;;  %7915 = vst [vmem:[#allocation33_spill] sm:$0xff] %v6983_v37  ;;  %v6986_v12 = vld [vmem:[#allocation11 + $0x88] ss:$16 sps:$4 sm:$0xff]  }
 0x4fd   : > { %4917 = vpow2.f32 %v4198_v3  ;;  %v2239_v23 = vadd.f32 1.0, %v4910_v21  ;;  %v4912_v44 = vpop.eup %4911  ;;  %v2272_v3 = vpop.permute.xlu0 %2271  ;;  %7916 = vst [vmem:[#allocation38_spill] sm:$0xff] %v6986_v12  ;;  %v6989_v43 = vld [vmem:[#allocation11 + $0xa4] ss:$16 sps:$4 sm:$0xff]   ;;  %v7007_v21 = vld [vmem:[#allocation11 + $0xc0] ss:$16 sps:$4 sm:$0xff]  }
 0x4fe   : > { %4919 = vrcp.f32 %v2236_v47  ;;  %4449 = vst [vmem:[%s5996_s30 + $0x18] sm:$0xff] %v2098_v40   ;;  %2340 = vmatmul.mubr.bf16.vlgmr.msra.gmra.mrb[32].mxu0 %v2098_v40  ;;  %2383 = vmatmul.mubr.bf16.vlgmr.msra.gmra.mrb[32].mxu1 %v2098_v40  ;;  %v2237_v42 = vadd.f32 1.0, %v4912_v44  ;;  %vm2276_vm14 = vcmp.eq.s32.totalorder %v2272_v3, 1  ;;  %7917 = vst [vmem:[#allocation35_spill] sm:$0xff] %v6989_v43  ;;  %v6995_v47 = vld [vmem:[#allocation11 + $0xa0] ss:$16 sps:$4 sm:$0xff]  }
 0x4ff   : > { %4921 = vtanh.f32 %v2216_v13  ;;  %2492 = vmatpush1.bf16.msra.mxu0 %v6564_v45  ;;  %2535 = vmatpush1.bf16.msra.mxu1 %v6567_v15  ;;  %v4914_v45 = vpop.eup %4913  ;;  %v6992_v13 = vld [vmem:[#allocation11 + $0xac] ss:$16 sps:$4 sm:$0xff]   ;;  %7919 = vst [vmem:[#allocation36_spill] sm:$0xff] %v6995_v47  ;;  %v6998_v40 = vld [vmem:[#allocation11 + $0xa8] ss:$16 sps:$4 sm:$0xff]   ;;  %7923 = vst [vmem:[#allocation45_spill] sm:$0xff] %v7007_v21 }
 0x500   : > { %4923 = vrcp.f32 %v2238_v55  ;;  %2493 = vmatprep.subr.bf16.mxu0 %v6570_v14  ;;  %2536 = vmatprep.subr.bf16.mxu1 %v6573_v52  ;;  %7918 = vst [vmem:[#allocation41_spill] sm:$0xff] %v6992_v13  ;;  %7920 = vst [vmem:[#allocation42_spill] sm:$0xff] %v6998_v40  ;;  %v7001_v46 = vld [vmem:[#allocation11 + $0xc4] ss:$16 sps:$4 sm:$0xff]   ;;  %v7004_v55 = vld [vmem:[#allocation11 + $0xcc] ss:$16 sps:$4 sm:$0xff]  }
 0x501   : > { %2523 = vmatprep.mubr.bf16.mxu0 %v7840_v28  ;;  %2566 = vmatprep.mubr.bf16.mxu1 %v7840_v28  ;;  %4925 = vrcp.f32 %v2239_v23  ;;  %7921 = vst [vmem:[#allocation39_spill] sm:$0xff] %v7001_v46  ;;  %7922 = vst [vmem:[#allocation40_spill] sm:$0xff] %v7004_v55  ;;  %v7010_v23 = vld [vmem:[#allocation11 + $0xc8] ss:$16 sps:$4 sm:$0xff]   ;;  %v7013_v44 = vld [vmem:[#allocation11 + $0xe4] ss:$16 sps:$4 sm:$0xff]  }
 0x502   : > { %4927 = vrcp.f32 %v2237_v42  ;;  %7924 = vst [vmem:[#allocation43_spill] sm:$0xff] %v7010_v23  ;;  %7925 = vst [vmem:[#allocation44_spill] sm:$0xff] %v7013_v44  ;;  %v4203_v42 = vld [vmem:[%s5971_s22 + $0x80] sm:$0xff] }
 0x503   : > { %2494 = vmatpush1.bf16.msra.mxu0 %v6578_v1  ;;  %2537 = vmatpush1.bf16.msra.mxu1 %v6581_v62 }
 0x504   : > { %2495 = vmatprep.subr.bf16.mxu0 %v6584_v30  ;;  %2538 = vmatprep.subr.bf16.mxu1 %v6587_v59 }
 0x506   : > { %v4916_v15 = vpop.eup %4915 }
 0x507   : > { %v4918_v32 = vpop.eup %4917  ;;  %v2257_v14 = vmul.f32 %v4916_v15, %v4914_v45  ;;  %2496 = vmatpush1.bf16.msra.mxu0 %v6590_v29  ;;  %2539 = vmatpush1.bf16.msra.mxu1 %v6593_v9  ;;  %v7016_v45 = vld [vmem:[#allocation11 + $0xec] ss:$16 sps:$4 sm:$0xff]   ;;  %v7019_v15 = vld [vmem:[#allocation11 + $0xe0] ss:$16 sps:$4 sm:$0xff]  }
 0x508   : > { %v4920_v52 = vpop.eup %4919  ;;  %2497 = vmatprep.subr.bf16.mxu0 %v6597_v2  ;;  %2540 = vmatprep.subr.bf16.mxu1 %v6600_v0  ;;  %v2240_v9 = vadd.f32 1.0, %v4918_v32  ;;  %7926 = vst [vmem:[#allocation46_spill] sm:$0xff] %v7016_v45  ;;  %7927 = vst [vmem:[#allocation47_spill] sm:$0xff] %v7019_v15  ;;  %v7928_v32 = vld [vmem:[#allocation68_spill] sm:$0xff] }
 0x509   : > { %v4922_v1 = vpop.eup %4921  ;;  %v2255_v62 = vmul.f32 %v4920_v52, %v6778_v39  ;;  %v7930_v52 = vld [vmem:[#allocation69_spill] sm:$0xff] }
 0x50a   : > { %v4924_v30 = vpop.eup %4923 }
 0x50b   : > { %v2259_v59 = vadd.f32 %v2257_v14, %v2255_v62  ;;  %v2258_v35 = vmul.f32 %v4924_v30, %v4922_v1  ;;  %2498 = vmatpush1.bf16.msra.mxu0 %v6604_v57  ;;  %2541 = vmatpush1.bf16.msra.mxu1 %v6607_v54  ;;  %v4926_v29 = vpop.eup %4925  ;;  %v7023_v14 = vld [vmem:[#allocation12 + $0x4] ss:$16 sps:$4 sm:$0xff]   ;;  %v2299_v62 = vunpack.c.l.bf16 %v4203_v42  ;;  %v2300_v30 = vunpack.c.h.bf16 %v4203_v42 }
 0x50c   : > { %2499 = vmatprep.subr.bf16.mxu0 %v6610_v36  ;;  %2542 = vmatprep.subr.bf16.mxu1 %v7860_v26  ;;  %v2256_v2 = vmul.f32 %v4926_v29, %v6786_v48  ;;  %v4928_v54 = vpop.eup %4927  ;;  %7929 = vst [vmem:[#allocation48_spill] sm:$0xff] %v7023_v14  ;;  %v4205_v1 = vld [vmem:[%s5971_s22 + $0x90] sm:$0xff] }
 0x50d   : > { %4929 = vtanh.f32 %v2259_v59  ;;  %v6896_v0 = vsel %vm2276_vm14, %v2259_v59, %v6778_v39  ;;  %v2303_v3 = vunpack.c.l.bf16 %v4205_v1  ;;  %v2304_v29 = vunpack.c.h.bf16 %v4205_v1 }
 0x50e   : > { %v2260_v63 = vadd.f32 %v2258_v35, %v2256_v2  ;;  %4931 = vrcp.f32 %v2240_v9  ;;  %v4204_v2 = vld [vmem:[%s5971_s22 + $0x88] sm:$0xff] }
 0x50f   : > { %2500 = vmatpush1.bf16.msra.mxu0 %v7861_v25  ;;  %2543 = vmatpush1.bf16.msra.mxu1 %v7862_v18  ;;  %v7901_v18 = vld [vmem:[#allocation67_spill] sm:$0xff]  ;;  %v2302_v1 = vunpack.c.h.bf16 %v4204_v2 }
 0x510   : > { %2501 = vmatprep.subr.bf16.mxu0 %v7863_v34  ;;  %2544 = vmatprep.subr.bf16.mxu1 %v7864_v8  ;;  %4933 = vtanh.f32 %v2260_v63  ;;  %v6904_v57 = vsel %vm2277_vm15, %v2260_v63, %v6786_v48  ;;  %v6916_v8 = vld [vmem:[#allocation11 + $0x4] ss:$16 sps:$4 sm:$0xff]   ;;  %v6919_v48 = vld [vmem:[#allocation11 + $0xc] ss:$16 sps:$4 sm:$0xff]  }
 0x513   : > { %2502 = vmatpush1.bf16.msra.mxu0 %v7865_v16  ;;  %2545 = vmatpush1.bf16.msra.mxu1 %v7866_v4  ;;  %v6933_v4 = vld [vmem:[#allocation11] ss:$16 sps:$4 sm:$0xff]  }
 0x514   : > { %2503 = vmatprep.subr.bf16.mxu0 %v7867_v17  ;;  %2546 = vmatprep.subr.bf16.mxu1 %v7868_v22  ;;  %v6936_v17 = vld [vmem:[#allocation11 + $0x8] ss:$16 sps:$4 sm:$0xff]   ;;  %v6939_v22 = vld [vmem:[#allocation11 + $0x24] ss:$16 sps:$4 sm:$0xff]  }
 0x517   : > { %v4930_v36 = vpop.eup %4929  ;;  %2504 = vmatpush1.bf16.msra.mxu0 %v7869_v33  ;;  %2547 = vmatpush1.bf16.msra.mxu1 %v6651_v53  ;;  %v7902_v53 = vld [vmem:[#allocation57_spill] sm:$0xff]  ;;  %v6942_v33 = vld [vmem:[#allocation11 + $0x2c] ss:$16 sps:$4 sm:$0xff]  }
 0x518   : > { %2505 = vmatprep.subr.bf16.mxu0 %v6654_v27  ;;  %2548 = vmatprep.subr.bf16.mxu1 %v6657_v50  ;;  %v2263_v26 = vmul.f32 %v4930_v36, %v4928_v54  ;;  %v4932_v39 = vpop.eup %4931  ;;  %v7903_v50 = vld [vmem:[#allocation58_spill] sm:$0xff] }
 0x51a   : > { %v4934_v25 = vpop.eup %4933  ;;  %v6924_v27 = vsel %vm2276_vm14, %v2263_v26, %v7902_v53  ;;  %v4206_v26 = vld [vmem:[%s5971_s22 + $0x98] sm:$0xff] }
 0x51b   : > { %2506 = vmatpush1.bf16.msra.mxu0 %v6660_v7  ;;  %2549 = vmatpush1.bf16.msra.mxu1 %v7901_v18  ;;  %v2264_v34 = vmul.f32 %v4934_v25, %v4932_v39  ;;  %v2305_v42 = vunpack.c.l.bf16 %v4206_v26 }
 0x51c   : > { %2675 = vmatprep.subr.bf16.mxu0 %v6916_v8  ;;  %2718 = vmatprep.subr.bf16.mxu1 %v6919_v48 }
 0x51d   : > { %v6928_v16 = vsel %vm2277_vm15, %v2264_v34, %v7903_v50  ;;  %v2301_v50 = vunpack.c.l.bf16 %v4204_v2 }
 0x51e   : > { %v2282_v7 = vpack.c.bf16 %v6928_v16, %v6924_v27 }
 0x520   : > { %4450 = vst [vmem:[%s5998_s23 + $0x20] sm:$0xff] %v2282_v7   ;;  %2524 = vmatmul.mubr.bf16.vlgmr.msra.gmra.mrb[36].mxu0 %v2282_v7  ;;  %2567 = vmatmul.mubr.bf16.vlgmr.msra.gmra.mrb[36].mxu1 %v2282_v7 }
 0x521   : > { %2676 = vmatpush1.bf16.msra.mxu0 %v6933_v4  ;;  %2719 = vmatpush1.bf16.msra.mxu1 %v6936_v17 }
 0x522   : > { %2677 = vmatprep.subr.bf16.mxu0 %v6939_v22  ;;  %2720 = vmatprep.subr.bf16.mxu1 %v6942_v33 }
 0x523   : > { %2707 = vmatprep.mubr.bf16.mxu0 %v7840_v28  ;;  %2750 = vmatprep.mubr.bf16.mxu1 %v7840_v28 }
 0x525   : > { %2678 = vmatpush1.bf16.msra.mxu0 %v6947_v51  ;;  %2721 = vmatpush1.bf16.msra.mxu1 %v6950_v6 }
 0x526   : > { %2679 = vmatprep.subr.bf16.mxu0 %v6953_v58  ;;  %2722 = vmatprep.subr.bf16.mxu1 %v6956_v38 }
 0x529   : > { %2680 = vmatpush1.bf16.msra.mxu0 %v6959_v10  ;;  %2723 = vmatpush1.bf16.msra.mxu1 %v6962_v24 }
 0x52a   : > { %2681 = vmatprep.subr.bf16.mxu0 %v6965_v19  ;;  %2724 = vmatprep.subr.bf16.mxu1 %v6968_v11 }
 0x52d   : > { %2682 = vmatpush1.bf16.msra.mxu0 %v6971_v56  ;;  %2725 = vmatpush1.bf16.msra.mxu1 %v6974_v41 }
 0x52e   : > { %2683 = vmatprep.subr.bf16.mxu0 %v6977_v49  ;;  %2726 = vmatprep.subr.bf16.mxu1 %v6980_v60 }
 0x531   : > { %2684 = vmatpush1.bf16.msra.mxu0 %v6983_v37  ;;  %2727 = vmatpush1.bf16.msra.mxu1 %v6986_v12 }
 0x532   : > { %2685 = vmatprep.subr.bf16.mxu0 %v6989_v43  ;;  %2728 = vmatprep.subr.bf16.mxu1 %v6992_v13 }
 0x535   : > { %2686 = vmatpush1.bf16.msra.mxu0 %v6995_v47  ;;  %2729 = vmatpush1.bf16.msra.mxu1 %v6998_v40 }
 0x536   : > { %2687 = vmatprep.subr.bf16.mxu0 %v7001_v46  ;;  %2730 = vmatprep.subr.bf16.mxu1 %v7004_v55 }
 0x539   : > { %2688 = vmatpush1.bf16.msra.mxu0 %v7007_v21  ;;  %2731 = vmatpush1.bf16.msra.mxu1 %v7010_v23 }
 0x53a   : > { %2689 = vmatprep.subr.bf16.mxu0 %v7013_v44  ;;  %2732 = vmatprep.subr.bf16.mxu1 %v7016_v45 }
 0x53d   : > { %2690 = vmatpush1.bf16.msra.mxu0 %v7019_v15  ;;  %2733 = vmatpush1.bf16.msra.mxu1 %v7928_v32 }
 0x53e   : > { %2859 = vmatprep.subr.bf16.mxu0 %v7023_v14  ;;  %2902 = vmatprep.subr.bf16.mxu1 %v7930_v52 }
 0x5d1   : > { %v2341_v59 = vpop.f32.mrb[32].mxu0  ;;  %v2384_v35 = vpop.f32.mrb[32].mxu1 }
 0x5d2   : > { %v2393_v9 = vadd.f32 %v2341_v59, %v2299_v62  ;;  %v2343_v20 = vpop.f32.mrb[33].mxu0  ;;  %v2386_v63 = vpop.f32.mrb[33].mxu1  ;;  %v2395_v62 = vadd.f32 %v2384_v35, %v2301_v50 }
 0x5d3   : > { %v2394_v54 = vadd.f32 %v2343_v20, %v2300_v30  ;;  %v2345_v36 = vpop.f32.mrb[34].mxu0  ;;  %v2388_v39 = vpop.f32.mrb[34].mxu1  ;;  %v2396_v30 = vadd.f32 %v2386_v63, %v2302_v1  ;;  %v2306_v20 = vunpack.c.h.bf16 %v4206_v26 }
 0x5d4   : > { %v4207_v25 = vmul.f32 -1.442695, %v2393_v9  ;;  %v2397_v18 = vadd.f32 %v2345_v36, %v2303_v3  ;;  %v2347_v34 = vpop.f32.mrb[35].mxu0  ;;  %v2390_v53 = vpop.f32.mrb[35].mxu1  ;;  %v2399_v59 = vadd.f32 %v2388_v39, %v2305_v42  ;;  %v4209_v15 = vmul.f32 -1.442695, %v2395_v62 }
 0x5d5   : > { %v4208_v7 = vmul.f32 -1.442695, %v2394_v54  ;;  %v2398_v32 = vadd.f32 %v2347_v34, %v2304_v29  ;;  %v2400_v36 = vadd.f32 %v2390_v53, %v2306_v20  ;;  %v4217_v53 = vld [vmem:[%s5981_s17 + $0x60] sm:$0xff]  ;;  %v4219_v42 = vld [vmem:[%s5981_s17 + $0x70] sm:$0xff] }
 0x5d6   : > { %4935 = vpow2.f32 %v4207_v25  ;;  %v4210_v52 = vmul.f32 -1.442695, %v2397_v18  ;;  %v4212_v9 = vmul.f32 -1.442695, %v2399_v59  ;;  %v2483_v62 = vunpack.c.l.bf16 %v4217_v53 }
 0x5d7   : > { %v4211_v14 = vmul.f32 -1.442695, %v2398_v32  ;;  %4937 = vpow2.f32 %v4208_v7 }
 0x5d8   : > { %4939 = vpow2.f32 %v4210_v52 }
 0x5d9   : > { %4941 = vpow2.f32 %v4211_v14 }
 0x5da   : > { %4943 = vtanh.f32 %v2396_v30  ;;  %v2456_v30 = vpop.permute.xlu0 %2455 }
 0x5db   : > { %4945 = vpow2.f32 %v4209_v15  ;;  %vm2460_vm0 = vcmp.eq.s32.totalorder %v2456_v30, 1 }
 0x5dc   : > { %4947 = vpow2.f32 %v4212_v9 }
 0x5e0   : > { %v4936_v3 = vpop.eup %4935 }
 0x5e1   : > { %v2419_v45 = vadd.f32 1.0, %v4936_v3  ;;  %v4938_v29 = vpop.eup %4937  ;;  %v2484_v3 = vunpack.c.h.bf16 %v4217_v53 }
 0x5e2   : > { %v4940_v54 = vpop.eup %4939  ;;  %v2420_v25 = vadd.f32 1.0, %v4938_v29 }
 0x5e3   : > { %4949 = vrcp.f32 %v2419_v45  ;;  %v2422_v2 = vadd.f32 1.0, %v4940_v54  ;;  %v4942_v35 = vpop.eup %4941  ;;  %v7931_v45 = vld [vmem:[#allocation59_spill] sm:$0xff]  ;;  %v2487_v54 = vunpack.c.l.bf16 %v4219_v42 }
 0x5e4   : > { %4951 = vtanh.f32 %v2400_v36  ;;  %v2423_v14 = vadd.f32 1.0, %v4942_v35  ;;  %v4944_v63 = vpop.eup %4943  ;;  %v2459_v36 = vpop.permute.xlu1 %2458  ;;  %v2488_v35 = vunpack.c.h.bf16 %v4219_v42 }
 0x5e5   : > { %4953 = vrcp.f32 %v2420_v25  ;;  %v4946_v26 = vpop.eup %4945  ;;  %vm2461_vm1 = vcmp.eq.s32.totalorder %v2459_v36, 1  ;;  %v7062_v36 = vld [vmem:[#allocation12 + $0x24] ss:$16 sps:$4 sm:$0xff]  }
 0x5e6   : > { %4955 = vrcp.f32 %v2422_v2  ;;  %v4948_v39 = vpop.eup %4947  ;;  %v2421_v7 = vadd.f32 1.0, %v4946_v26 }
 0x5e7   : > { %4957 = vrcp.f32 %v2423_v14  ;;  %v2424_v9 = vadd.f32 1.0, %v4948_v39 }
 0x5e8   : > { %4959 = vrcp.f32 %v2421_v7 }
 0x5ed   : > { %v4950_v18 = vpop.eup %4949 }
 0x5ee   : > { %v4952_v34 = vpop.eup %4951  ;;  %v2441_v15 = vmul.f32 %v4950_v18, %v4944_v63  ;;  %v4218_v18 = vld [vmem:[%s5981_s17 + $0x68] sm:$0xff] }
 0x5ef   : > { %v4954_v50 = vpop.eup %4953  ;;  %v2485_v42 = vunpack.c.l.bf16 %v4218_v18 }
 0x5f0   : > { %v4956_v32 = vpop.eup %4955  ;;  %v2439_v52 = vmul.f32 %v4954_v50, %v7931_v45  ;;  %v4220_v50 = vld [vmem:[%s5981_s17 + $0x78] sm:$0xff] }
 0x5f1   : > { %v2442_v1 = vmul.f32 %v4956_v32, %v4952_v34  ;;  %v4958_v59 = vpop.eup %4957 }
 0x5f2   : > { %v2443_v20 = vadd.f32 %v2441_v15, %v2439_v52  ;;  %v2440_v29 = vmul.f32 %v4958_v59, %v6861_v61 }
 0x5f3   : > { %v2525_v25 = vpop.f32.mrb[36].mxu0  ;;  %v2568_v2 = vpop.f32.mrb[36].mxu1 }
 0x5f4   : > { %4961 = vtanh.f32 %v2443_v20  ;;  %v7037_v14 = vsel %vm2460_vm0, %v2443_v20, %v7931_v45  ;;  %v2444_v63 = vadd.f32 %v2442_v1, %v2440_v29  ;;  %v2577_v26 = vadd.f32 %v2525_v25, %v2483_v62  ;;  %v2527_v39 = vpop.f32.mrb[37].mxu0  ;;  %v2570_v34 = vpop.f32.mrb[37].mxu1 }
 0x5f5   : > { %7932 = vst [vmem:[#allocation49_spill] sm:$0xff] %v7037_v14  ;;  %4963 = vrcp.f32 %v2424_v9  ;;  %v2578_v15 = vadd.f32 %v2527_v39, %v2484_v3  ;;  %v2529_v53 = vpop.f32.mrb[38].mxu0  ;;  %v2572_v7 = vpop.f32.mrb[38].mxu1  ;;  %v2489_v62 = vunpack.c.l.bf16 %v4220_v50  ;;  %v2486_v3 = vunpack.c.h.bf16 %v4218_v18 }
 0x5f6   : > { %4965 = vtanh.f32 %v2444_v63  ;;  %v4221_v32 = vmul.f32 -1.442695, %v2577_v26  ;;  %v2581_v52 = vadd.f32 %v2529_v53, %v2487_v54  ;;  %v2531_v59 = vpop.f32.mrb[39].mxu0  ;;  %v2574_v44 = vpop.f32.mrb[39].mxu1  ;;  %v7043_v20 = vsel %vm2461_vm1, %v2444_v63, %v6861_v61 }
 0x5f7   : > { %v4222_v23 = vmul.f32 -1.442695, %v2578_v15  ;;  %v2582_v45 = vadd.f32 %v2531_v59, %v2488_v35  ;;  %v2579_v29 = vadd.f32 %v2568_v2, %v2485_v42  ;;  %v4960_v25 = vpop.eup %4959  ;;  %v2583_v54 = vadd.f32 %v2572_v7, %v2489_v62  ;;  %v7073_v62 = vld [vmem:[#allocation12 + $0x28] ss:$16 sps:$4 sm:$0xff]  }
 0x5f8   : > { %4967 = vpow2.f32 %v4221_v32  ;;  %v4224_v1 = vmul.f32 -1.442695, %v2581_v52  ;;  %v2580_v39 = vadd.f32 %v2570_v34, %v2486_v3  ;;  %v2490_v53 = vunpack.c.h.bf16 %v4220_v50  ;;  %v7076_v3 = vld [vmem:[#allocation12 + $0x44] ss:$16 sps:$4 sm:$0xff]  }
 0x5f9   : > { %v4225_v9 = vmul.f32 -1.442695, %v2582_v45  ;;  %4969 = vpow2.f32 %v4222_v23  ;;  %v4223_v32 = vmul.f32 -1.442695, %v2579_v29  ;;  %v4226_v59 = vmul.f32 -1.442695, %v2583_v54 }
 0x5fa   : > { %4971 = vpow2.f32 %v4224_v1  ;;  %v2584_v63 = vadd.f32 %v2574_v44, %v2490_v53  ;;  %v7070_v1 = vld [vmem:[#allocation12 + $0x20] ss:$16 sps:$4 sm:$0xff]   ;;  %v7079_v29 = vld [vmem:[#allocation12 + $0x4c] ss:$16 sps:$4 sm:$0xff]   ;;  %v7085_v53 = vld [vmem:[#allocation12 + $0x48] ss:$16 sps:$4 sm:$0xff]  }
 0x5fb   : > { %4973 = vpow2.f32 %v4225_v9 }
 0x5fc   : > { %4975 = vtanh.f32 %v2580_v39  ;;  %v7082_v39 = vld [vmem:[#allocation12 + $0x40] ss:$16 sps:$4 sm:$0xff]  }
 0x5fd   : > { %4977 = vpow2.f32 %v4223_v32  ;;  %v7088_v32 = vld [vmem:[#allocation12 + $0x64] ss:$16 sps:$4 sm:$0xff]  }
 0x5fe   : > { %v4962_v26 = vpop.eup %4961  ;;  %4979 = vpow2.f32 %v4226_v59 }
 0x5ff   : > { %v2447_v15 = vmul.f32 %v4962_v26, %v4960_v25  ;;  %v4964_v35 = vpop.eup %4963 }
 0x600   : > { %v4966_v52 = vpop.eup %4965 }
 0x601   : > { %v2448_v14 = vmul.f32 %v4966_v52, %v4964_v35  ;;  %v7047_v2 = vsel %vm2460_vm0, %v2447_v15, %v6865_v5  ;;  %v7056_v5 = vld [vmem:[#allocation12] ss:$16 sps:$4 sm:$0xff]   ;;  %v7091_v52 = vld [vmem:[#allocation12 + $0x6c] ss:$16 sps:$4 sm:$0xff]  }
 0x602   : > { %v4968_v61 = vpop.eup %4967 }
 0x603   : > { %v2603_v23 = vadd.f32 1.0, %v4968_v61  ;;  %v7051_v18 = vsel %vm2461_vm1, %v2448_v14, %v6869_v31  ;;  %v4970_v34 = vpop.eup %4969  ;;  %v7059_v31 = vld [vmem:[#allocation12 + $0x8] ss:$16 sps:$4 sm:$0xff]   ;;  %v7065_v14 = vld [vmem:[#allocation12 + $0x2c] ss:$16 sps:$4 sm:$0xff]  }
 0x604   : > { %v2466_v50 = vpack.c.bf16 %v7051_v18, %v7047_v2  ;;  %v4972_v7 = vpop.eup %4971  ;;  %v2604_v42 = vadd.f32 1.0, %v4970_v34 }
 0x605   : > { %4981 = vrcp.f32 %v2603_v23  ;;  %v2606_v45 = vadd.f32 1.0, %v4972_v7  ;;  %v4974_v44 = vpop.eup %4973  ;;  %v7098_v7 = vld [vmem:[#allocation12 + $0x68] ss:$16 sps:$4 sm:$0xff]  }
 0x606   : > { %4983 = vtanh.f32 %v2584_v63  ;;  %4451 = vst [vmem:[%s5996_s30 + $0x20] sm:$0xff] %v2466_v50   ;;  %2708 = vmatmul.mubr.bf16.vlgmr.msra.gmra.mrb[40].mxu0 %v2466_v50  ;;  %2751 = vmatmul.mubr.bf16.vlgmr.msra.gmra.mrb[40].mxu1 %v2466_v50  ;;  %v2607_v30 = vadd.f32 1.0, %v4974_v44  ;;  %v4976_v9 = vpop.eup %4975  ;;  %v7095_v50 = vld [vmem:[#allocation12 + $0x60] ss:$16 sps:$4 sm:$0xff]  }
 0x607   : > { %4985 = vrcp.f32 %v2604_v42  ;;  %2860 = vmatpush1.bf16.msra.mxu0 %v7056_v5  ;;  %2903 = vmatpush1.bf16.msra.mxu1 %v7059_v31  ;;  %v4978_v25 = vpop.eup %4977 }
 0x608   : > { %4987 = vrcp.f32 %v2606_v45  ;;  %2861 = vmatprep.subr.bf16.mxu0 %v7062_v36  ;;  %2904 = vmatprep.subr.bf16.mxu1 %v7065_v14  ;;  %v4980_v54 = vpop.eup %4979  ;;  %v2605_v61 = vadd.f32 1.0, %v4978_v25  ;;  %v2640_v45 = vpop.permute.xlu0 %2639  ;;  %v7104_v25 = vld [vmem:[#allocation12 + $0x8c] ss:$16 sps:$4 sm:$0xff]  }
 0x609   : > { %2891 = vmatprep.mubr.bf16.mxu0 %v7840_v28  ;;  %2934 = vmatprep.mubr.bf16.mxu1 %v7840_v28  ;;  %4989 = vrcp.f32 %v2607_v30  ;;  %v2608_v30 = vadd.f32 1.0, %v4980_v54  ;;  %vm2644_vm2 = vcmp.eq.s32.totalorder %v2640_v45, 1  ;;  %v7112_v54 = vld [vmem:[#allocation12 + $0x80] ss:$16 sps:$4 sm:$0xff]   ;;  %v7946_v45 = vld [vmem:[#allocation46_spill] sm:$0xff] }
 0x60a   : > { %4991 = vrcp.f32 %v2605_v61  ;;  %v7118_v61 = vld [vmem:[#allocation12 + $0xa4] ss:$16 sps:$4 sm:$0xff]  }
 0x60b   : > { %2862 = vmatpush1.bf16.msra.mxu0 %v7070_v1  ;;  %2905 = vmatpush1.bf16.msra.mxu1 %v7073_v62  ;;  %7934 = vst [vmem:[#allocation51_spill] sm:$0xff] %v7118_v61 }
 0x60c   : > { %2863 = vmatprep.subr.bf16.mxu0 %v7076_v3  ;;  %2906 = vmatprep.subr.bf16.mxu1 %v7079_v29 }
 0x60f   : > { %v4982_v26 = vpop.eup %4981  ;;  %2864 = vmatpush1.bf16.msra.mxu0 %v7082_v39  ;;  %2907 = vmatpush1.bf16.msra.mxu1 %v7085_v53 }
 0x610   : > { %v4984_v15 = vpop.eup %4983  ;;  %v2625_v35 = vmul.f32 %v4982_v26, %v4976_v9  ;;  %2865 = vmatprep.subr.bf16.mxu0 %v7088_v32  ;;  %2908 = vmatprep.subr.bf16.mxu1 %v7091_v52  ;;  %v7101_v9 = vld [vmem:[#allocation12 + $0x84] ss:$16 sps:$4 sm:$0xff]  }
 0x611   : > { %v4986_v59 = vpop.eup %4985 }
 0x612   : > { %v4988_v63 = vpop.eup %4987  ;;  %v2623_v23 = vmul.f32 %v4986_v59, %v6896_v0  ;;  %v2643_v59 = vpop.permute.xlu1 %2642 }
 0x613   : > { %v2626_v34 = vmul.f32 %v4988_v63, %v4984_v15  ;;  %2866 = vmatpush1.bf16.msra.mxu0 %v7095_v50  ;;  %2909 = vmatpush1.bf16.msra.mxu1 %v7098_v7  ;;  %v4990_v42 = vpop.eup %4989  ;;  %v7115_v63 = vld [vmem:[#allocation12 + $0x88] ss:$16 sps:$4 sm:$0xff]   ;;  %vm2645_vm3 = vcmp.eq.s32.totalorder %v2643_v59, 1  ;;  %v7947_v59 = vld [vmem:[#allocation47_spill] sm:$0xff] }
 0x614   : > { %v2627_v44 = vadd.f32 %v2625_v35, %v2623_v23  ;;  %2867 = vmatprep.subr.bf16.mxu0 %v7101_v9  ;;  %2910 = vmatprep.subr.bf16.mxu1 %v7104_v25  ;;  %v2624_v26 = vmul.f32 %v4990_v42, %v6904_v57  ;;  %7933 = vst [vmem:[#allocation50_spill] sm:$0xff] %v7115_v63  ;;  %v7121_v23 = vld [vmem:[#allocation12 + $0xac] ss:$16 sps:$4 sm:$0xff]   ;;  %v7131_v42 = vld [vmem:[#allocation12 + $0xa8] ss:$16 sps:$4 sm:$0xff]  }
 0x615   : > { %7935 = vst [vmem:[#allocation52_spill] sm:$0xff] %v7121_v23  ;;  %7937 = vst [vmem:[#allocation54_spill] sm:$0xff] %v7131_v42 }
 0x616   : > { %4993 = vtanh.f32 %v2627_v44  ;;  %v7110_v15 = vsel %vm2644_vm2, %v2627_v44, %v6896_v0  ;;  %v2628_v35 = vadd.f32 %v2626_v34, %v2624_v26  ;;  %v7128_v34 = vld [vmem:[#allocation12 + $0xa0] ss:$16 sps:$4 sm:$0xff]   ;;  %v7134_v44 = vld [vmem:[#allocation12 + $0xc4] ss:$16 sps:$4 sm:$0xff]   ;;  %v4992_v26 = vpop.eup %4991 }
 0x617   : > { %2868 = vmatpush1.bf16.msra.mxu0 %v7112_v54  ;;  %2911 = vmatpush1.bf16.msra.mxu1 %v7115_v63  ;;  %4995 = vrcp.f32 %v2608_v30  ;;  %7936 = vst [vmem:[#allocation53_spill] sm:$0xff] %v7128_v34  ;;  %7938 = vst [vmem:[#allocation55_spill] sm:$0xff] %v7134_v44  ;;  %v7137_v30 = vld [vmem:[#allocation12 + $0xcc] ss:$16 sps:$4 sm:$0xff]   ;;  %v7152_v63 = vld [vmem:[#allocation12 + $0xe0] ss:$16 sps:$4 sm:$0xff]  }
 0x618   : > { %2869 = vmatprep.subr.bf16.mxu0 %v7118_v61  ;;  %2912 = vmatprep.subr.bf16.mxu1 %v7121_v23  ;;  %4997 = vtanh.f32 %v2628_v35  ;;  %v7126_v0 = vsel %vm2645_vm3, %v2628_v35, %v6904_v57  ;;  %7939 = vst [vmem:[#allocation56_spill] sm:$0xff] %v7137_v30  ;;  %v7140_v23 = vld [vmem:[#allocation12 + $0xc0] ss:$16 sps:$4 sm:$0xff]   ;;  %v7143_v57 = vld [vmem:[#allocation12 + $0xc8] ss:$16 sps:$4 sm:$0xff]  }
 0x619   : > { %7940 = vst [vmem:[#allocation67_spill] sm:$0xff] %v7140_v23  ;;  %7941 = vst [vmem:[#allocation57_spill] sm:$0xff] %v7143_v57 }
 0x61b   : > { %2870 = vmatpush1.bf16.msra.mxu0 %v7128_v34  ;;  %2913 = vmatpush1.bf16.msra.mxu1 %v7131_v42  ;;  %v7146_v34 = vld [vmem:[#allocation12 + $0xe4] ss:$16 sps:$4 sm:$0xff]  }
 0x61c   : > { %2871 = vmatprep.subr.bf16.mxu0 %v7134_v44  ;;  %2914 = vmatprep.subr.bf16.mxu1 %v7137_v30  ;;  %7942 = vst [vmem:[#allocation58_spill] sm:$0xff] %v7146_v34  ;;  %v7149_v44 = vld [vmem:[#allocation12 + $0xec] ss:$16 sps:$4 sm:$0xff]  }
 0x61f   : > { %2872 = vmatpush1.bf16.msra.mxu0 %v7140_v23  ;;  %2915 = vmatpush1.bf16.msra.mxu1 %v7143_v57  ;;  %v7155_v23 = vld [vmem:[#allocation12 + $0xe8] ss:$16 sps:$4 sm:$0xff]  }
 0x620   : > { %v4994_v35 = vpop.eup %4993  ;;  %2873 = vmatprep.subr.bf16.mxu0 %v7146_v34  ;;  %2916 = vmatprep.subr.bf16.mxu1 %v7149_v44  ;;  %7943 = vst [vmem:[#allocation68_spill] sm:$0xff] %v7155_v23 }
 0x621   : > { %v2631_v30 = vmul.f32 %v4994_v35, %v4992_v26  ;;  %v4996_v42 = vpop.eup %4995 }
 0x622   : > { %v4998_v61 = vpop.eup %4997 }
 0x623   : > { %2874 = vmatpush1.bf16.msra.mxu0 %v7152_v63  ;;  %2917 = vmatpush1.bf16.msra.mxu1 %v7155_v23  ;;  %v2632_v57 = vmul.f32 %v4998_v61, %v4996_v42  ;;  %v7162_v34 = vsel %vm2644_vm2, %v2631_v30, %v6924_v27  ;;  %v7944_v27 = vld [vmem:[#allocation43_spill] sm:$0xff]  ;;  %v7202_v61 = vld [vmem:[#allocation11 + $0xe8] ss:$16 sps:$4 sm:$0xff]   ;;  %v7206_v30 = vld [vmem:[#allocation12 + $0xc] ss:$16 sps:$4 sm:$0xff]  }
 0x624   : > { %3043 = vmatprep.subr.bf16.mxu0 %v6916_v8  ;;  %3086 = vmatprep.subr.bf16.mxu1 %v6919_v48  ;;  %7948 = vst [vmem:[#allocation69_spill] sm:$0xff] %v7202_v61  ;;  %v7949_v42 = vld [vmem:[#allocation48_spill] sm:$0xff]  ;;  %7950 = vst [vmem:[#allocation59_spill] sm:$0xff] %v7206_v30 }
 0x625   : > { %v7166_v26 = vsel %vm2645_vm3, %v2632_v57, %v6928_v16  ;;  %v7945_v16 = vld [vmem:[#allocation44_spill] sm:$0xff]  ;;  %v4231_v57 = vld [vmem:[%s5971_s22 + $0xa0] sm:$0xff] }
 0x626   : > { %v2650_v35 = vpack.c.bf16 %v7166_v26, %v7162_v34 }
 0x628   : > { %4452 = vst [vmem:[%s5998_s23 + $0x18] sm:$0xff] %v2650_v35   ;;  %2892 = vmatmul.mubr.bf16.vlgmr.msra.gmra.mrb[44].mxu0 %v2650_v35  ;;  %2935 = vmatmul.mubr.bf16.vlgmr.msra.gmra.mrb[44].mxu1 %v2650_v35  ;;  %v4233_v35 = vld [vmem:[%s5971_s22 + $0xb0] sm:$0xff] }
 0x629   : > { %3044 = vmatpush1.bf16.msra.mxu0 %v6933_v4  ;;  %3087 = vmatpush1.bf16.msra.mxu1 %v6936_v17 }
 0x62a   : > { %3045 = vmatprep.subr.bf16.mxu0 %v6939_v22  ;;  %3088 = vmatprep.subr.bf16.mxu1 %v6942_v33 }
 0x62b   : > { %3075 = vmatprep.mubr.bf16.mxu0 %v7840_v28  ;;  %3118 = vmatprep.mubr.bf16.mxu1 %v7840_v28 }
 0x62d   : > { %3046 = vmatpush1.bf16.msra.mxu0 %v6947_v51  ;;  %3089 = vmatpush1.bf16.msra.mxu1 %v6950_v6 }
 0x62e   : > { %3047 = vmatprep.subr.bf16.mxu0 %v6953_v58  ;;  %3090 = vmatprep.subr.bf16.mxu1 %v6956_v38 }
 0x631   : > { %3048 = vmatpush1.bf16.msra.mxu0 %v6959_v10  ;;  %3091 = vmatpush1.bf16.msra.mxu1 %v6962_v24 }
 0x632   : > { %3049 = vmatprep.subr.bf16.mxu0 %v6965_v19  ;;  %3092 = vmatprep.subr.bf16.mxu1 %v6968_v11 }
 0x635   : > { %3050 = vmatpush1.bf16.msra.mxu0 %v6971_v56  ;;  %3093 = vmatpush1.bf16.msra.mxu1 %v6974_v41 }
 0x636   : > { %3051 = vmatprep.subr.bf16.mxu0 %v6977_v49  ;;  %3094 = vmatprep.subr.bf16.mxu1 %v6980_v60 }
 0x639   : > { %3052 = vmatpush1.bf16.msra.mxu0 %v6983_v37  ;;  %3095 = vmatpush1.bf16.msra.mxu1 %v6986_v12 }
 0x63a   : > { %3053 = vmatprep.subr.bf16.mxu0 %v6989_v43  ;;  %3096 = vmatprep.subr.bf16.mxu1 %v6992_v13 }
 0x63d   : > { %3054 = vmatpush1.bf16.msra.mxu0 %v6995_v47  ;;  %3097 = vmatpush1.bf16.msra.mxu1 %v6998_v40  ;;  %v4232_v40 = vld [vmem:[%s5971_s22 + $0xa8] sm:$0xff] }
 0x63e   : > { %3055 = vmatprep.subr.bf16.mxu0 %v7001_v46  ;;  %3098 = vmatprep.subr.bf16.mxu1 %v7004_v55  ;;  %v2672_v46 = vunpack.c.h.bf16 %v4233_v35  ;;  %v2669_v41 = vunpack.c.l.bf16 %v4232_v40 }
 0x641   : > { %3056 = vmatpush1.bf16.msra.mxu0 %v7007_v21  ;;  %3099 = vmatpush1.bf16.msra.mxu1 %v7944_v27  ;;  %v2667_v27 = vunpack.c.l.bf16 %v4231_v57  ;;  %v2671_v21 = vunpack.c.l.bf16 %v4233_v35 }
 0x642   : > { %3057 = vmatprep.subr.bf16.mxu0 %v7945_v16  ;;  %3100 = vmatprep.subr.bf16.mxu1 %v7946_v45  ;;  %v2668_v16 = vunpack.c.h.bf16 %v4231_v57 }
 0x645   : > { %3058 = vmatpush1.bf16.msra.mxu0 %v7947_v59  ;;  %3101 = vmatpush1.bf16.msra.mxu1 %v7202_v61 }
 0x646   : > { %3227 = vmatprep.subr.bf16.mxu0 %v7949_v42  ;;  %3270 = vmatprep.subr.bf16.mxu1 %v7206_v30  ;;  %v4234_v42 = vld [vmem:[%s5971_s22 + $0xb8] sm:$0xff] }
 0x647   : > { %v2673_v19 = vunpack.c.l.bf16 %v4234_v42 }
 0x6d9   : > { %v2709_v45 = vpop.f32.mrb[40].mxu0  ;;  %v2752_v55 = vpop.f32.mrb[40].mxu1 }
 0x6da   : > { %v2761_v59 = vadd.f32 %v2709_v45, %v2667_v27  ;;  %v2711_v47 = vpop.f32.mrb[41].mxu0  ;;  %v2754_v13 = vpop.f32.mrb[41].mxu1  ;;  %v2670_v27 = vunpack.c.h.bf16 %v4232_v40  ;;  %v2763_v45 = vadd.f32 %v2752_v55, %v2669_v41 }
 0x6db   : > { %v2762_v61 = vadd.f32 %v2711_v47, %v2668_v16  ;;  %v2713_v43 = vpop.f32.mrb[42].mxu0  ;;  %v2756_v12 = vpop.f32.mrb[42].mxu1  ;;  %v2674_v16 = vunpack.c.h.bf16 %v4234_v42 }
 0x6dc   : > { %v4235_v37 = vmul.f32 -1.442695, %v2761_v59  ;;  %v2765_v60 = vadd.f32 %v2713_v43, %v2671_v21  ;;  %v2715_v49 = vpop.f32.mrb[43].mxu0  ;;  %v2758_v30 = vpop.f32.mrb[43].mxu1  ;;  %v2767_v35 = vadd.f32 %v2756_v12, %v2673_v19  ;;  %v2764_v47 = vadd.f32 %v2754_v13, %v2670_v27 }
 0x6dd   : > { %v4236_v56 = vmul.f32 -1.442695, %v2762_v61  ;;  %v2766_v11 = vadd.f32 %v2715_v49, %v2672_v46  ;;  %v4237_v10 = vmul.f32 -1.442695, %v2763_v45  ;;  %v2768_v21 = vadd.f32 %v2758_v30, %v2674_v16  ;;  %v4245_v46 = vld [vmem:[%s5981_s17 + $0x40] sm:$0xff] }
 0x6de   : > { %4999 = vpow2.f32 %v4235_v37  ;;  %v4238_v57 = vmul.f32 -1.442695, %v2765_v60  ;;  %v4240_v59 = vmul.f32 -1.442695, %v2767_v35  ;;  %v2851_v45 = vunpack.c.l.bf16 %v4245_v46 }
 0x6df   : > { %v4239_v24 = vmul.f32 -1.442695, %v2766_v11  ;;  %5001 = vpow2.f32 %v4236_v56 }
 0x6e0   : > { %5003 = vpow2.f32 %v4238_v57  ;;  %v4247_v57 = vld [vmem:[%s5981_s17 + $0x50] sm:$0xff] }
 0x6e1   : > { %5005 = vpow2.f32 %v4239_v24 }
 0x6e2   : > { %5007 = vtanh.f32 %v2764_v47  ;;  %v2824_v47 = vpop.permute.xlu0 %2823 }
 0x6e3   : > { %5009 = vpow2.f32 %v4237_v10  ;;  %vm2828_vm4 = vcmp.eq.s32.totalorder %v2824_v47, 1 }
 0x6e4   : > { %5011 = vpow2.f32 %v4240_v59 }
 0x6e8   : > { %v5000_v43 = vpop.eup %4999 }
 0x6e9   : > { %v2787_v38 = vadd.f32 1.0, %v5000_v43  ;;  %v5002_v49 = vpop.eup %5001  ;;  %v2852_v43 = vunpack.c.h.bf16 %v4245_v46 }
 0x6ea   : > { %v5004_v60 = vpop.eup %5003  ;;  %v2788_v11 = vadd.f32 1.0, %v5002_v49 }
 0x6eb   : > { %5013 = vrcp.f32 %v2787_v38  ;;  %v2790_v56 = vadd.f32 1.0, %v5004_v60  ;;  %v5006_v41 = vpop.eup %5005  ;;  %v7951_v38 = vld [vmem:[#allocation49_spill] sm:$0xff]  ;;  %v2855_v60 = vunpack.c.l.bf16 %v4247_v57 }
 0x6ec   : > { %5015 = vtanh.f32 %v2768_v21  ;;  %v2791_v24 = vadd.f32 1.0, %v5006_v41  ;;  %v5008_v19 = vpop.eup %5007  ;;  %v2827_v21 = vpop.permute.xlu1 %2826  ;;  %v2856_v41 = vunpack.c.h.bf16 %v4247_v57 }
 0x6ed   : > { %5017 = vrcp.f32 %v2788_v11  ;;  %v5010_v37 = vpop.eup %5009  ;;  %vm2829_vm5 = vcmp.eq.s32.totalorder %v2827_v21, 1 }
 0x6ee   : > { %5019 = vrcp.f32 %v2790_v56  ;;  %v5012_v12 = vpop.eup %5011  ;;  %v2789_v61 = vadd.f32 1.0, %v5010_v37 }
 0x6ef   : > { %5021 = vrcp.f32 %v2791_v24  ;;  %v2792_v59 = vadd.f32 1.0, %v5012_v12 }
 0x6f0   : > { %5023 = vrcp.f32 %v2789_v61 }
 0x6f5   : > { %v5014_v13 = vpop.eup %5013 }
 0x6f6   : > { %v5016_v40 = vpop.eup %5015  ;;  %v2809_v10 = vmul.f32 %v5014_v13, %v5008_v19  ;;  %v4246_v13 = vld [vmem:[%s5981_s17 + $0x48] sm:$0xff] }
 0x6f7   : > { %v5018_v55 = vpop.eup %5017  ;;  %v2853_v57 = vunpack.c.l.bf16 %v4246_v13 }
 0x6f8   : > { %v5020_v42 = vpop.eup %5019  ;;  %v2807_v30 = vmul.f32 %v5018_v55, %v7951_v38  ;;  %v4248_v55 = vld [vmem:[%s5981_s17 + $0x58] sm:$0xff] }
 0x6f9   : > { %v2810_v27 = vmul.f32 %v5020_v42, %v5016_v40  ;;  %v5022_v35 = vpop.eup %5021 }
 0x6fa   : > { %v2811_v16 = vadd.f32 %v2809_v10, %v2807_v30  ;;  %v2808_v49 = vmul.f32 %v5022_v35, %v7043_v20 }
 0x6fb   : > { %v2893_v11 = vpop.f32.mrb[44].mxu0  ;;  %v2936_v56 = vpop.f32.mrb[44].mxu1 }
 0x6fc   : > { %5025 = vtanh.f32 %v2811_v16  ;;  %v7219_v24 = vsel %vm2828_vm4, %v2811_v16, %v7951_v38  ;;  %v2812_v19 = vadd.f32 %v2810_v27, %v2808_v49  ;;  %v2945_v37 = vadd.f32 %v2893_v11, %v2851_v45  ;;  %v2895_v12 = vpop.f32.mrb[45].mxu0  ;;  %v2938_v40 = vpop.f32.mrb[45].mxu1 }
 0x6fd   : > { %7952 = vst [vmem:[#allocation49_spill] sm:$0xff] %v7219_v24  ;;  %5027 = vrcp.f32 %v2792_v59  ;;  %v2946_v10 = vadd.f32 %v2895_v12, %v2852_v43  ;;  %v2897_v46 = vpop.f32.mrb[46].mxu0  ;;  %v2940_v61 = vpop.f32.mrb[46].mxu1  ;;  %v2857_v45 = vunpack.c.l.bf16 %v4248_v55  ;;  %v2854_v43 = vunpack.c.h.bf16 %v4246_v13 }
 0x6fe   : > { %5029 = vtanh.f32 %v2812_v19  ;;  %v4249_v42 = vmul.f32 -1.442695, %v2945_v37  ;;  %v2949_v30 = vadd.f32 %v2897_v46, %v2855_v60  ;;  %v2899_v35 = vpop.f32.mrb[47].mxu0  ;;  %v2942_v58 = vpop.f32.mrb[47].mxu1  ;;  %v7225_v16 = vsel %vm2829_vm5, %v2812_v19, %v7043_v20 }
 0x6ff   : > { %v4250_v6 = vmul.f32 -1.442695, %v2946_v10  ;;  %v2950_v38 = vadd.f32 %v2899_v35, %v2856_v41  ;;  %v2947_v49 = vadd.f32 %v2936_v56, %v2853_v57  ;;  %v5024_v11 = vpop.eup %5023  ;;  %v2951_v60 = vadd.f32 %v2940_v61, %v2857_v45 }
 0x700   : > { %5031 = vpow2.f32 %v4249_v42  ;;  %v4252_v27 = vmul.f32 -1.442695, %v2949_v30  ;;  %v2948_v12 = vadd.f32 %v2938_v40, %v2854_v43  ;;  %v2858_v46 = vunpack.c.h.bf16 %v4248_v55 }
 0x701   : > { %v4253_v59 = vmul.f32 -1.442695, %v2950_v38  ;;  %5033 = vpow2.f32 %v4250_v6  ;;  %v4251_v42 = vmul.f32 -1.442695, %v2947_v49  ;;  %v4254_v35 = vmul.f32 -1.442695, %v2951_v60 }
 0x702   : > { %5035 = vpow2.f32 %v4252_v27  ;;  %v2952_v19 = vadd.f32 %v2942_v58, %v2858_v46 }
 0x703   : > { %5037 = vpow2.f32 %v4253_v59 }
 0x704   : > { %5039 = vtanh.f32 %v2948_v12  ;;  %v3008_v12 = vpop.permute.xlu0 %3007 }
 0x705   : > { %5041 = vpow2.f32 %v4251_v42  ;;  %vm3012_vm6 = vcmp.eq.s32.totalorder %v3008_v12, 1  ;;  %v7978_v12 = vld [vmem:[#allocation35_spill] sm:$0xff] }
 0x706   : > { %v5026_v37 = vpop.eup %5025  ;;  %5043 = vpow2.f32 %v4254_v35 }
 0x707   : > { %v2815_v10 = vmul.f32 %v5026_v37, %v5024_v11  ;;  %v5028_v41 = vpop.eup %5027 }
 0x708   : > { %v5030_v30 = vpop.eup %5029 }
 0x709   : > { %v2816_v24 = vmul.f32 %v5030_v30, %v5028_v41  ;;  %v7229_v56 = vsel %vm2828_vm4, %v2815_v10, %v7047_v2  ;;  %v3011_v30 = vpop.permute.xlu1 %3010 }
 0x70a   : > { %v5032_v20 = vpop.eup %5031  ;;  %vm3013_vm7 = vcmp.eq.s32.totalorder %v3011_v30, 1  ;;  %v7982_v30 = vld [vmem:[#allocation39_spill] sm:$0xff] }
 0x70b   : > { %v2971_v6 = vadd.f32 1.0, %v5032_v20  ;;  %v7233_v13 = vsel %vm2829_vm5, %v2816_v24, %v7051_v18  ;;  %v5034_v40 = vpop.eup %5033  ;;  %v7953_v20 = vld [vmem:[#allocation50_spill] sm:$0xff] }
 0x70c   : > { %v2834_v55 = vpack.c.bf16 %v7233_v13, %v7229_v56  ;;  %v5036_v61 = vpop.eup %5035  ;;  %v2972_v57 = vadd.f32 1.0, %v5034_v40 }
 0x70d   : > { %5045 = vrcp.f32 %v2971_v6  ;;  %v2974_v38 = vadd.f32 1.0, %v5036_v61  ;;  %v5038_v58 = vpop.eup %5037  ;;  %v7955_v6 = vld [vmem:[#allocation52_spill] sm:$0xff]  ;;  %v7958_v61 = vld [vmem:[#allocation55_spill] sm:$0xff] }
 0x70e   : > { %5047 = vtanh.f32 %v2952_v19  ;;  %4453 = vst [vmem:[%s5996_s30 + $0x28] sm:$0xff] %v2834_v55   ;;  %3076 = vmatmul.mubr.bf16.vlgmr.msra.gmra.mrb[48].mxu0 %v2834_v55  ;;  %3119 = vmatmul.mubr.bf16.vlgmr.msra.gmra.mrb[48].mxu1 %v2834_v55  ;;  %v2975_v2 = vadd.f32 1.0, %v5038_v58  ;;  %v5040_v18 = vpop.eup %5039  ;;  %v7954_v19 = vld [vmem:[#allocation51_spill] sm:$0xff]  ;;  %v7956_v55 = vld [vmem:[#allocation53_spill] sm:$0xff] }
 0x70f   : > { %5049 = vrcp.f32 %v2972_v57  ;;  %3228 = vmatpush1.bf16.msra.mxu0 %v7056_v5  ;;  %3271 = vmatpush1.bf16.msra.mxu1 %v7059_v31  ;;  %v5042_v47 = vpop.eup %5041  ;;  %v7959_v57 = vld [vmem:[#allocation56_spill] sm:$0xff]  ;;  %v7960_v58 = vld [vmem:[#allocation67_spill] sm:$0xff] }
 0x710   : > { %5051 = vrcp.f32 %v2974_v38  ;;  %3229 = vmatprep.subr.bf16.mxu0 %v7062_v36  ;;  %3272 = vmatprep.subr.bf16.mxu1 %v7065_v14  ;;  %v5044_v21 = vpop.eup %5043  ;;  %v2973_v43 = vadd.f32 1.0, %v5042_v47  ;;  %v7962_v47 = vld [vmem:[#allocation58_spill] sm:$0xff] }
 0x711   : > { %3259 = vmatprep.mubr.bf16.mxu0 %v7840_v28  ;;  %3302 = vmatprep.mubr.bf16.mxu1 %v7840_v28  ;;  %5053 = vrcp.f32 %v2975_v2  ;;  %v2976_v10 = vadd.f32 1.0, %v5044_v21  ;;  %v7961_v2 = vld [vmem:[#allocation57_spill] sm:$0xff] }
 0x712   : > { %5055 = vrcp.f32 %v2973_v43 }
 0x713   : > { %3230 = vmatpush1.bf16.msra.mxu0 %v7070_v1  ;;  %3273 = vmatpush1.bf16.msra.mxu1 %v7073_v62 }
 0x714   : > { %3231 = vmatprep.subr.bf16.mxu0 %v7076_v3  ;;  %3274 = vmatprep.subr.bf16.mxu1 %v7079_v29 }
 0x717   : > { %v5046_v24 = vpop.eup %5045  ;;  %3232 = vmatpush1.bf16.msra.mxu0 %v7082_v39  ;;  %3275 = vmatpush1.bf16.msra.mxu1 %v7085_v53 }
 0x718   : > { %v5048_v27 = vpop.eup %5047  ;;  %v2993_v45 = vmul.f32 %v5046_v24, %v5040_v18  ;;  %3233 = vmatprep.subr.bf16.mxu0 %v7088_v32  ;;  %3276 = vmatprep.subr.bf16.mxu1 %v7091_v52 }
 0x719   : > { %v5050_v59 = vpop.eup %5049 }
 0x71a   : > { %v5052_v49 = vpop.eup %5051  ;;  %v2991_v11 = vmul.f32 %v5050_v59, %v7110_v15 }
 0x71b   : > { %v2994_v60 = vmul.f32 %v5052_v49, %v5048_v27  ;;  %3234 = vmatpush1.bf16.msra.mxu0 %v7095_v50  ;;  %3277 = vmatpush1.bf16.msra.mxu1 %v7098_v7  ;;  %v5054_v37 = vpop.eup %5053  ;;  %v7973_v49 = vld [vmem:[#allocation34_spill] sm:$0xff] }
 0x71c   : > { %v2995_v46 = vadd.f32 %v2993_v45, %v2991_v11  ;;  %3235 = vmatprep.subr.bf16.mxu0 %v7101_v9  ;;  %3278 = vmatprep.subr.bf16.mxu1 %v7104_v25  ;;  %v2992_v41 = vmul.f32 %v5054_v37, %v7126_v0  ;;  %v5056_v38 = vpop.eup %5055  ;;  %v7974_v11 = vld [vmem:[#allocation32_spill] sm:$0xff]  ;;  %v7977_v37 = vld [vmem:[#allocation38_spill] sm:$0xff] }
 0x71e   : > { %5057 = vtanh.f32 %v2995_v46  ;;  %v7260_v42 = vsel %vm3012_vm6, %v2995_v46, %v7110_v15  ;;  %v2996_v35 = vadd.f32 %v2994_v60, %v2992_v41  ;;  %v7957_v15 = vld [vmem:[#allocation54_spill] sm:$0xff]  ;;  %v7976_v60 = vld [vmem:[#allocation33_spill] sm:$0xff] }
 0x71f   : > { %3236 = vmatpush1.bf16.msra.mxu0 %v7112_v54  ;;  %3279 = vmatpush1.bf16.msra.mxu1 %v7953_v20  ;;  %5059 = vrcp.f32 %v2976_v10  ;;  %v7979_v46 = vld [vmem:[#allocation41_spill] sm:$0xff]  ;;  %v7980_v10 = vld [vmem:[#allocation36_spill] sm:$0xff]  ;;  %v7981_v41 = vld [vmem:[#allocation42_spill] sm:$0xff] }
 0x720   : > { %3237 = vmatprep.subr.bf16.mxu0 %v7954_v19  ;;  %3280 = vmatprep.subr.bf16.mxu1 %v7955_v6  ;;  %5061 = vtanh.f32 %v2996_v35  ;;  %v7268_v40 = vsel %vm3013_vm7, %v2996_v35, %v7126_v0  ;;  %v7983_v35 = vld [vmem:[#allocation40_spill] sm:$0xff] }
 0x723   : > { %3238 = vmatpush1.bf16.msra.mxu0 %v7956_v55  ;;  %3281 = vmatpush1.bf16.msra.mxu1 %v7957_v15 }
 0x724   : > { %3239 = vmatprep.subr.bf16.mxu0 %v7958_v61  ;;  %3282 = vmatprep.subr.bf16.mxu1 %v7959_v57 }
 0x727   : > { %3240 = vmatpush1.bf16.msra.mxu0 %v7960_v58  ;;  %3283 = vmatpush1.bf16.msra.mxu1 %v7961_v2 }
 0x728   : > { %v5058_v18 = vpop.eup %5057  ;;  %3241 = vmatprep.subr.bf16.mxu0 %v7962_v47  ;;  %3284 = vmatprep.subr.bf16.mxu1 %v7149_v44 }
 0x729   : > { %v2999_v0 = vmul.f32 %v5058_v18, %v5056_v38  ;;  %v5060_v21 = vpop.eup %5059  ;;  %v7984_v38 = vld [vmem:[#allocation45_spill] sm:$0xff]  ;;  %v7985_v18 = vld [vmem:[#allocation43_spill] sm:$0xff] }
 0x72a   : > { %v5062_v24 = vpop.eup %5061 }
 0x72b   : > { %3242 = vmatpush1.bf16.msra.mxu0 %v7152_v63  ;;  %3285 = vmatpush1.bf16.msra.mxu1 %v7155_v23  ;;  %v3000_v27 = vmul.f32 %v5062_v24, %v5060_v21  ;;  %v7284_v45 = vsel %vm3012_vm6, %v2999_v0, %v7162_v34  ;;  %v7967_v34 = vld [vmem:[#allocation62_spill] sm:$0xff]  ;;  %v7986_v0 = vld [vmem:[#allocation44_spill] sm:$0xff]  ;;  %v7988_v24 = vld [vmem:[#allocation47_spill] sm:$0xff] }
 0x72c   : > { %3411 = vmatprep.subr.bf16.mxu0 %v6916_v8  ;;  %3454 = vmatprep.subr.bf16.mxu1 %v6919_v48  ;;  %7963 = vst [vmem:[#allocation50_spill] sm:$0xff] %v7284_v45  ;;  %v7965_v8 = vld [vmem:[#allocation60_spill] sm:$0xff]  ;;  %v7966_v48 = vld [vmem:[#allocation61_spill] sm:$0xff]  ;;  %v7987_v21 = vld [vmem:[#allocation46_spill] sm:$0xff] }
 0x72d   : > { %v7288_v59 = vsel %vm3013_vm7, %v3000_v27, %v7166_v26  ;;  %v7968_v26 = vld [vmem:[#allocation63_spill] sm:$0xff]  ;;  %v7989_v27 = vld [vmem:[#allocation69_spill] sm:$0xff] }
 0x72e   : > { %7964 = vst [vmem:[#allocation51_spill] sm:$0xff] %v7288_v59  ;;  %v3018_v43 = vpack.c.bf16 %v7288_v59, %v7284_v45 }
 0x730   : > { %4454 = vst [vmem:[%s5998_s23 + $0x10] sm:$0xff] %v3018_v43   ;;  %3260 = vmatmul.mubr.bf16.vlgmr.msra.gmra.mrb[52].mxu0 %v3018_v43  ;;  %3303 = vmatmul.mubr.bf16.vlgmr.msra.gmra.mrb[52].mxu1 %v3018_v43  ;;  %v7990_v43 = vld [vmem:[#allocation48_spill] sm:$0xff] }
 0x731   : > { %3412 = vmatpush1.bf16.msra.mxu0 %v6933_v4  ;;  %3455 = vmatpush1.bf16.msra.mxu1 %v6936_v17  ;;  %v7969_v4 = vld [vmem:[#allocation64_spill] sm:$0xff]  ;;  %v7970_v17 = vld [vmem:[#allocation65_spill] sm:$0xff] }
 0x732   : > { %3413 = vmatprep.subr.bf16.mxu0 %v6939_v22  ;;  %3456 = vmatprep.subr.bf16.mxu1 %v6942_v33  ;;  %v7971_v22 = vld [vmem:[#allocation66_spill] sm:$0xff]  ;;  %v7972_v33 = vld [vmem:[#allocation31_spill] sm:$0xff] }
 0x733   : > { %3443 = vmatprep.mubr.bf16.mxu0 %v7840_v28  ;;  %3486 = vmatprep.mubr.bf16.mxu1 %v7840_v28 }
 0x735   : > { %3414 = vmatpush1.bf16.msra.mxu0 %v6947_v51  ;;  %3457 = vmatpush1.bf16.msra.mxu1 %v7965_v8  ;;  %v7975_v51 = vld [vmem:[#allocation37_spill] sm:$0xff]  ;;  %v7991_v8 = vld [vmem:[#allocation59_spill] sm:$0xff] }
 0x736   : > { %3415 = vmatprep.subr.bf16.mxu0 %v7966_v48  ;;  %3458 = vmatprep.subr.bf16.mxu1 %v7967_v34  ;;  %v4259_v48 = vld [vmem:[%s5971_s22 + $0xc0] sm:$0xff]  ;;  %v4261_v34 = vld [vmem:[%s5971_s22 + $0xd0] sm:$0xff] }
 0x739   : > { %3416 = vmatpush1.bf16.msra.mxu0 %v7968_v26  ;;  %3459 = vmatpush1.bf16.msra.mxu1 %v7969_v4  ;;  %v3035_v26 = vunpack.c.l.bf16 %v4259_v48  ;;  %v3036_v4 = vunpack.c.h.bf16 %v4259_v48 }
 0x73a   : > { %3417 = vmatprep.subr.bf16.mxu0 %v7970_v17  ;;  %3460 = vmatprep.subr.bf16.mxu1 %v7971_v22  ;;  %v3039_v17 = vunpack.c.l.bf16 %v4261_v34 }
 0x73d   : > { %3418 = vmatpush1.bf16.msra.mxu0 %v7972_v33  ;;  %3461 = vmatpush1.bf16.msra.mxu1 %v7973_v49  ;;  %v3040_v49 = vunpack.c.h.bf16 %v4261_v34 }
 0x73e   : > { %3419 = vmatprep.subr.bf16.mxu0 %v7974_v11  ;;  %3462 = vmatprep.subr.bf16.mxu1 %v7975_v51  ;;  %v4260_v51 = vld [vmem:[%s5971_s22 + $0xc8] sm:$0xff] }
 0x73f   : > { %v3038_v48 = vunpack.c.h.bf16 %v4260_v51 }
 0x741   : > { %3420 = vmatpush1.bf16.msra.mxu0 %v7976_v60  ;;  %3463 = vmatpush1.bf16.msra.mxu1 %v7977_v37 }
 0x742   : > { %3421 = vmatprep.subr.bf16.mxu0 %v7978_v12  ;;  %3464 = vmatprep.subr.bf16.mxu1 %v7979_v46 }
 0x745   : > { %3422 = vmatpush1.bf16.msra.mxu0 %v7980_v10  ;;  %3465 = vmatpush1.bf16.msra.mxu1 %v7981_v41  ;;  %v4262_v10 = vld [vmem:[%s5971_s22 + $0xd8] sm:$0xff] }
 0x746   : > { %3423 = vmatprep.subr.bf16.mxu0 %v7982_v30  ;;  %3466 = vmatprep.subr.bf16.mxu1 %v7983_v35 }
 0x749   : > { %3424 = vmatpush1.bf16.msra.mxu0 %v7984_v38  ;;  %3467 = vmatpush1.bf16.msra.mxu1 %v7985_v18 }
 0x74a   : > { %3425 = vmatprep.subr.bf16.mxu0 %v7986_v0  ;;  %3468 = vmatprep.subr.bf16.mxu1 %v7987_v21  ;;  %v3037_v0 = vunpack.c.l.bf16 %v4260_v51 }
 0x74d   : > { %3426 = vmatpush1.bf16.msra.mxu0 %v7988_v24  ;;  %3469 = vmatpush1.bf16.msra.mxu1 %v7989_v27 }
 0x74e   : > { %3593 = vmatprep.subr.bf16.mxu0 %v7990_v43  ;;  %3636 = vmatprep.subr.bf16.mxu1 %v7991_v8  ;;  %v3041_v43 = vunpack.c.l.bf16 %v4262_v10 }
 0x7e1   : > { %v3077_v22 = vpop.f32.mrb[48].mxu0  ;;  %v3120_v33 = vpop.f32.mrb[48].mxu1 }
 0x7e2   : > { %v3129_v11 = vadd.f32 %v3077_v22, %v3035_v26  ;;  %v3079_v60 = vpop.f32.mrb[49].mxu0  ;;  %v3122_v37 = vpop.f32.mrb[49].mxu1  ;;  %v3131_v34 = vadd.f32 %v3120_v33, %v3037_v0  ;;  %v3042_v22 = vunpack.c.h.bf16 %v4262_v10 }
 0x7e3   : > { %v3130_v12 = vadd.f32 %v3079_v60, %v3036_v4  ;;  %v3081_v46 = vpop.f32.mrb[50].mxu0  ;;  %v3124_v41 = vpop.f32.mrb[50].mxu1  ;;  %v3132_v4 = vadd.f32 %v3122_v37, %v3038_v48  ;;  %v4275_v48 = vld [vmem:[%s5981_s17 + $0x30] sm:$0xff] }
 0x7e4   : > { %v4263_v30 = vmul.f32 -1.442695, %v3129_v11  ;;  %v3133_v35 = vadd.f32 %v3081_v46, %v3039_v17  ;;  %v3083_v38 = vpop.f32.mrb[51].mxu0  ;;  %v3126_v18 = vpop.f32.mrb[51].mxu1  ;;  %v3135_v26 = vadd.f32 %v3124_v41, %v3041_v43  ;;  %v4265_v60 = vmul.f32 -1.442695, %v3131_v34 }
 0x7e5   : > { %v4264_v21 = vmul.f32 -1.442695, %v3130_v12  ;;  %v3134_v24 = vadd.f32 %v3083_v38, %v3040_v49  ;;  %v3136_v46 = vadd.f32 %v3126_v18, %v3042_v22  ;;  %v3192_v22 = vpop.permute.xlu0 %3191 }
 0x7e6   : > { %5063 = vpow2.f32 %v4263_v30  ;;  %v4266_v27 = vmul.f32 -1.442695, %v3133_v35  ;;  %v4268_v11 = vmul.f32 -1.442695, %v3135_v26  ;;  %vm3196_vm8 = vcmp.eq.s32.totalorder %v3192_v22, 1 }
 0x7e7   : > { %v4267_v8 = vmul.f32 -1.442695, %v3134_v24  ;;  %5065 = vpow2.f32 %v4264_v21  ;;  %v4273_v21 = vld [vmem:[%s5981_s17 + $0x20] sm:$0xff] }
 0x7e8   : > { %5067 = vpow2.f32 %v4266_v27  ;;  %v3219_v26 = vunpack.c.l.bf16 %v4273_v21 }
 0x7e9   : > { %5069 = vpow2.f32 %v4267_v8 }
 0x7ea   : > { %5071 = vtanh.f32 %v3132_v4 }
 0x7eb   : > { %5073 = vpow2.f32 %v4265_v60 }
 0x7ec   : > { %5075 = vpow2.f32 %v4268_v11 }
 0x7f0   : > { %v5064_v17 = vpop.eup %5063 }
 0x7f1   : > { %v3155_v59 = vadd.f32 1.0, %v5064_v17  ;;  %v5066_v49 = vpop.eup %5065  ;;  %v3220_v17 = vunpack.c.h.bf16 %v4273_v21 }
 0x7f2   : > { %v5068_v12 = vpop.eup %5067  ;;  %v3156_v30 = vadd.f32 1.0, %v5066_v49 }
 0x7f3   : > { %5077 = vrcp.f32 %v3155_v59  ;;  %v3158_v51 = vadd.f32 1.0, %v5068_v12  ;;  %v5070_v33 = vpop.eup %5069  ;;  %v7992_v59 = vld [vmem:[#allocation49_spill] sm:$0xff]  ;;  %v3223_v12 = vunpack.c.l.bf16 %v4275_v48 }
 0x7f4   : > { %5079 = vtanh.f32 %v3136_v46  ;;  %v3159_v37 = vadd.f32 1.0, %v5070_v33  ;;  %v5072_v10 = vpop.eup %5071  ;;  %v3195_v46 = vpop.permute.xlu1 %3194  ;;  %v3224_v33 = vunpack.c.h.bf16 %v4275_v48 }
 0x7f5   : > { %5081 = vrcp.f32 %v3156_v30  ;;  %v5074_v41 = vpop.eup %5073  ;;  %vm3197_vm9 = vcmp.eq.s32.totalorder %v3195_v46, 1 }
 0x7f6   : > { %5083 = vrcp.f32 %v3158_v51  ;;  %v5076_v35 = vpop.eup %5075  ;;  %v3157_v27 = vadd.f32 1.0, %v5074_v41 }
 0x7f7   : > { %5085 = vrcp.f32 %v3159_v37  ;;  %v3160_v11 = vadd.f32 1.0, %v5076_v35 }
 0x7f8   : > { %5087 = vrcp.f32 %v3157_v27 }
 0x7fd   : > { %v5078_v38 = vpop.eup %5077 }
 0x7fe   : > { %v5080_v18 = vpop.eup %5079  ;;  %v3177_v0 = vmul.f32 %v5078_v38, %v5072_v10  ;;  %v4274_v38 = vld [vmem:[%s5981_s17 + $0x28] sm:$0xff] }
 0x7ff   : > { %v5082_v24 = vpop.eup %5081  ;;  %v3221_v48 = vunpack.c.l.bf16 %v4274_v38 }
 0x800   : > { %v5084_v43 = vpop.eup %5083  ;;  %v3175_v8 = vmul.f32 %v5082_v24, %v7992_v59  ;;  %v4276_v24 = vld [vmem:[%s5981_s17 + $0x38] sm:$0xff] }
 0x801   : > { %v3178_v34 = vmul.f32 %v5084_v43, %v5080_v18  ;;  %v5086_v4 = vpop.eup %5085 }
 0x802   : > { %v3179_v60 = vadd.f32 %v3177_v0, %v3175_v8  ;;  %v3176_v49 = vmul.f32 %v5086_v4, %v7225_v16 }
 0x803   : > { %v3261_v30 = vpop.f32.mrb[52].mxu0  ;;  %v3304_v51 = vpop.f32.mrb[52].mxu1 }
 0x804   : > { %5089 = vtanh.f32 %v3179_v60  ;;  %v7337_v37 = vsel %vm3196_vm8, %v3179_v60, %v7992_v59  ;;  %v3180_v10 = vadd.f32 %v3178_v34, %v3176_v49  ;;  %v3313_v41 = vadd.f32 %v3261_v30, %v3219_v26  ;;  %v3263_v35 = vpop.f32.mrb[53].mxu0  ;;  %v3306_v18 = vpop.f32.mrb[53].mxu1 }
 0x805   : > { %7993 = vst [vmem:[#allocation52_spill] sm:$0xff] %v7337_v37  ;;  %5091 = vrcp.f32 %v3160_v11  ;;  %v3314_v0 = vadd.f32 %v3263_v35, %v3220_v17  ;;  %v3265_v21 = vpop.f32.mrb[54].mxu0  ;;  %v3308_v27 = vpop.f32.mrb[54].mxu1  ;;  %v3225_v26 = vunpack.c.l.bf16 %v4276_v24  ;;  %v3222_v17 = vunpack.c.h.bf16 %v4274_v38 }
 0x806   : > { %5093 = vtanh.f32 %v3180_v10  ;;  %v4277_v43 = vmul.f32 -1.442695, %v3313_v41  ;;  %v3317_v8 = vadd.f32 %v3265_v21, %v3223_v12  ;;  %v3267_v4 = vpop.f32.mrb[55].mxu0  ;;  %v3310_v45 = vpop.f32.mrb[55].mxu1  ;;  %v7343_v60 = vsel %vm3197_vm9, %v3180_v10, %v7225_v16 }
 0x807   : > { %v4278_v23 = vmul.f32 -1.442695, %v3314_v0  ;;  %v3318_v59 = vadd.f32 %v3267_v4, %v3224_v33  ;;  %v3315_v49 = vadd.f32 %v3304_v51, %v3221_v48  ;;  %v5088_v30 = vpop.eup %5087  ;;  %v3319_v12 = vadd.f32 %v3308_v27, %v3225_v26 }
 0x808   : > { %5095 = vpow2.f32 %v4277_v43  ;;  %v4280_v34 = vmul.f32 -1.442695, %v3317_v8  ;;  %v3316_v35 = vadd.f32 %v3306_v18, %v3222_v17  ;;  %v3226_v21 = vunpack.c.h.bf16 %v4276_v24 }
 0x809   : > { %v4281_v11 = vmul.f32 -1.442695, %v3318_v59  ;;  %5097 = vpow2.f32 %v4278_v23  ;;  %v4279_v43 = vmul.f32 -1.442695, %v3315_v49  ;;  %v4282_v4 = vmul.f32 -1.442695, %v3319_v12 }
 0x80a   : > { %5099 = vpow2.f32 %v4280_v34  ;;  %v3320_v10 = vadd.f32 %v3310_v45, %v3226_v21 }
 0x80b   : > { %5101 = vpow2.f32 %v4281_v11 }
 0x80c   : > { %5103 = vtanh.f32 %v3316_v35 }
 0x80d   : > { %5105 = vpow2.f32 %v4279_v43 }
 0x80e   : > { %v5090_v41 = vpop.eup %5089  ;;  %5107 = vpow2.f32 %v4282_v4 }
 0x80f   : > { %v3183_v0 = vmul.f32 %v5090_v41, %v5088_v30  ;;  %v5092_v33 = vpop.eup %5091  ;;  %v4288_v30 = vld [vmem:[%s5971_s22 + $0xe8] sm:$0xff] }
 0x810   : > { %v5094_v8 = vpop.eup %5093 }
 0x811   : > { %v3184_v37 = vmul.f32 %v5094_v8, %v5092_v33  ;;  %v7347_v51 = vsel %vm3196_vm8, %v3183_v0, %v7229_v56  ;;  %v4290_v0 = vld [vmem:[%s5971_s22 + $0xf8] sm:$0xff] }
 0x812   : > { %v5096_v16 = vpop.eup %5095 }
 0x813   : > { %v3339_v23 = vadd.f32 1.0, %v5096_v16  ;;  %v7351_v38 = vsel %vm3197_vm9, %v3184_v37, %v7233_v13  ;;  %v5098_v18 = vpop.eup %5097 }
 0x814   : > { %v3202_v24 = vpack.c.bf16 %v7351_v38, %v7347_v51  ;;  %v5100_v27 = vpop.eup %5099  ;;  %v3340_v48 = vadd.f32 1.0, %v5098_v18 }
 0x815   : > { %5109 = vrcp.f32 %v3339_v23  ;;  %v3342_v59 = vadd.f32 1.0, %v5100_v27  ;;  %v5102_v45 = vpop.eup %5101  ;;  %v3409_v27 = vunpack.c.l.bf16 %v4290_v0 }
 0x816   : > { %5111 = vtanh.f32 %v3320_v10  ;;  %4455 = vst [vmem:[%s5996_s30 + $0x30] sm:$0xff] %v3202_v24   ;;  %3444 = vmatmul.mubr.bf16.vlgmr.msra.gmra.mrb[56].mxu0 %v3202_v24  ;;  %3487 = vmatmul.mubr.bf16.vlgmr.msra.gmra.mrb[56].mxu1 %v3202_v24  ;;  %v3343_v56 = vadd.f32 1.0, %v5102_v45  ;;  %v5104_v13 = vpop.eup %5103  ;;  %v3405_v10 = vunpack.c.l.bf16 %v4288_v30 }
 0x817   : > { %5113 = vrcp.f32 %v3340_v48  ;;  %3594 = vmatpush1.bf16.msra.mxu0 %v7056_v5  ;;  %3637 = vmatpush1.bf16.msra.mxu1 %v7059_v31  ;;  %v5106_v5 = vpop.eup %5105 }
 0x818   : > { %5115 = vrcp.f32 %v3342_v59  ;;  %3595 = vmatprep.subr.bf16.mxu0 %v7062_v36  ;;  %3638 = vmatprep.subr.bf16.mxu1 %v7065_v14  ;;  %v5108_v31 = vpop.eup %5107  ;;  %v3406_v59 = vunpack.c.h.bf16 %v4288_v30 }
 0x819   : > { %3625 = vmatprep.mubr.bf16.mxu0 %v7840_v28  ;;  %3668 = vmatprep.mubr.bf16.mxu1 %v7840_v28  ;;  %5117 = vrcp.f32 %v3343_v56 }
 0x81b   : > { %3596 = vmatpush1.bf16.msra.mxu0 %v7070_v1  ;;  %3639 = vmatpush1.bf16.msra.mxu1 %v7073_v62  ;;  %v3341_v1 = vadd.f32 1.0, %v5106_v5  ;;  %v3410_v5 = vunpack.c.h.bf16 %v4290_v0 }
 0x81c   : > { %3597 = vmatprep.subr.bf16.mxu0 %v7076_v3  ;;  %3640 = vmatprep.subr.bf16.mxu1 %v7079_v29 }
 0x81d   : > { %5119 = vrcp.f32 %v3341_v1 }
 0x81f   : > { %v5110_v22 = vpop.eup %5109  ;;  %3598 = vmatpush1.bf16.msra.mxu0 %v7082_v39  ;;  %3641 = vmatpush1.bf16.msra.mxu1 %v7085_v53  ;;  %v3376_v39 = vpop.permute.xlu0 %3375  ;;  %v3344_v53 = vadd.f32 1.0, %v5108_v31 }
 0x820   : > { %v5112_v36 = vpop.eup %5111  ;;  %v3361_v14 = vmul.f32 %v5110_v22, %v5104_v13  ;;  %3599 = vmatprep.subr.bf16.mxu0 %v7088_v32  ;;  %3642 = vmatprep.subr.bf16.mxu1 %v7091_v52  ;;  %vm3380_vm10 = vcmp.eq.s32.totalorder %v3376_v39, 1 }
 0x821   : > { %v5114_v28 = vpop.eup %5113 }
 0x822   : > { %v5116_v62 = vpop.eup %5115  ;;  %v3359_v3 = vmul.f32 %v5114_v28, %v7260_v42 }
 0x823   : > { %v3362_v46 = vmul.f32 %v5116_v62, %v5112_v36  ;;  %3600 = vmatpush1.bf16.msra.mxu0 %v7095_v50  ;;  %3643 = vmatpush1.bf16.msra.mxu1 %v7098_v7  ;;  %v5118_v29 = vpop.eup %5117  ;;  %v3379_v50 = vpop.permute.xlu1 %3378 }
 0x824   : > { %v3363_v37 = vadd.f32 %v3361_v14, %v3359_v3  ;;  %3601 = vmatprep.subr.bf16.mxu0 %v7101_v9  ;;  %3644 = vmatprep.subr.bf16.mxu1 %v7104_v25  ;;  %v3360_v32 = vmul.f32 %v5118_v29, %v7268_v40  ;;  %vm3381_vm11 = vcmp.eq.s32.totalorder %v3379_v50, 1 }
 0x826   : > { %5121 = vtanh.f32 %v3363_v37  ;;  %v7378_v52 = vsel %vm3380_vm10, %v3363_v37, %v7260_v42  ;;  %v3364_v34 = vadd.f32 %v3362_v46, %v3360_v32 }
 0x827   : > { %3602 = vmatpush1.bf16.msra.mxu0 %v7112_v54  ;;  %3645 = vmatpush1.bf16.msra.mxu1 %v7953_v20  ;;  %5123 = vrcp.f32 %v3344_v53  ;;  %v5120_v9 = vpop.eup %5119 }
 0x828   : > { %3603 = vmatprep.subr.bf16.mxu0 %v7954_v19  ;;  %3646 = vmatprep.subr.bf16.mxu1 %v7955_v6  ;;  %5125 = vtanh.f32 %v3364_v34  ;;  %v7386_v7 = vsel %vm3381_vm11, %v3364_v34, %v7268_v40  ;;  %v7994_v19 = vld [vmem:[#allocation68_spill] sm:$0xff]  ;;  %v7995_v40 = vld [vmem:[#allocation50_spill] sm:$0xff] }
 0x82b   : > { %3604 = vmatpush1.bf16.msra.mxu0 %v7956_v55  ;;  %3647 = vmatpush1.bf16.msra.mxu1 %v7957_v15  ;;  %v7996_v15 = vld [vmem:[#allocation51_spill] sm:$0xff] }
 0x82c   : > { %3605 = vmatprep.subr.bf16.mxu0 %v7958_v61  ;;  %3648 = vmatprep.subr.bf16.mxu1 %v7959_v57  ;;  %v4289_v57 = vld [vmem:[%s5971_s22 + $0xf0] sm:$0xff] }
 0x82d   : > { %v3408_v17 = vunpack.c.h.bf16 %v4289_v57 }
 0x82f   : > { %3606 = vmatpush1.bf16.msra.mxu0 %v7960_v58  ;;  %3649 = vmatpush1.bf16.msra.mxu1 %v7961_v2 }
 0x830   : > { %v5122_v25 = vpop.eup %5121  ;;  %3607 = vmatprep.subr.bf16.mxu0 %v7962_v47  ;;  %3650 = vmatprep.subr.bf16.mxu1 %v7149_v44  ;;  %v3407_v47 = vunpack.c.l.bf16 %v4289_v57  ;;  %v3560_v57 = vpop.permute.xlu0 %3559 }
 0x831   : > { %v3367_v54 = vmul.f32 %v5122_v25, %v5120_v9  ;;  %v5124_v42 = vpop.eup %5123  ;;  %v3581_v25 = vld [vmem:[%s5981_s17] sm:$0xff]  ;;  %vm3564_vm12 = vcmp.eq.s32.totalorder %v3560_v57, 1 }
 0x832   : > { %v5126_v20 = vpop.eup %5125 }
 0x833   : > { %3608 = vmatpush1.bf16.msra.mxu0 %v7152_v63  ;;  %3651 = vmatpush1.bf16.msra.mxu1 %v7994_v19  ;;  %v3368_v6 = vmul.f32 %v5126_v20, %v5124_v42  ;;  %v7400_v55 = vsel %vm3380_vm10, %v3367_v54, %v7995_v40  ;;  %v4287_v63 = vld [vmem:[%s5971_s22 + $0xe0] sm:$0xff]  ;;  %v7997_v19 = vld [vmem:[#allocation52_spill] sm:$0xff] }
 0x834   : > { %v3403_v58 = vunpack.c.l.bf16 %v4287_v63  ;;  %v3404_v2 = vunpack.c.h.bf16 %v4287_v63 }
 0x835   : > { %v7404_v61 = vsel %vm3381_vm11, %v3368_v6, %v7996_v15  ;;  %v3585_v15 = vunpack.c.l.bf16 %v3581_v25 }
 0x836   : > { %v3386_v44 = vpack.c.bf16 %v7404_v61, %v7400_v55 }
 0x838   : > { %4456 = vst [vmem:[%s5998_s23 + $0x8] sm:$0xff] %v3386_v44   ;;  %3626 = vmatmul.mubr.bf16.vlgmr.msra.gmra.mrb[60].mxu0 %v3386_v44  ;;  %3669 = vmatmul.mubr.bf16.vlgmr.msra.gmra.mrb[60].mxu1 %v3386_v44  ;;  %v3583_v44 = vld [vmem:[%s5981_s17 + $0x10] sm:$0xff] }
 0x8e9   : > { %v3445_v26 = vpop.f32.mrb[56].mxu0  ;;  %v3488_v11 = vpop.f32.mrb[56].mxu1 }
 0x8ea   : > { %v3497_v49 = vadd.f32 %v3445_v26, %v3403_v58  ;;  %v3447_v12 = vpop.f32.mrb[57].mxu0  ;;  %v3490_v41 = vpop.f32.mrb[57].mxu1  ;;  %v3499_v45 = vadd.f32 %v3488_v11, %v3405_v10 }
 0x8eb   : > { %v3498_v35 = vadd.f32 %v3447_v12, %v3404_v2  ;;  %v3449_v21 = vpop.f32.mrb[58].mxu0  ;;  %v3492_v33 = vpop.f32.mrb[58].mxu1  ;;  %v3500_v13 = vadd.f32 %v3490_v41, %v3406_v59  ;;  %v3589_v12 = vunpack.c.l.bf16 %v3583_v44 }
 0x8ec   : > { %v4291_v43 = vmul.f32 -1.442695, %v3497_v49  ;;  %v3501_v8 = vadd.f32 %v3449_v21, %v3407_v47  ;;  %v3451_v4 = vpop.f32.mrb[59].mxu0  ;;  %v3494_v16 = vpop.f32.mrb[59].mxu1  ;;  %v3503_v56 = vadd.f32 %v3492_v33, %v3409_v27  ;;  %v4293_v31 = vmul.f32 -1.442695, %v3499_v45 }
 0x8ed   : > { %v4292_v23 = vmul.f32 -1.442695, %v3498_v35  ;;  %v3502_v18 = vadd.f32 %v3451_v4, %v3408_v17  ;;  %v3504_v14 = vadd.f32 %v3494_v16, %v3410_v5  ;;  %v3586_v47 = vunpack.c.h.bf16 %v3581_v25  ;;  %v3563_v26 = vpop.permute.xlu1 %3562  ;;  %v3582_v21 = vld [vmem:[%s5981_s17 + $0x8] sm:$0xff]  ;;  %v3584_v16 = vld [vmem:[%s5981_s17 + $0x18] sm:$0xff] }
 0x8ee   : > { %5127 = vpow2.f32 %v4291_v43  ;;  %v4294_v24 = vmul.f32 -1.442695, %v3501_v8  ;;  %v4296_v22 = vmul.f32 -1.442695, %v3503_v56  ;;  %v3590_v43 = vunpack.c.h.bf16 %v3583_v44 }
 0x8ef   : > { %v4295_v48 = vmul.f32 -1.442695, %v3502_v18  ;;  %5129 = vpow2.f32 %v4292_v23  ;;  %vm3565_vm13 = vcmp.eq.s32.totalorder %v3563_v26, 1  ;;  %v3591_v56 = vunpack.c.l.bf16 %v3584_v16 }
 0x8f0   : > { %5131 = vpow2.f32 %v4294_v24 }
 0x8f1   : > { %5133 = vpow2.f32 %v4295_v48  ;;  %v3587_v48 = vunpack.c.l.bf16 %v3582_v21 }
 0x8f2   : > { %5135 = vtanh.f32 %v3500_v13 }
 0x8f3   : > { %5137 = vpow2.f32 %v4293_v31  ;;  %v3588_v31 = vunpack.c.h.bf16 %v3582_v21 }
 0x8f4   : > { %5139 = vpow2.f32 %v4296_v22 }
 0x8f8   : > { %v5128_v36 = vpop.eup %5127 }
 0x8f9   : > { %v3523_v28 = vadd.f32 1.0, %v5128_v36  ;;  %v5130_v1 = vpop.eup %5129 }
 0x8fa   : > { %v5132_v62 = vpop.eup %5131  ;;  %v3524_v3 = vadd.f32 1.0, %v5130_v1 }
 0x8fb   : > { %5141 = vrcp.f32 %v3523_v28  ;;  %v3526_v46 = vadd.f32 1.0, %v5132_v62  ;;  %v5134_v29 = vpop.eup %5133 }
 0x8fc   : > { %5143 = vtanh.f32 %v3504_v14  ;;  %v3527_v39 = vadd.f32 1.0, %v5134_v29  ;;  %v5136_v37 = vpop.eup %5135 }
 0x8fd   : > { %5145 = vrcp.f32 %v3524_v3  ;;  %v5138_v53 = vpop.eup %5137  ;;  %v3592_v3 = vunpack.c.h.bf16 %v3584_v16 }
 0x8fe   : > { %5147 = vrcp.f32 %v3526_v46  ;;  %v5140_v32 = vpop.eup %5139  ;;  %v3525_v42 = vadd.f32 1.0, %v5138_v53 }
 0x8ff   : > { %5149 = vrcp.f32 %v3527_v39  ;;  %v3528_v2 = vadd.f32 1.0, %v5140_v32 }
 0x900   : > { %5151 = vrcp.f32 %v3525_v42 }
 0x905   : > { %v5142_v50 = vpop.eup %5141 }
 0x906   : > { %v5144_v34 = vpop.eup %5143  ;;  %v3545_v9 = vmul.f32 %v5142_v50, %v5136_v37 }
 0x907   : > { %v5146_v54 = vpop.eup %5145 }
 0x908   : > { %v5148_v20 = vpop.eup %5147  ;;  %v3543_v6 = vmul.f32 %v5146_v54, %v7997_v19 }
 0x909   : > { %v3546_v40 = vmul.f32 %v5148_v20, %v5144_v34  ;;  %v5150_v63 = vpop.eup %5149 }
 0x90a   : > { %v3547_v58 = vadd.f32 %v3545_v9, %v3543_v6  ;;  %v3544_v11 = vmul.f32 %v5150_v63, %v7343_v60  ;;  %v5152_v14 = vpop.eup %5151 }
 0x90b   : > { %v3627_v49 = vpop.f32.mrb[60].mxu0  ;;  %v3670_v30 = vpop.f32.mrb[60].mxu1 }
 0x90c   : > { %5153 = vtanh.f32 %v3547_v58  ;;  %v3568_v17 = vsel %vm3564_vm12, %v3547_v58, %v7997_v19  ;;  %v3548_v41 = vadd.f32 %v3546_v40, %v3544_v11  ;;  %v3679_v35 = vadd.f32 %v3627_v49, %v3585_v15  ;;  %v3629_v0 = vpop.f32.mrb[61].mxu0  ;;  %v3672_v33 = vpop.f32.mrb[61].mxu1 }
 0x90d   : > { %3764 = vst [vmem:[#allocation3] sm:$0xff] %v3568_v17  ;;  %5155 = vrcp.f32 %v3528_v2  ;;  %v3680_v8 = vadd.f32 %v3629_v0, %v3586_v47  ;;  %v3631_v4 = vpop.f32.mrb[62].mxu0  ;;  %v3674_v10 = vpop.f32.mrb[62].mxu1  ;;  %v3681_v36 = vadd.f32 %v3670_v30, %v3587_v48  ;;  %v3682_v62 = vadd.f32 %v3672_v33, %v3588_v31 }
 0x90e   : > { %5157 = vtanh.f32 %v3548_v41  ;;  %v3569_v23 = vsel %vm3565_vm13, %v3548_v41, %v7343_v60  ;;  %v4301_v18 = vmul.f32 -1.442695, %v3679_v35  ;;  %v3633_v24 = vpop.f32.mrb[63].mxu0  ;;  %v3676_v27 = vpop.f32.mrb[63].mxu1  ;;  %v3683_v45 = vadd.f32 %v3631_v4, %v3589_v12 }
 0x90f   : > { %3765 = vst [vmem:[#allocation3 + $0x8] sm:$0xff] %v3569_v23  ;;  %v4302_v59 = vmul.f32 -1.442695, %v3680_v8  ;;  %v3684_v13 = vadd.f32 %v3633_v24, %v3590_v43  ;;  %v3685_v28 = vadd.f32 %v3674_v10, %v3591_v56  ;;  %v4303_v29 = vmul.f32 -1.442695, %v3681_v36  ;;  %v3742_v11 = vpop.permute.xlu0 %3741  ;;  %v3745_v35 = vpop.permute.xlu1 %3744 }
 0x910   : > { %5159 = vpow2.f32 %v4301_v18  ;;  %v4304_v5 = vmul.f32 -1.442695, %v3683_v45  ;;  %v3686_v34 = vadd.f32 %v3676_v27, %v3592_v3  ;;  %vm3746_vm14 = vcmp.eq.s32.totalorder %v3742_v11, 1 }
 0x911   : > { %5161 = vpow2.f32 %v4302_v59  ;;  %v4305_v22 = vmul.f32 -1.442695, %v3684_v13  ;;  %v4306_v53 = vmul.f32 -1.442695, %v3685_v28  ;;  %vm3747_vm15 = vcmp.eq.s32.totalorder %v3745_v35, 1 }
 0x912   : > { %5163 = vpow2.f32 %v4304_v5 }
 0x913   : > { %5165 = vpow2.f32 %v4305_v22 }
 0x914   : > { %5167 = vtanh.f32 %v3682_v62 }
 0x915   : > { %5169 = vpow2.f32 %v4303_v29 }
 0x916   : > { %v5154_v1 = vpop.eup %5153  ;;  %5171 = vpow2.f32 %v4306_v53 }
 0x917   : > { %v3551_v60 = vmul.f32 %v5154_v1, %v5152_v14  ;;  %v5156_v46 = vpop.eup %5155 }
 0x918   : > { %v5158_v39 = vpop.eup %5157 }
 0x919   : > { %v7425_v37 = vsel %vm3564_vm12, %v3551_v60, %v7347_v51  ;;  %v3552_v32 = vmul.f32 %v5158_v39, %v5156_v46 }
 0x91a   : > { %3762 = vst [vmem:[#allocation2] sm:$0xff] %v7425_v37  ;;  %v5160_v50 = vpop.eup %5159  ;;  %3774 = vst [vmem:[#allocation17] sm:$0xff] (!%p4309_p1), %v7425_v37 }
 0x91b   : > { %v3567_v9 = vsel %vm3565_vm13, %v3552_v32, %v7351_v38  ;;  %v3705_v25 = vadd.f32 1.0, %v5160_v50  ;;  %v5162_v54 = vpop.eup %5161 }
 0x91c   : > { %v4437_v42 = vpack.c.bf16 %v3567_v9, %v7425_v37  ;;  %3763 = vst [vmem:[#allocation2 + $0x8] sm:$0xff] %v3567_v9  ;;  %v5164_v51 = vpop.eup %5163  ;;  %v3706_v20 = vadd.f32 1.0, %v5162_v54  ;;  %3775 = vst [vmem:[#allocation17 + $0x8] sm:$0xff] (!%p4309_p1), %v3567_v9 }
 0x91d   : > { %5173 = vrcp.f32 %v3705_v25  ;;  %v3708_v19 = vadd.f32 1.0, %v5164_v51  ;;  %v5166_v6 = vpop.eup %5165 }
 0x91e   : > { %4457 = vst [vmem:[%s5996_s30 + $0x38] sm:$0xff] %v4437_v42   ;;  %5175 = vtanh.f32 %v3686_v34  ;;  %v3709_v40 = vadd.f32 1.0, %v5166_v6  ;;  %v5168_v15 = vpop.eup %5167 }
 0x91f   : > { %5177 = vrcp.f32 %v3706_v20  ;;  %v5170_v38 = vpop.eup %5169 }
 0x920   : > { %5179 = vrcp.f32 %v3708_v19  ;;  %v5172_v44 = vpop.eup %5171  ;;  %v3707_v47 = vadd.f32 1.0, %v5170_v38 }
 0x921   : > { %5181 = vrcp.f32 %v3709_v40  ;;  %v3710_v41 = vadd.f32 1.0, %v5172_v44 }
 0x922   : > { %5183 = vrcp.f32 %v3707_v47 }
 0x927   : > { %v5174_v63 = vpop.eup %5173 }
 0x928   : > { %v5176_v57 = vpop.eup %5175  ;;  %v3727_v58 = vmul.f32 %v5174_v63, %v5168_v15 }
 0x929   : > { %v5178_v2 = vpop.eup %5177 }
 0x92a   : > { %v5180_v26 = vpop.eup %5179  ;;  %v3725_v17 = vmul.f32 %v5178_v2, %v7378_v52 }
 0x92b   : > { %v3728_v49 = vmul.f32 %v5180_v26, %v5176_v57  ;;  %v5182_v30 = vpop.eup %5181 }
 0x92c   : > { %v3729_v12 = vadd.f32 %v3727_v58, %v3725_v17  ;;  %v3726_v21 = vmul.f32 %v5182_v30, %v7386_v7  ;;  %v5184_v8 = vpop.eup %5183 }
 0x92e   : > { %5185 = vtanh.f32 %v3729_v12  ;;  %v3750_v0 = vsel %vm3746_vm14, %v3729_v12, %v7378_v52  ;;  %v3730_v33 = vadd.f32 %v3728_v49, %v3726_v21 }
 0x92f   : > { %3768 = vst [vmem:[#allocation5] sm:$0xff] %v3750_v0  ;;  %5187 = vrcp.f32 %v3710_v41 }
 0x930   : > { %5189 = vtanh.f32 %v3730_v33  ;;  %v3751_v43 = vsel %vm3747_vm15, %v3730_v33, %v7386_v7 }
 0x931   : > { %3769 = vst [vmem:[#allocation5 + $0x8] sm:$0xff] %v3751_v43 }
 0x938   : > { %v5186_v4 = vpop.eup %5185 }
 0x939   : > { %v3733_v16 = vmul.f32 %v5186_v4, %v5184_v8  ;;  %v5188_v10 = vpop.eup %5187 }
 0x93a   : > { %v5190_v23 = vpop.eup %5189  ;;  %3773 = sbr.rel (%p4309_p1) target bundleno = 2369 (0x941), region = 64 }
 0x93b   : > { %v3748_v18 = vsel %vm3746_vm14, %v3733_v16, %v7400_v55  ;;  %v3734_v24 = vmul.f32 %v5190_v23, %v5188_v10 }
 0x93c   : > { %3766 = vst [vmem:[#allocation4] sm:$0xff] %v3748_v18  ;;  %3776 = vst [vmem:[#allocation18] sm:$0xff] (!%p4309_p1), %v3748_v18 }
 0x93d   : > { %v3749_v52 = vsel %vm3747_vm15, %v3734_v24, %v7404_v61 }
 0x93e   : > { %v4442_v27 = vpack.c.bf16 %v3749_v52, %v3748_v18  ;;  %3767 = vst [vmem:[#allocation4 + $0x8] sm:$0xff] %v3749_v52  ;;  %3777 = vst [vmem:[#allocation18 + $0x8] sm:$0xff] (!%p4309_p1), %v3749_v52 }
 0x940   : > { %4443 = vst [vmem:[%s5998_s23] sm:$0xff] %v4442_v27  }
 0x941 PF: > { %s4363_s22 = sshll.u32 %s426_s27, 10  ;;  %s3816_s25 = sshll.u32 %s5998_s23, 4  ;;  %s7451_s25 = int_to_ptr.vmem [resolvable:$true] %s3816_s25 }
 0x942   : > { %s7448_s0 = scalar_lea.hbm %s7598_s6, %s4363_s22  ;;  %s7455_s21 = scalar_lea.sflag [#allocation16], %s351_s18 }
 0x943   : > { %s5435_s16 = scalar_lea.vmem %s7451_s25, 1024  ;;  %p7998_p7 = scmp.ne.s32.totalorder %s7773_s19, 0 }
 0x944   : > { %p5436_p11 = scmp.ne.s32.totalorder %s7451_s25, %s5435_s16  ;;  %s5639_s27 = smov [#allocation15]  }
 0x945   : > { %s5439_s26 = sshll.u32 %s5639_s27, 4  ;;  %s5440_s26 = int_to_ptr.vmem [resolvable:$false] %s5439_s26 }
 0x946   : > { %p5437_p5 = pnand %p5436_p11, %p7998_p7  ;;  %s5441_s14 = scalar_lea.vmem %s5440_s26, 2048 }
 0x947   : > { %p5442_p6 = scmp.lt.s32.totalorder %s7451_s25, %s5440_s26  ;;  %p5443_p8 = scmp.lt.s32.totalorder %s5441_s14, %s5435_s16 }
 0x948   : > { %p5438_p4 = pneg %p5437_p5 }
 0x949   : > { %p5444_p0 = por %p5443_p8, %p5442_p6 }
 0x94b   : > { %p5445_p12 = pnand %p5444_p0, %p5438_p4 }
 0x94d   : > { %5448 = shalt.err (!%p5445_p12)
}
 0x94e   : > { %s5449_s18 = scalar_lea.hbm %s7448_s0, 1024  ;;  %s5453_s22 = scalar_lea.hbm %s7598_s6, 3072 }
 0x94f   : > { %p5450_p13 = scmp.ne.s32.totalorder %s7448_s0, %s5449_s18  ;;  %p5454_p10 = scmp.lt.u32.totalorder %s7448_s0, %s7598_s6 }
 0x950   : > { %p5455_p2 = scmp.lt.u32.totalorder %s5453_s22, %s5449_s18  ;;  %p5457_p11 = scmp.lt.u32.totalorder %s5449_s18, %s7448_s0 }
 0x951   : > { %p5451_p3 = pnand %p5450_p13, %p7998_p7 }
 0x952   : > { %p5456_p1 = por %p5455_p2, %p5454_p10 }
 0x953   : > { %p5452_p9 = pneg %p5451_p3 }
 0x954   : > { %p5458_p5 = por %p5457_p11, %p5456_p1 }
 0x956   : > { %p5459_p4 = pnand %p5458_p5, %p5452_p9 }
 0x958   : > { %5462 = shalt.err (!%p5459_p4)
}
 0x959   : > { %s5640_s16 = smov 64   ;;  %s5641_s27 = smov 4  }
 0x95a   : > { %4471 = dma.vmem_to_hbm [thread:$0]  (%p7998_p7), %s7451_s25, 1024, %s7448_s0, %s7455_s21, %s5640_s16, %s5640_s16, %s5641_s27  }
 0x95b   : > { %s4361_s26 = sshll.u32 %s5726_s12, 10  ;;  %s3798_s14 = sshll.u32 %s5996_s30, 4  ;;  %s7489_s14 = int_to_ptr.vmem [resolvable:$true] %s3798_s14 }
 0x95c   : > { %s7487_s2 = scalar_lea.hbm %s7597_s5, %s4361_s26  ;;  %s3779_s22 = scalar_lea.sflag [#allocation8], %s5967_s20 }
 0x95d   : > { %s5463_s17 = scalar_lea.vmem %s7489_s14, 1024  ;;  %p7999_p8 = scmp.ne.s32.totalorder %s7766_s24, 0 }
 0x95e   : > { %p5464_p6 = scmp.ne.s32.totalorder %s7489_s14, %s5463_s17  ;;  %s5642_s19 = smov [#allocation14]  }
 0x95f   : > { %s5467_s0 = sshll.u32 %s5642_s19, 4  ;;  %s5468_s0 = int_to_ptr.vmem [resolvable:$false] %s5467_s0 }
 0x960   : > { %p5465_p0 = pnand %p5464_p6, %p7999_p8  ;;  %s5469_s30 = scalar_lea.vmem %s5468_s0, 2048 }
 0x961   : > { %p5470_p7 = scmp.lt.s32.totalorder %s7489_s14, %s5468_s0  ;;  %p5471_p13 = scmp.lt.s32.totalorder %s5469_s30, %s5463_s17 }
 0x962   : > { %p5466_p12 = pneg %p5465_p0 }
 0x963   : > { %p5472_p3 = por %p5471_p13, %p5470_p7 }
 0x965   : > { %p5473_p9 = pnand %p5472_p3, %p5466_p12 }
 0x967   : > { %5476 = shalt.err (!%p5473_p9)
}
 0x968   : > { %s5477_s25 = scalar_lea.hbm %s7487_s2, 1024  ;;  %s5481_s26 = scalar_lea.hbm %s7597_s5, 3072 }
 0x969   : > { %p5478_p10 = scmp.ne.s32.totalorder %s7487_s2, %s5477_s25  ;;  %p5482_p11 = scmp.lt.u32.totalorder %s7487_s2, %s7597_s5 }
 0x96a   : > { %p5483_p5 = scmp.lt.u32.totalorder %s5481_s26, %s5477_s25  ;;  %p5485_p6 = scmp.lt.u32.totalorder %s5477_s25, %s7487_s2 }
 0x96b   : > { %p5479_p2 = pnand %p5478_p10, %p7999_p8 }
 0x96c   : > { %p5484_p4 = por %p5483_p5, %p5482_p11 }
 0x96d   : > { %p5480_p1 = pneg %p5479_p2 }
 0x96e   : > { %p5486_p0 = por %p5485_p6, %p5484_p4 }
 0x970   : > { %p5487_p12 = pnand %p5486_p0, %p5480_p1 }
 0x972   : > { %5490 = shalt.err (!%p5487_p12)
}
 0x973   : > { %4470 = dma.vmem_to_hbm [thread:$0]  (%p7999_p8), %s7489_s14, 1024, %s7487_s2, %s3779_s22, %s5640_s16, %s5640_s16, %s5641_s27  }
 0x974   : > { %s5643_s17 = smov [#allocation17]   ;;  %p8000_p13 = scmp.eq.s32.totalorder %s5726_s12, 2 }
 0x975   : > { %s3829_s19 = sshll.u32 %s5643_s17, 4  ;;  %s3830_s19 = int_to_ptr.vmem [resolvable:$true] %s3829_s19 }
 0x976   : > { %s5491_s0 = scalar_lea.vmem %s3830_s19, 256  ;;  %p5498_p10 = scmp.lt.s32.totalorder %s3830_s19, %s3830_s19 }
 0x977   : > { %p5492_p7 = scmp.ne.s32.totalorder %s3830_s19, %s5491_s0  ;;  %p5499_p2 = scmp.lt.s32.totalorder %s5491_s0, %s5491_s0 }
 0x979   : > { %p5493_p3 = pnand %p5492_p7, %p8000_p13  ;;  %p5500_p1 = por %p5499_p2, %p5498_p10 }
 0x97b   : > { %p5494_p9 = pneg %p5493_p3 }
 0x97d   : > { %p5501_p11 = pnand %p5500_p1, %p5494_p9 }
 0x97f   : > { %5504 = shalt.err (!%p5501_p11)
}
 0x980   : > { %s5505_s20 = scalar_lea.hbm %s7599_s7, 256  ;;  %p8001_p5 = pmov %p8000_p13 }
 0x981   : > { %p5506_p8 = scmp.ne.s32.totalorder %s7599_s7, %s5505_s20  ;;  %p5511_p0 = scmp.lt.u32.totalorder %s5505_s20, %s7599_s7 }
 0x983   : > { %p5507_p4 = pnand %p5506_p8, %p8001_p5 }
 0x985   : > { %p5508_p6 = pneg %p5507_p4 }
 0x987   : > { %p5513_p12 = pnand %p5511_p0, %p5508_p6 }
 0x989   : > { %5516 = shalt.err (!%p5513_p12)
}
 0x98a   : > { %s5644_s2 = smov 128   ;;  %s5645_s22 = smov 8  }
 0x98b   : > { %p8002_p7 = pmov %p8001_p5  ;;  %s5646_s26 = smov [#allocation18]  }
 0x98c   : > { %s3842_s18 = sshll.u32 %s5646_s26, 4  ;;  %p8003_p3 = pmov %p8001_p5  ;;  %s3843_s18 = int_to_ptr.vmem [resolvable:$true] %s3842_s18 }
 0x98d   : > { %4473 = dma.vmem_to_hbm [thread:$0]  (%p8002_p7), %s3830_s19, 256, %s7599_s7, [#allocation16], %s5644_s2, %s5644_s2, %s5645_s22  }
 0x98e   : > { %s5517_s23 = scalar_lea.vmem %s3843_s18, 256  ;;  %p5524_p2 = scmp.lt.s32.totalorder %s3843_s18, %s3843_s18 }
 0x98f   : > { %p5518_p13 = scmp.ne.s32.totalorder %s3843_s18, %s5517_s23  ;;  %p5525_p1 = scmp.lt.s32.totalorder %s5517_s23, %s5517_s23 }
 0x991   : > { %p5519_p9 = pnand %p5518_p13, %p8003_p3  ;;  %p5526_p11 = por %p5525_p1, %p5524_p2 }
 0x993   : > { %p5520_p10 = pneg %p5519_p9 }
 0x995   : > { %p5527_p8 = pnand %p5526_p11, %p5520_p10 }
 0x997   : > { %5530 = shalt.err (!%p5527_p8)
}
 0x998   : > { %s8004_s24 = sld [smem:[#allocation73_spill]]  ;;  %p8005_p4 = pmov %p8003_p3 }
 0x99e   : > { %s5531_s30 = scalar_lea.hbm %s8004_s24, 256 }
 0x99f   : > { %p5532_p5 = scmp.ne.s32.totalorder %s8004_s24, %s5531_s30  ;;  %p5537_p12 = scmp.lt.u32.totalorder %s5531_s30, %s8004_s24 }
 0x9a1   : > { %p5533_p6 = pnand %p5532_p5, %p8005_p4 }
 0x9a3   : > { %p5534_p0 = pneg %p5533_p6 }
 0x9a5   : > { %p5539_p7 = pnand %p5537_p12, %p5534_p0 }
 0x9a7   : > { %5542 = shalt.err (!%p5539_p7)
}
 0x9a8   : > { %p8006_p13 = pmov %p8003_p3 }
 0x9aa   : > { %4475 = dma.vmem_to_hbm [thread:$0]  (%p8006_p13), %s3843_s18, 256, %s8004_s24, [#allocation19], %s5644_s2, %s5644_s2, %s5645_s22  }
 0x9ab   : > { %5588 = dma.done.wait (%p8003_p3), [#allocation16], 256   ;;  %p8007_p9 = pmov %p8003_p3 }
 0x9ac   : > { %p8008_p10 = pmov %p8003_p3 }
 0x9ad   : > { %5590 = vsyncadd (%p8007_p9), [#allocation16], 4294967040 }
 0x9ae   : > { %5592 = dma.done.wait (%p8008_p10), [#allocation19], 256   ;;  %p8009_p2 = pmov %p8003_p3 }
 0x9b0   : > { %5594 = vsyncadd (%p8009_p2), [#allocation19], 4294967040 }
 0x9b1 PF: > { %s8010_s21 = sld [smem:[#allocation28_spill]]  ;;  %s8011_s15 = sld [smem:[#allocation29_spill]] }
 0x9b2   : > { %p4512_p1 = scmp.ge.s32.totalorder %s5629_s11, 2 }
 0x9b7   : > { %s3865_s26 = sand.u32 1, %s8010_s21   ;;  %p8012_p11 = scmp.ne.s32.totalorder %s8011_s15, 0 }
 0x9b8   : > { %s3866_s2 = scalar_lea.sflag [#allocation8], %s3865_s26 }
 0x9b9   : > { %p4497_p8 = pnand %p4512_p1, %p8012_p11 }
 0x9bb   : > { %5596 = dma.done.wait (!%p4497_p8), %s3866_s2, 1024  }
 0x9bc   : > { %5598 = vsyncadd (!%p4497_p8), %s3866_s2, 4294966272  ;;  %s8013_s22 = sadd.s32 4294967294, %s5629_s11   ;;  %s8014_s18 = sld [smem:[#allocation30_spill]] }
 0x9bd   : > { %s3874_s23 = sand.u32 1, %s8013_s22  }
 0x9be   : > { %s3875_s17 = scalar_lea.sflag [#allocation16], %s3874_s23 }
 0x9c2   : > { %p8015_p5 = scmp.ne.s32.totalorder %s8014_s18, 0 }
 0x9c4   : > { %p4500_p4 = pnand %p4512_p1, %p8015_p5 }
 0x9c6   : > { %5600 = dma.done.wait (!%p4500_p4), %s3875_s17, 1024  }
 0x9c7   : > { %5602 = vsyncadd (!%p4500_p4), %s3875_s17, 4294966272  ;;  %p30_p6 = scmp.ge.s32.totalorder %s5862_s8, 5   ;;  %s8016_s27 = smov %s5609_s28 }
 0x9c8   : > { %s8017_s28 = smov %s5613_s29  ;;  %s8018_s29 = smov %s5910_s3 }
 0x9c9   : > { %s8019_s30 = smov %s5621_s9  ;;  %s8020_s9 = smov %s5625_s10 }
 0x9ca   : > { %s8021_s10 = smov %s5903_s13  ;;  %s8022_s11 = smov %s5862_s8 }
 0x9cb   :  { %32 = sbr.rel (!%p30_p6) target bundleno = 18 (0x12), region = 175 }
 0x9d2   :  { %3880 = vsyncpa [#allocation7], 1 }
 0x9d3   :  { %3882 = vsyncpa [#allocation7 + $0x1], 1 }
 0x9d4   :  { %3883 = vsyncpa [#allocation10], 1 }
 0x9d5   :  { %3885 = vsyncpa [#allocation10 + $0x1], 1 }
 0x9d6   :  { %3886 = vsyncpa [#allocation13], 1 }
 0x9d7   :  { %3887 = vsyncpa [#allocation8], 1 }
 0x9d8   :  { %3889 = vsyncpa [#allocation8 + $0x1], 1 }
 0x9d9   :  { %3890 = vsyncpa [#allocation16], 1 }
 0x9da   :  { %3892 = vsyncpa [#allocation16 + $0x1], 1 }
 0x9db   :  { %3893 = vsyncpa [#allocation19], 1 }

</bundles_post_ra>
